<compile_context>
chip_gen: v5e
topology: v5e:2x2
jax: 0.10.0
libtpu: 0.0.40
codegen_flags: <defaults>
</compile_context>

<pallas_src>
import functools

import jax
import jax.numpy as jnp
from jax.experimental import pallas as pl
from jax.experimental.pallas import tpu as pltpu

_VMEM_LIMIT = 32 * 1024 * 1024      # safe on v5e/v6e (128 MiB) and v7x (64 MiB)


def _round_up(x, m):
    return ((x + m - 1) // m) * m


def _largest_divisor_leq(n, cap):
    for d in range(min(n, cap), 0, -1):
        if n % d == 0:
            return d
    return 1


# ----------------------------------------------------------------------------
# Fused linear (+bias, optional ReLU), gridded over M, weight resident.
# bf16 operands are produced in the wrapper so the DMA moves half the bytes.
# ----------------------------------------------------------------------------
def _linear_kernel(a_ref, w_ref, b_ref, o_ref, *, relu):
    acc = jnp.dot(a_ref[...], w_ref[...],
                  preferred_element_type=jnp.float32) + b_ref[...]
    if relu:
        acc = jnp.maximum(acc, 0.0)
    o_ref[...] = acc


def pallas_linear(a, w_t, b, relu=False, mxu_bf16=False, block_m=256):
    """a: (M,K), w_t: (K,N) pre-transposed weight, b: (N,)."""
    M, K = a.shape
    N = w_t.shape[1]
    if mxu_bf16:                       # bf16 at the DMA level, f32 accumulation
        a = a.astype(jnp.bfloat16)
        w_t = w_t.astype(jnp.bfloat16)
    tm = min(block_m, M)
    Mp = pl.cdiv(M, tm) * tm
    if Mp != M:
        a = jnp.pad(a, ((0, Mp - M), (0, 0)))
    out = pl.pallas_call(
        functools.partial(_linear_kernel, relu=relu),
        grid=(Mp // tm,),
        in_specs=[pl.BlockSpec((tm, K), lambda i: (i, 0)),
                  pl.BlockSpec((K, N), lambda i: (0, 0)),      # resident
                  pl.BlockSpec((1, N), lambda i: (0, 0))],     # resident
        out_specs=pl.BlockSpec((tm, N), lambda i: (i, 0)),
        out_shape=jax.ShapeDtypeStruct((Mp, N), jnp.float32),
        compiler_params=pltpu.CompilerParams(
            dimension_semantics=("parallel",),
            vmem_limit_bytes=_VMEM_LIMIT),
    )(a, w_t, b.reshape(1, N).astype(jnp.float32))
    return out[:M] if Mp != M else out


# ----------------------------------------------------------------------------
# SequenceWise(BatchNorm1d): tiled two-pass (stats accumulate, then normalize).
# ----------------------------------------------------------------------------
def _bn_stats_kernel(x_ref, sum_ref, ssq_ref):
    @pl.when(pl.program_id(0) == 0)
    def _():
        sum_ref[...] = jnp.zeros_like(sum_ref)
        ssq_ref[...] = jnp.zeros_like(ssq_ref)
    x = x_ref[...]
    sum_ref[...] += jnp.sum(x, axis=0, keepdims=True)
    ssq_ref[...] += jnp.sum(x * x, axis=0, keepdims=True)


def _bn_norm_kernel(x_ref, scale_ref, shift_ref, o_ref):
    o_ref[...] = x_ref[...] * scale_ref[...] + shift_ref[...]


def seq_batchnorm1d(x, gamma, beta, eps=1e-5, block_rows=512):
    """SequenceWise(BatchNorm1d(affine)): stats over the flattened (T*N) rows."""
    T, N, C = x.shape
    M = T * N
    x2 = x.reshape(M, C)
    tm = min(block_rows, _round_up(M, 8))
    Mp = pl.cdiv(M, tm) * tm
    if Mp != M:
        x2 = jnp.pad(x2, ((0, Mp - M), (0, 0)))    # zero rows don't change sums
    nb = Mp // tm
    s, ss = pl.pallas_call(
        _bn_stats_kernel,
        grid=(nb,),
        in_specs=[pl.BlockSpec((tm, C), lambda i: (i, 0))],
        out_specs=(pl.BlockSpec((1, C), lambda i: (0, 0)),     # accumulators
                   pl.BlockSpec((1, C), lambda i: (0, 0))),
        out_shape=(jax.ShapeDtypeStruct((1, C), jnp.float32),
                   jax.ShapeDtypeStruct((1, C), jnp.float32)),
        compiler_params=pltpu.CompilerParams(
            dimension_semantics=("arbitrary",),
            vmem_limit_bytes=_VMEM_LIMIT),
    )(x2)
    mean = s / M                               # true row count (pads are zero)
    var = ss / M - mean * mean                 # biased var, as BatchNorm uses
    scale = gamma.reshape(1, C) * jax.lax.rsqrt(var + eps)
    shift = beta.reshape(1, C) - mean * scale
    out = pl.pallas_call(
        _bn_norm_kernel,
        grid=(nb,),
        in_specs=[pl.BlockSpec((tm, C), lambda i: (i, 0)),
                  pl.BlockSpec((1, C), lambda i: (0, 0)),
                  pl.BlockSpec((1, C), lambda i: (0, 0))],
        out_specs=pl.BlockSpec((tm, C), lambda i: (i, 0)),
        out_shape=jax.ShapeDtypeStruct((Mp, C), jnp.float32),
        compiler_params=pltpu.CompilerParams(
            dimension_semantics=("parallel",),
            vmem_limit_bytes=_VMEM_LIMIT),
    )(x2, scale, shift)
    return out[:M].reshape(T, N, C)


# ----------------------------------------------------------------------------
# Fused BiLSTM recurrence: one pallas_call, time axis blocked (TT steps per
# grid iteration), backward direction via reversed index_maps (no host flips),
# Whh resident as bf16, h/c carried in VMEM scratch.
# ----------------------------------------------------------------------------
def _bilstm_block_kernel(xpf_ref, xpb_ref, whf_ref, whb_ref,
                         of_ref, ob_ref, hf, cf, hb, cb, *, tt):
    H = hf.shape[1]

    @pl.when(pl.program_id(0) == 0)
    def _():
        hf[...] = jnp.zeros_like(hf)
        cf[...] = jnp.zeros_like(cf)
        hb[...] = jnp.zeros_like(hb)
        cb[...] = jnp.zeros_like(cb)

    whf = whf_ref[...]                          # (H, 4H) bf16, resident
    whb = whb_ref[...]

    def cell(xp_row, whh, h, c):
        gates = xp_row + jnp.dot(h.astype(jnp.bfloat16), whh,
                                 preferred_element_type=jnp.float32)
        i = jax.nn.sigmoid(gates[:, 0 * H:1 * H])
        f = jax.nn.sigmoid(gates[:, 1 * H:2 * H])
        g = jnp.tanh(gates[:, 2 * H:3 * H])
        o = jax.nn.sigmoid(gates[:, 3 * H:4 * H])
        c_new = f * c + i * g
        h_new = o * jnp.tanh(c_new)
        return h_new, c_new

    h_f, c_f = hf[...], cf[...]
    h_b, c_b = hb[...], cb[...]
    for j in range(tt):                         # static unroll over time block
        h_f, c_f = cell(xpf_ref[j], whf, h_f, c_f)
        of_ref[j] = h_f
        jb = tt - 1 - j                         # backward: reversed in-block
        h_b, c_b = cell(xpb_ref[jb], whb, h_b, c_b)
        ob_ref[jb] = h_b
    hf[...], cf[...] = h_f, c_f
    hb[...], cb[...] = h_b, c_b


def bilstm(x, p, max_time_block=32):
    """Bidirectional single-layer LSTM, x: (T, N, Din) time-major."""
    T, N, Din = x.shape
    H = p['whh_f'].shape[0]
    x2 = x.reshape(T * N, Din)

    # Fused fwd+bwd input projection: x read from HBM once, one wide matmul.
    wih_cat = jnp.concatenate([p['wih_f'], p['wih_b']], axis=1)    # (Din, 8H)
    b_cat = jnp.concatenate([p['bias'], p['bias']], axis=0)        # (8H,)
    xp = pallas_linear(x2, wih_cat, b_cat, mxu_bf16=True)          # (T*N, 8H)
    xp = xp.reshape(T, N, 8 * H)

    TT = _largest_divisor_leq(T, max_time_block)   # timesteps per grid step
    Tb = T // TT

    whh_f = p['whh_f'].astype(jnp.bfloat16)        # bf16 residency
    whh_b = p['whh_b'].astype(jnp.bfloat16)

    kernel = functools.partial(_bilstm_block_kernel, tt=TT)
    fwd_out_map = lambda t: (t, 0, 0)
    bwd_out_map = lambda t: (Tb - 1 - t, 0, 0)     # reversed time blocks
    common = dict(
        out_specs=(pl.BlockSpec((TT, N, H), fwd_out_map),
                   pl.BlockSpec((TT, N, H), bwd_out_map)),
        out_shape=(jax.ShapeDtypeStruct((T, N, H), jnp.float32),
                   jax.ShapeDtypeStruct((T, N, H), jnp.float32)),
        scratch_shapes=[pltpu.VMEM((N, H), jnp.float32),
                        pltpu.VMEM((N, H), jnp.float32),
                        pltpu.VMEM((N, H), jnp.float32),
                        pltpu.VMEM((N, H), jnp.float32)],
        compiler_params=pltpu.CompilerParams(
            dimension_semantics=("arbitrary",),
            vmem_limit_bytes=_VMEM_LIMIT),
    )

    if (4 * H) % 128 == 0:
        # Channel-blocked: each direction DMAs only its own 4H slice of xp,
        # backward via reversed time-block index_map (no host reversal copies).
        fwd_in_map = lambda t: (t, 0, 0)
        bwd_in_map = lambda t: (Tb - 1 - t, 0, 1)
        out_f, out_b = pl.pallas_call(
            kernel, grid=(Tb,),
            in_specs=[pl.BlockSpec((TT, N, 4 * H), fwd_in_map),
                      pl.BlockSpec((TT, N, 4 * H), bwd_in_map),
                      pl.BlockSpec((H, 4 * H), lambda t: (0, 0)),   # resident
                      pl.BlockSpec((H, 4 * H), lambda t: (0, 0))],  # resident
            **common)(xp, xp, whh_f, whh_b)
    else:
        # Fallback for 4H not lane-tile aligned: split channels in the wrapper,
        # still no time reversal on the host.
        xpf = xp[..., :4 * H]
        xpb = xp[..., 4 * H:]
        out_f, out_b = pl.pallas_call(
            kernel, grid=(Tb,),
            in_specs=[pl.BlockSpec((TT, N, 4 * H), lambda t: (t, 0, 0)),
                      pl.BlockSpec((TT, N, 4 * H),
                                   lambda t: (Tb - 1 - t, 0, 0)),
                      pl.BlockSpec((H, 4 * H), lambda t: (0, 0)),
                      pl.BlockSpec((H, 4 * H), lambda t: (0, 0))],
            **common)(xpf, xpb, whh_f, whh_b)

    # TODO(synk): a single lane-dense (T,N,2H) output is not expressible with
    # one out BlockSpec (fwd/bwd write different time blocks per grid step);
    # this concat is the remaining HBM copy.
    return jnp.concatenate([out_f, out_b], axis=-1)


# ----------------------------------------------------------------------------
# JAX glue: conv / batchnorm2d / maxpool (front-end, not the spec module).
# ----------------------------------------------------------------------------
def conv2d(x, w, b):
    """x: (B,C,H,W) NCHW; w: (O,C,3,3); stride 1, padding 1."""
    out = jax.lax.conv_general_dilated(
        x, w, window_strides=(1, 1), padding=((1, 1), (1, 1)),
        dimension_numbers=('NCHW', 'OIHW', 'NCHW'))
    return out + b.reshape(1, -1, 1, 1)


def batchnorm2d(x, eps=1e-5):
    mean = jnp.mean(x, axis=(0, 2, 3), keepdims=True)
    var = jnp.mean((x - mean) ** 2, axis=(0, 2, 3), keepdims=True)
    return (x - mean) / jnp.sqrt(var + eps)


def maxpool2d_2x1(x):
    B, C, H, W = x.shape
    return jnp.max(x.reshape(B, C, H // 2, 2, W), axis=3)


def encoder_forward(x, params):
    """x: (B, T, F) -> encoder output (T', B, 2*hidden)."""
    x = x[:, None, :, :]                          # unsqueeze(1): (B,1,T,F)
    x = conv2d(x, params['conv_w'], params['conv_b'])
    x = batchnorm2d(x)
    x = jnp.maximum(x, 0.0)                       # ReLU
    x = maxpool2d_2x1(x)                          # (B, C, T', F)
    x = jnp.transpose(x, (0, 2, 1, 3))            # (B, T', C, F)
    B, Tp, C, F = x.shape
    x = x.reshape(B, Tp, C * F)
    x = jnp.transpose(x, (1, 0, 2))               # (T', B, C*F)
    x = bilstm(x, params['enc_rnn0'])             # BatchRNN 0 (no batch_norm)
    x = seq_batchnorm1d(x, params['seq_bn']['gamma'],
                        params['seq_bn']['beta'])  # SequenceWise(BatchNorm1d)
    x = bilstm(x, params['enc_rnn1'])
    return x                                      # (T', B, 2*hidden)


# ----------------------------------------------------------------------------
# Fused greedy decoder: LSTM + attention + SequenceWise fc + argmax + embed,
# whole max_step loop in one pallas_call, weights/xenc resident (bf16).
# ----------------------------------------------------------------------------
def _decoder_step_kernel(xenc_ref, iy0_ref, embed_ref, wih_ref, whh_ref, b_ref,
                         w1_ref, b1_ref, w2_ref, b2_ref,
                         out_ref, attn_ref, h_sc, c_sc, iy_sc, sx_sc,
                         *, vocab, t_enc):
    Hd = whh_ref.shape[0]
    B = iy0_ref.shape[0]
    Vp = out_ref.shape[2]
    Tpp = xenc_ref.shape[1]
    s = pl.program_id(0)

    @pl.when(s == 0)
    def _():
        h_sc[...] = jnp.zeros_like(h_sc)
        c_sc[...] = jnp.zeros_like(c_sc)
        iy_sc[...] = iy0_ref[...]

    # --- decoder nn.LSTM on a (B, 1, D) tensor: B is the "time" axis, batch=1.
    # TODO(synk): verify against the reference decoder (batch rows are coupled
    # through this single carried hidden state, as in the previous version).
    # Input projection hoisted out of the serial loop: one batched MXU dot.
    xg = (jnp.dot(iy_sc[...].astype(jnp.bfloat16), wih_ref[...],
                  preferred_element_type=jnp.float32) + b_ref[...])  # (B, 4Hd)
    whh = whh_ref[...]                                               # bf16
    h = h_sc[...]
    c = c_sc[...]
    for t in range(B):                 # static unroll; only h@Whh is serial
        gates = xg[t:t + 1, :] + jnp.dot(h.astype(jnp.bfloat16), whh,
                                         preferred_element_type=jnp.float32)
        i = jax.nn.sigmoid(gates[:, 0 * Hd:1 * Hd])
        f = jax.nn.sigmoid(gates[:, 1 * Hd:2 * Hd])
        g = jnp.tanh(gates[:, 2 * Hd:3 * Hd])
        o = jax.nn.sigmoid(gates[:, 3 * Hd:4 * Hd])
        c = f * c + i * g
        h = o * jnp.tanh(c)
        sx_sc[pl.ds(t, 1), :] = h      # VMEM scratch row, no concat/vreg blowup
    h_sc[...] = h
    c_sc[...] = c
    sx = sx_sc[...]                    # (B, Hd)

    # --- dot-product GlobalAttention + softmax over (padded) encoder time ----
    # VPU multiply + reduce instead of B tiny (1xHd) MXU matvecs; padded time
    # lanes masked to -inf so softmax/context are exact.
    xenc = xenc_ref[...].astype(jnp.float32)            # (B, Tpp, Hd)
    scores = jnp.sum(sx[:, None, :] * xenc, axis=-1)    # (B, Tpp)
    lane_t = jax.lax.broadcasted_iota(jnp.int32, (B, Tpp), 1)
    scores = jnp.where(lane_t < t_enc, scores, -jnp.inf)
    m = jnp.max(scores, axis=-1, keepdims=True)
    e = jnp.exp(scores - m)
    attn = e * pl.reciprocal(jnp.sum(e, axis=-1, keepdims=True), approx=True)
    ctx = jnp.sum(attn[:, :, None] * xenc, axis=1)      # (B, Hd)

    # --- SequenceWise(Linear -> ReLU -> Linear), lane-dense padded vocab -----
    cat = jnp.concatenate([sx, ctx], axis=-1)           # (B, 2Hd) f32
    hfc = jnp.maximum(
        jnp.dot(cat.astype(jnp.bfloat16), w1_ref[...],
                preferred_element_type=jnp.float32) + b1_ref[...], 0.0)
    logits = (jnp.dot(hfc.astype(jnp.bfloat16), w2_ref[...],
                      preferred_element_type=jnp.float32) + b2_ref[...])

    out_ref[0] = logits                                 # (B, Vp), pads are 0
    attn_ref[0] = attn                                  # (B, Tpp), pads are 0

    # --- greedy argmax (padded lanes masked) + embedding via one-hot matmul --
    lane_v = jax.lax.broadcasted_iota(jnp.int32, (B, Vp), 1)
    masked = jnp.where(lane_v < vocab, logits, -jnp.inf)
    mx = jnp.max(masked, axis=-1, keepdims=True)
    tok = jnp.min(jnp.where(masked == mx, lane_v, Vp), axis=-1, keepdims=True)
    vlane = jax.lax.broadcasted_iota(jnp.int32, (B, vocab), 1)
    onehot = (vlane == tok).astype(jnp.bfloat16)        # exact 0/1
    emb = jnp.dot(onehot, embed_ref[...], preferred_element_type=jnp.float32)
    iy_sc[...] = jnp.concatenate([emb, ctx], axis=-1)   # next step's input


def las_forward(x, params, max_step=4):
    """x: (B,T,F). Returns (out (B,max_step,vocab), aligns (B,max_step,1,T'))."""
    enc = encoder_forward(x, params)              # (T', B, 2*hidden)
    xenc = jnp.transpose(enc, (1, 0, 2))          # (B, T', Hd)
    B, Tp, Hd = xenc.shape
    embed = params['embedding']
    vocab, E = embed.shape
    dec = params['dec_lstm']
    fc = params['fc']

    # initial decoder input: embed(<sos>=0) ++ xenc[:, 0, :]
    iy0 = jnp.concatenate(
        [jnp.broadcast_to(embed[0], (B, E)), xenc[:, 0, :]], axis=-1)

    # Lane-dense outputs: pad vocab AND encoder time to multiples of 128,
    # slice in the wrapper; padded lanes are masked in-kernel so results are
    # exact.  bf16 residency for xenc + all decoder weights (v7x 64 MiB VMEM);
    # gate math / softmax / accumulation stay f32 (v5e has no bf16 VPU/EUP).
    Vp = _round_up(vocab, 128)
    Tpp = _round_up(Tp, 128)
    w2p = jnp.pad(fc['w2'], ((0, 0), (0, Vp - vocab))).astype(jnp.bfloat16)
    b2p = jnp.pad(fc['b2'], (0, Vp - vocab)).reshape(1, Vp)
    xenc_p = jnp.pad(xenc, ((0, 0), (0, Tpp - Tp), (0, 0))).astype(jnp.bfloat16)

    out_p, attn_p = pl.pallas_call(
        functools.partial(_decoder_step_kernel, vocab=vocab, t_enc=Tp),
        grid=(max_step,),
        in_specs=[pl.BlockSpec((B, Tpp, Hd), lambda s: (0, 0, 0)),   # resident
                  pl.BlockSpec((B, E + Hd), lambda s: (0, 0)),
                  pl.BlockSpec((vocab, E), lambda s: (0, 0)),
                  pl.BlockSpec(dec['wih'].shape, lambda s: (0, 0)),
                  pl.BlockSpec(dec['whh'].shape, lambda s: (0, 0)),
                  pl.BlockSpec((1, 4 * Hd), lambda s: (0, 0)),
                  pl.BlockSpec(fc['w1'].shape, lambda s: (0, 0)),
                  pl.BlockSpec((1, fc['b1'].shape[-1]), lambda s: (0, 0)),
                  pl.BlockSpec((fc['w2'].shape[0], Vp), lambda s: (0, 0)),
                  pl.BlockSpec((1, Vp), lambda s: (0, 0))],
        out_specs=(pl.BlockSpec((1, B, Vp), lambda s: (s, 0, 0)),
                   pl.BlockSpec((1, B, Tpp), lambda s: (s, 0, 0))),
        out_shape=(jax.ShapeDtypeStruct((max_step, B, Vp), jnp.float32),
                   jax.ShapeDtypeStruct((max_step, B, Tpp), jnp.float32)),
        scratch_shapes=[pltpu.VMEM((1, Hd), jnp.float32),
                        pltpu.VMEM((1, Hd), jnp.float32),
                        pltpu.VMEM((B, E + Hd), jnp.float32),
                        pltpu.VMEM((B, Hd), jnp.float32)],
        compiler_params=pltpu.CompilerParams(
            dimension_semantics=("arbitrary",),
            vmem_limit_bytes=_VMEM_LIMIT),
    )(xenc_p, iy0, embed.astype(jnp.bfloat16),
      dec['wih'].astype(jnp.bfloat16), dec['whh'].astype(jnp.bfloat16),
      dec['bias'].reshape(1, -1),
      fc['w1'].astype(jnp.bfloat16), fc['b1'].reshape(1, -1), w2p, b2p)

    out = jnp.transpose(out_p[:, :, :vocab], (1, 0, 2))            # (B,ms,vocab)
    aligns = jnp.transpose(attn_p[:, :, :Tp], (1, 0, 2))[:, :, None, :]
    return out, aligns


# ----------------------------------------------------------------------------
# Deterministic synthetic parameters
# ----------------------------------------------------------------------------
def init_params(key, feat=16, out_ch=4, enc_hidden=32, embed_dim=16,
                vocab_size=12):
    ks = iter(jax.random.split(key, 32))

    def rnd(shape, scale=0.1):
        return (scale * jax.random.normal(next(ks), shape)).astype(jnp.float32)

    enc_in0 = out_ch * feat                       # rnn_input_size after conv
    enc_in1 = 2 * enc_hidden
    dec_hidden = 2 * enc_hidden                   # encoder.hidden_size
    dec_in = embed_dim + dec_hidden

    def enc_rnn(din):
        return {
            'wih_f': rnd((din, 4 * enc_hidden)),
            'whh_f': rnd((enc_hidden, 4 * enc_hidden)),
            'wih_b': rnd((din, 4 * enc_hidden)),
            'whh_b': rnd((enc_hidden, 4 * enc_hidden)),
            'bias': jnp.zeros((4 * enc_hidden,), jnp.float32),   # bias=False
        }

    return {
        'conv_w': rnd((out_ch, 1, 3, 3)),
        'conv_b': rnd((out_ch,)),
        'enc_rnn0': enc_rnn(enc_in0),
        'seq_bn': {'gamma': jnp.ones((enc_in1,), jnp.float32),
                   'beta': jnp.zeros((enc_in1,), jnp.float32)},
        'enc_rnn1': enc_rnn(enc_in1),
        'embedding': rnd((vocab_size, embed_dim)),
        'dec_lstm': {
            'wih': rnd((dec_in, 4 * dec_hidden)),
            'whh': rnd((dec_hidden, 4 * dec_hidden)),
            'bias': rnd((4 * dec_hidden,)),
        },
        'fc': {
            'w1': rnd((2 * dec_hidden, 512)),
            'b1': rnd((512,)),
            'w2': rnd((512, vocab_size)),
            'b2': rnd((vocab_size,)),
        },
    }


# ----------------------------------------------------------------------------
if __name__ == "__main__":
    key = jax.random.PRNGKey(0)
    k_param, k_x = jax.random.split(key)

    B, T, F = 2, 8, 16                            # batch, seq_len, feat_size
    params = init_params(k_param, feat=F)
    x = jax.random.normal(k_x, (B, T, F), dtype=jnp.float32)

    forward = jax.jit(functools.partial(las_forward, max_step=4))
    out, aligns = forward(x, params)
    jax.block_until_ready(out)
    jax.block_until_ready(aligns)

    assert out.shape == (B, 4, 12), out.shape
    assert aligns.shape == (B, 4, 1, T // 2), aligns.shape
    assert jnp.all(jnp.isfinite(out)) and jnp.all(jnp.isfinite(aligns))
    print("KERNEL_OK")
</pallas_src>

<mosaic_0001>
module attributes {stable_mosaic.version = 11 : i64} {
  func.func @_linear_kernel(%arg0: i32, %arg1: memref<8x64xbf16, #tpu.memory_space<vmem>>, %arg2: memref<64x256xbf16, #tpu.memory_space<vmem>>, %arg3: memref<1x256xf32, #tpu.memory_space<vmem>>, %arg4: memref<8x256xf32, #tpu.memory_space<vmem>>) attributes {dimension_semantics = [#tpu.dimension_semantics<parallel>], iteration_bounds = array<i64: 1>, scalar_prefetch = 0 : i64, scratch_operands = 0 : i64, tpu.core_type = #tpu.core_type<tc>, window_params = [{transform_indices = @transform_0, window_bounds = array<i64: 8, 64>}, {pipeline_mode = #tpu.pipeline_mode<synchronous>, transform_indices = @transform_1, window_bounds = array<i64: 64, 256>}, {pipeline_mode = #tpu.pipeline_mode<synchronous>, transform_indices = @transform_2, window_bounds = array<i64: 1, 256>}, {transform_indices = @transform_3, window_bounds = array<i64: 8, 256>}]} {
    %c0 = arith.constant 0 : index
    %c0_0 = arith.constant 0 : index
    %0 = vector.load %arg1[%c0, %c0_0] : memref<8x64xbf16, #tpu.memory_space<vmem>>, vector<8x64xbf16>
    %c0_1 = arith.constant 0 : index
    %c0_2 = arith.constant 0 : index
    %1 = vector.load %arg2[%c0_1, %c0_2] : memref<64x256xbf16, #tpu.memory_space<vmem>>, vector<64x256xbf16>
    %cst = arith.constant dense<0.000000e+00> : vector<8x256xf32>
    %2 = tpu.matmul %0, %1, %cst {dimension_numbers = #tpu.dot_dimension_numbers<[1], [0], [0], [1], [0, 0, 1, 1], [], []>} : vector<8x64xbf16>, vector<64x256xbf16>, vector<8x256xf32> -> vector<8x256xf32>
    %c0_3 = arith.constant 0 : index
    %c0_4 = arith.constant 0 : index
    %3 = vector.load %arg3[%c0_3, %c0_4] : memref<1x256xf32, #tpu.memory_space<vmem>>, vector<1x256xf32>
    %4 = vector.broadcast %3 : vector<1x256xf32> to vector<8x256xf32>
    %5 = arith.addf %2, %4 : vector<8x256xf32>
    %c0_5 = arith.constant 0 : index
    %c0_6 = arith.constant 0 : index
    %6 = vector.load %arg4[%c0_5, %c0_6] : memref<8x256xf32, #tpu.memory_space<vmem>>, vector<8x256xf32>
    tpu.vector_store %arg4[%c0_5, %c0_6], %5 {strides = array<i32>} : memref<8x256xf32, #tpu.memory_space<vmem>>, vector<8x256xf32>,
    return
  }
  func.func @transform_0(%arg0: i32) -> (i32, i32) {
    %c0_i32 = arith.constant 0 : i32
    %c0_i32_0 = arith.constant 0 : i32
    return %arg0, %c0_i32 : i32, i32
  }
  func.func @transform_1(%arg0: i32) -> (i32, i32) {
    %c0_i32 = arith.constant 0 : i32
    %c0_i32_0 = arith.constant 0 : i32
    %c0_i32_1 = arith.constant 0 : i32
    return %c0_i32, %c0_i32_0 : i32, i32
  }
  func.func @transform_2(%arg0: i32) -> (i32, i32) {
    %c0_i32 = arith.constant 0 : i32
    %c0_i32_0 = arith.constant 0 : i32
    %c0_i32_1 = arith.constant 0 : i32
    return %c0_i32, %c0_i32_0 : i32, i32
  }
  func.func @transform_3(%arg0: i32) -> (i32, i32) {
    %c0_i32 = arith.constant 0 : i32
    %c0_i32_0 = arith.constant 0 : i32
    return %arg0, %c0_i32 : i32, i32
  }
}

module attributes {stable_mosaic.version = 11 : i64} {
  func.func @_bilstm_block_kernel(%arg0: i32, %arg1: memref<4x2x128xf32, #tpu.memory_space<vmem>>, %arg2: memref<4x2x128xf32, #tpu.memory_space<vmem>>, %arg3: memref<32x128xbf16, #tpu.memory_space<vmem>>, %arg4: memref<32x128xbf16, #tpu.memory_space<vmem>>, %arg5: memref<4x2x32xf32, #tpu.memory_space<vmem>>, %arg6: memref<4x2x32xf32, #tpu.memory_space<vmem>>, %arg7: memref<2x32xf32, #tpu.memory_space<vmem>>, %arg8: memref<2x32xf32, #tpu.memory_space<vmem>>, %arg9: memref<2x32xf32, #tpu.memory_space<vmem>>, %arg10: memref<2x32xf32, #tpu.memory_space<vmem>>) attributes {dimension_semantics = [#tpu.dimension_semantics<arbitrary>], iteration_bounds = array<i64: 1>, scalar_prefetch = 0 : i64, scratch_operands = 4 : i64, tpu.core_type = #tpu.core_type<tc>, window_params = [{transform_indices = @transform_0, window_bounds = array<i64: 4, 2, 128>}, {transform_indices = @transform_1, window_bounds = array<i64: 4, 2, 128>}, {pipeline_mode = #tpu.pipeline_mode<synchronous>, transform_indices = @transform_2, window_bounds = array<i64: 32, 128>}, {pipeline_mode = #tpu.pipeline_mode<synchronous>, transform_indices = @transform_3, window_bounds = array<i64: 32, 128>}, {transform_indices = @transform_4, window_bounds = array<i64: 4, 2, 32>}, {transform_indices = @transform_5, window_bounds = array<i64: 4, 2, 32>}]} {
    %c0_i32 = arith.constant 0 : i32
    %0 = arith.cmpi eq, %arg0, %c0_i32 : i32
    %1 = arith.extui %0 : i1 to i32
    %c0_i32_0 = arith.constant 0 : i32
    %2 = arith.cmpi ne, %1, %c0_i32_0 : i32
    scf.if %2 {
      %cst_96 = arith.constant 0.000000e+00 : f32
      %277 = vector.broadcast %cst_96 : f32 to vector<2x32xf32>
      %c0_97 = arith.constant 0 : index
      %c0_98 = arith.constant 0 : index
      %278 = vector.load %arg7[%c0_97, %c0_98] : memref<2x32xf32, #tpu.memory_space<vmem>>, vector<2x32xf32>
      tpu.vector_store %arg7[%c0_97, %c0_98], %277 {strides = array<i32>} : memref<2x32xf32, #tpu.memory_space<vmem>>, vector<2x32xf32>,
      %cst_99 = arith.constant 0.000000e+00 : f32
      %279 = vector.broadcast %cst_99 : f32 to vector<2x32xf32>
      %c0_100 = arith.constant 0 : index
      %c0_101 = arith.constant 0 : index
      %280 = vector.load %arg8[%c0_100, %c0_101] : memref<2x32xf32, #tpu.memory_space<vmem>>, vector<2x32xf32>
      tpu.vector_store %arg8[%c0_100, %c0_101], %279 {strides = array<i32>} : memref<2x32xf32, #tpu.memory_space<vmem>>, vector<2x32xf32>,
      %cst_102 = arith.constant 0.000000e+00 : f32
      %281 = vector.broadcast %cst_102 : f32 to vector<2x32xf32>
      %c0_103 = arith.constant 0 : index
      %c0_104 = arith.constant 0 : index
      %282 = vector.load %arg9[%c0_103, %c0_104] : memref<2x32xf32, #tpu.memory_space<vmem>>, vector<2x32xf32>
      tpu.vector_store %arg9[%c0_103, %c0_104], %281 {strides = array<i32>} : memref<2x32xf32, #tpu.memory_space<vmem>>, vector<2x32xf32>,
      %cst_105 = arith.constant 0.000000e+00 : f32
      %283 = vector.broadcast %cst_105 : f32 to vector<2x32xf32>
      %c0_106 = arith.constant 0 : index
      %c0_107 = arith.constant 0 : index
      %284 = vector.load %arg10[%c0_106, %c0_107] : memref<2x32xf32, #tpu.memory_space<vmem>>, vector<2x32xf32>
      tpu.vector_store %arg10[%c0_106, %c0_107], %283 {strides = array<i32>} : memref<2x32xf32, #tpu.memory_space<vmem>>, vector<2x32xf32>,
    } else {
    }
    %c0 = arith.constant 0 : index
    %c0_1 = arith.constant 0 : index
    %3 = vector.load %arg3[%c0, %c0_1] : memref<32x128xbf16, #tpu.memory_space<vmem>>, vector<32x128xbf16>
    %c0_2 = arith.constant 0 : index
    %c0_3 = arith.constant 0 : index
    %4 = vector.load %arg4[%c0_2, %c0_3] : memref<32x128xbf16, #tpu.memory_space<vmem>>, vector<32x128xbf16>
    %c0_4 = arith.constant 0 : index
    %c0_5 = arith.constant 0 : index
    %5 = vector.load %arg7[%c0_4, %c0_5] : memref<2x32xf32, #tpu.memory_space<vmem>>, vector<2x32xf32>
    %c0_6 = arith.constant 0 : index
    %c0_7 = arith.constant 0 : index
    %6 = vector.load %arg8[%c0_6, %c0_7] : memref<2x32xf32, #tpu.memory_space<vmem>>, vector<2x32xf32>
    %c0_8 = arith.constant 0 : index
    %c0_9 = arith.constant 0 : index
    %7 = vector.load %arg9[%c0_8, %c0_9] : memref<2x32xf32, #tpu.memory_space<vmem>>, vector<2x32xf32>
    %c0_10 = arith.constant 0 : index
    %c0_11 = arith.constant 0 : index
    %8 = vector.load %arg10[%c0_10, %c0_11] : memref<2x32xf32, #tpu.memory_space<vmem>>, vector<2x32xf32>
    %c0_12 = arith.constant 0 : index
    %c0_13 = arith.constant 0 : index
    %c0_14 = arith.constant 0 : index
    %9 = vector.load %arg1[%c0_12, %c0_13, %c0_14] : memref<4x2x128xf32, #tpu.memory_space<vmem>>, vector<1x2x128xf32>
    %10 = vector.shape_cast %9 : vector<1x2x128xf32> to vector<2x128xf32>
    %11 = arith.truncf %5 : vector<2x32xf32> to vector<2x32xbf16>
    %cst = arith.constant dense<0.000000e+00> : vector<2x128xf32>
    %12 = tpu.matmul %11, %3, %cst {dimension_numbers = #tpu.dot_dimension_numbers<[1], [0], [0], [1], [0, 0, 1, 1], [], []>} : vector<2x32xbf16>, vector<32x128xbf16>, vector<2x128xf32> -> vector<2x128xf32>
    %13 = arith.addf %10, %12 : vector<2x128xf32>
    %14 = vector.extract_strided_slice %13 {offsets = [0, 0], sizes = [2, 32], strides = [1, 1]} : vector<2x128xf32> to vector<2x32xf32>
    %15 = arith.negf %14 : vector<2x32xf32>
    %16 = math.exp %15 : vector<2x32xf32>
    %cst_15 = arith.constant 1.000000e+00 : f32
    %17 = vector.broadcast %cst_15 : f32 to vector<2x32xf32>
    %18 = arith.addf %17, %16 : vector<2x32xf32>
    %19 = arith.divf %17, %18 : vector<2x32xf32>
    %20 = vector.extract_strided_slice %13 {offsets = [0, 32], sizes = [2, 32], strides = [1, 1]} : vector<2x128xf32> to vector<2x32xf32>
    %21 = arith.negf %20 : vector<2x32xf32>
    %22 = math.exp %21 : vector<2x32xf32>
    %cst_16 = arith.constant 1.000000e+00 : f32
    %23 = vector.broadcast %cst_16 : f32 to vector<2x32xf32>
    %24 = arith.addf %23, %22 : vector<2x32xf32>
    %25 = arith.divf %23, %24 : vector<2x32xf32>
    %26 = vector.extract_strided_slice %13 {offsets = [0, 64], sizes = [2, 32], strides = [1, 1]} : vector<2x128xf32> to vector<2x32xf32>
    %27 = math.tanh %26 : vector<2x32xf32>
    %28 = vector.extract_strided_slice %13 {offsets = [0, 96], sizes = [2, 32], strides = [1, 1]} : vector<2x128xf32> to vector<2x32xf32>
    %29 = arith.negf %28 : vector<2x32xf32>
    %30 = math.exp %29 : vector<2x32xf32>
    %cst_17 = arith.constant 1.000000e+00 : f32
    %31 = vector.broadcast %cst_17 : f32 to vector<2x32xf32>
    %32 = arith.addf %31, %30 : vector<2x32xf32>
    %33 = arith.divf %31, %32 : vector<2x32xf32>
    %34 = arith.mulf %25, %6 : vector<2x32xf32>
    %35 = arith.mulf %19, %27 : vector<2x32xf32>
    %36 = arith.addf %34, %35 : vector<2x32xf32>
    %37 = math.tanh %36 : vector<2x32xf32>
    %38 = arith.mulf %33, %37 : vector<2x32xf32>
    %c0_18 = arith.constant 0 : index
    %c0_19 = arith.constant 0 : index
    %c0_20 = arith.constant 0 : index
    %39 = vector.load %arg5[%c0_18, %c0_19, %c0_20] : memref<4x2x32xf32, #tpu.memory_space<vmem>>, vector<1x2x32xf32>
    %40 = vector.shape_cast %39 : vector<1x2x32xf32> to vector<2x32xf32>
    %41 = vector.shape_cast %38 : vector<2x32xf32> to vector<1x2x32xf32>
    tpu.vector_store %arg5[%c0_18, %c0_19, %c0_20], %41 {strides = array<i32>} : memref<4x2x32xf32, #tpu.memory_space<vmem>>, vector<1x2x32xf32>,
    %c3 = arith.constant 3 : index
    %c0_21 = arith.constant 0 : index
    %c0_22 = arith.constant 0 : index
    %42 = vector.load %arg2[%c3, %c0_21, %c0_22] : memref<4x2x128xf32, #tpu.memory_space<vmem>>, vector<1x2x128xf32>
    %43 = vector.shape_cast %42 : vector<1x2x128xf32> to vector<2x128xf32>
    %44 = arith.truncf %7 : vector<2x32xf32> to vector<2x32xbf16>
    %cst_23 = arith.constant dense<0.000000e+00> : vector<2x128xf32>
    %45 = tpu.matmul %44, %4, %cst_23 {dimension_numbers = #tpu.dot_dimension_numbers<[1], [0], [0], [1], [0, 0, 1, 1], [], []>} : vector<2x32xbf16>, vector<32x128xbf16>, vector<2x128xf32> -> vector<2x128xf32>
    %46 = arith.addf %43, %45 : vector<2x128xf32>
    %47 = vector.extract_strided_slice %46 {offsets = [0, 0], sizes = [2, 32], strides = [1, 1]} : vector<2x128xf32> to vector<2x32xf32>
    %48 = arith.negf %47 : vector<2x32xf32>
    %49 = math.exp %48 : vector<2x32xf32>
    %cst_24 = arith.constant 1.000000e+00 : f32
    %50 = vector.broadcast %cst_24 : f32 to vector<2x32xf32>
    %51 = arith.addf %50, %49 : vector<2x32xf32>
    %52 = arith.divf %50, %51 : vector<2x32xf32>
    %53 = vector.extract_strided_slice %46 {offsets = [0, 32], sizes = [2, 32], strides = [1, 1]} : vector<2x128xf32> to vector<2x32xf32>
    %54 = arith.negf %53 : vector<2x32xf32>
    %55 = math.exp %54 : vector<2x32xf32>
    %cst_25 = arith.constant 1.000000e+00 : f32
    %56 = vector.broadcast %cst_25 : f32 to vector<2x32xf32>
    %57 = arith.addf %56, %55 : vector<2x32xf32>
    %58 = arith.divf %56, %57 : vector<2x32xf32>
    %59 = vector.extract_strided_slice %46 {offsets = [0, 64], sizes = [2, 32], strides = [1, 1]} : vector<2x128xf32> to vector<2x32xf32>
    %60 = math.tanh %59 : vector<2x32xf32>
    %61 = vector.extract_strided_slice %46 {offsets = [0, 96], sizes = [2, 32], strides = [1, 1]} : vector<2x128xf32> to vector<2x32xf32>
    %62 = arith.negf %61 : vector<2x32xf32>
    %63 = math.exp %62 : vector<2x32xf32>
    %cst_26 = arith.constant 1.000000e+00 : f32
    %64 = vector.broadcast %cst_26 : f32 to vector<2x32xf32>
    %65 = arith.addf %64, %63 : vector<2x32xf32>
    %66 = arith.divf %64, %65 : vector<2x32xf32>
    %67 = arith.mulf %58, %8 : vector<2x32xf32>
    %68 = arith.mulf %52, %60 : vector<2x32xf32>
    %69 = arith.addf %67, %68 : vector<2x32xf32>
    %70 = math.tanh %69 : vector<2x32xf32>
    %71 = arith.mulf %66, %70 : vector<2x32xf32>
    %c3_27 = arith.constant 3 : index
    %c0_28 = arith.constant 0 : index
    %c0_29 = arith.constant 0 : index
    %72 = vector.load %arg6[%c3_27, %c0_28, %c0_29] : memref<4x2x32xf32, #tpu.memory_space<vmem>>, vector<1x2x32xf32>
    %73 = vector.shape_cast %72 : vector<1x2x32xf32> to vector<2x32xf32>
    %74 = vector.shape_cast %71 : vector<2x32xf32> to vector<1x2x32xf32>
    tpu.vector_store %arg6[%c3_27, %c0_28, %c0_29], %74 {strides = array<i32>} : memref<4x2x32xf32, #tpu.memory_space<vmem>>, vector<1x2x32xf32>,
    %c1 = arith.constant 1 : index
    %c0_30 = arith.constant 0 : index
    %c0_31 = arith.constant 0 : index
    %75 = vector.load %arg1[%c1, %c0_30, %c0_31] : memref<4x2x128xf32, #tpu.memory_space<vmem>>, vector<1x2x128xf32>
    %76 = vector.shape_cast %75 : vector<1x2x128xf32> to vector<2x128xf32>
    %77 = arith.truncf %38 : vector<2x32xf32> to vector<2x32xbf16>
    %cst_32 = arith.constant dense<0.000000e+00> : vector<2x128xf32>
    %78 = tpu.matmul %77, %3, %cst_32 {dimension_numbers = #tpu.dot_dimension_numbers<[1], [0], [0], [1], [0, 0, 1, 1], [], []>} : vector<2x32xbf16>, vector<32x128xbf16>, vector<2x128xf32> -> vector<2x128xf32>
    %79 = arith.addf %76, %78 : vector<2x128xf32>
    %80 = vector.extract_strided_slice %79 {offsets = [0, 0], sizes = [2, 32], strides = [1, 1]} : vector<2x128xf32> to vector<2x32xf32>
    %81 = arith.negf %80 : vector<2x32xf32>
    %82 = math.exp %81 : vector<2x32xf32>
    %cst_33 = arith.constant 1.000000e+00 : f32
    %83 = vector.broadcast %cst_33 : f32 to vector<2x32xf32>
    %84 = arith.addf %83, %82 : vector<2x32xf32>
    %85 = arith.divf %83, %84 : vector<2x32xf32>
    %86 = vector.extract_strided_slice %79 {offsets = [0, 32], sizes = [2, 32], strides = [1, 1]} : vector<2x128xf32> to vector<2x32xf32>
    %87 = arith.negf %86 : vector<2x32xf32>
    %88 = math.exp %87 : vector<2x32xf32>
    %cst_34 = arith.constant 1.000000e+00 : f32
    %89 = vector.broadcast %cst_34 : f32 to vector<2x32xf32>
    %90 = arith.addf %89, %88 : vector<2x32xf32>
    %91 = arith.divf %89, %90 : vector<2x32xf32>
    %92 = vector.extract_strided_slice %79 {offsets = [0, 64], sizes = [2, 32], strides = [1, 1]} : vector<2x128xf32> to vector<2x32xf32>
    %93 = math.tanh %92 : vector<2x32xf32>
    %94 = vector.extract_strided_slice %79 {offsets = [0, 96], sizes = [2, 32], strides = [1, 1]} : vector<2x128xf32> to vector<2x32xf32>
    %95 = arith.negf %94 : vector<2x32xf32>
    %96 = math.exp %95 : vector<2x32xf32>
    %cst_35 = arith.constant 1.000000e+00 : f32
    %97 = vector.broadcast %cst_35 : f32 to vector<2x32xf32>
    %98 = arith.addf %97, %96 : vector<2x32xf32>
    %99 = arith.divf %97, %98 : vector<2x32xf32>
    %100 = arith.mulf %91, %36 : vector<2x32xf32>
    %101 = arith.mulf %85, %93 : vector<2x32xf32>
    %102 = arith.addf %100, %101 : vector<2x32xf32>
    %103 = math.tanh %102 : vector<2x32xf32>
    %104 = arith.mulf %99, %103 : vector<2x32xf32>
    %c1_36 = arith.constant 1 : index
    %c0_37 = arith.constant 0 : index
    %c0_38 = arith.constant 0 : index
    %105 = vector.load %arg5[%c1_36, %c0_37, %c0_38] : memref<4x2x32xf32, #tpu.memory_space<vmem>>, vector<1x2x32xf32>
    %106 = vector.shape_cast %105 : vector<1x2x32xf32> to vector<2x32xf32>
    %107 = vector.shape_cast %104 : vector<2x32xf32> to vector<1x2x32xf32>
    tpu.vector_store %arg5[%c1_36, %c0_37, %c0_38], %107 {strides = array<i32>} : memref<4x2x32xf32, #tpu.memory_space<vmem>>, vector<1x2x32xf32>,
    %c2 = arith.constant 2 : index
    %c0_39 = arith.constant 0 : index
    %c0_40 = arith.constant 0 : index
    %108 = vector.load %arg2[%c2, %c0_39, %c0_40] : memref<4x2x128xf32, #tpu.memory_space<vmem>>, vector<1x2x128xf32>
    %109 = vector.shape_cast %108 : vector<1x2x128xf32> to vector<2x128xf32>
    %110 = arith.truncf %71 : vector<2x32xf32> to vector<2x32xbf16>
    %cst_41 = arith.constant dense<0.000000e+00> : vector<2x128xf32>
    %111 = tpu.matmul %110, %4, %cst_41 {dimension_numbers = #tpu.dot_dimension_numbers<[1], [0], [0], [1], [0, 0, 1, 1], [], []>} : vector<2x32xbf16>, vector<32x128xbf16>, vector<2x128xf32> -> vector<2x128xf32>
    %112 = arith.addf %109, %111 : vector<2x128xf32>
    %113 = vector.extract_strided_slice %112 {offsets = [0, 0], sizes = [2, 32], strides = [1, 1]} : vector<2x128xf32> to vector<2x32xf32>
    %114 = arith.negf %113 : vector<2x32xf32>
    %115 = math.exp %114 : vector<2x32xf32>
    %cst_42 = arith.constant 1.000000e+00 : f32
    %116 = vector.broadcast %cst_42 : f32 to vector<2x32xf32>
    %117 = arith.addf %116, %115 : vector<2x32xf32>
    %118 = arith.divf %116, %117 : vector<2x32xf32>
    %119 = vector.extract_strided_slice %112 {offsets = [0, 32], sizes = [2, 32], strides = [1, 1]} : vector<2x128xf32> to vector<2x32xf32>
    %120 = arith.negf %119 : vector<2x32xf32>
    %121 = math.exp %120 : vector<2x32xf32>
    %cst_43 = arith.constant 1.000000e+00 : f32
    %122 = vector.broadcast %cst_43 : f32 to vector<2x32xf32>
    %123 = arith.addf %122, %121 : vector<2x32xf32>
    %124 = arith.divf %122, %123 : vector<2x32xf32>
    %125 = vector.extract_strided_slice %112 {offsets = [0, 64], sizes = [2, 32], strides = [1, 1]} : vector<2x128xf32> to vector<2x32xf32>
    %126 = math.tanh %125 : vector<2x32xf32>
    %127 = vector.extract_strided_slice %112 {offsets = [0, 96], sizes = [2, 32], strides = [1, 1]} : vector<2x128xf32> to vector<2x32xf32>
    %128 = arith.negf %127 : vector<2x32xf32>
    %129 = math.exp %128 : vector<2x32xf32>
    %cst_44 = arith.constant 1.000000e+00 : f32
    %130 = vector.broadcast %cst_44 : f32 to vector<2x32xf32>
    %131 = arith.addf %130, %129 : vector<2x32xf32>
    %132 = arith.divf %130, %131 : vector<2x32xf32>
    %133 = arith.mulf %124, %69 : vector<2x32xf32>
    %134 = arith.mulf %118, %126 : vector<2x32xf32>
    %135 = arith.addf %133, %134 : vector<2x32xf32>
    %136 = math.tanh %135 : vector<2x32xf32>
    %137 = arith.mulf %132, %136 : vector<2x32xf32>
    %c2_45 = arith.constant 2 : index
    %c0_46 = arith.constant 0 : index
    %c0_47 = arith.constant 0 : index
    %138 = vector.load %arg6[%c2_45, %c0_46, %c0_47] : memref<4x2x32xf32, #tpu.memory_space<vmem>>, vector<1x2x32xf32>
    %139 = vector.shape_cast %138 : vector<1x2x32xf32> to vector<2x32xf32>
    %140 = vector.shape_cast %137 : vector<2x32xf32> to vector<1x2x32xf32>
    tpu.vector_store %arg6[%c2_45, %c0_46, %c0_47], %140 {strides = array<i32>} : memref<4x2x32xf32, #tpu.memory_space<vmem>>, vector<1x2x32xf32>,
    %c2_48 = arith.constant 2 : index
    %c0_49 = arith.constant 0 : index
    %c0_50 = arith.constant 0 : index
    %141 = vector.load %arg1[%c2_48, %c0_49, %c0_50] : memref<4x2x128xf32, #tpu.memory_space<vmem>>, vector<1x2x128xf32>
    %142 = vector.shape_cast %141 : vector<1x2x128xf32> to vector<2x128xf32>
    %143 = arith.truncf %104 : vector<2x32xf32> to vector<2x32xbf16>
    %cst_51 = arith.constant dense<0.000000e+00> : vector<2x128xf32>
    %144 = tpu.matmul %143, %3, %cst_51 {dimension_numbers = #tpu.dot_dimension_numbers<[1], [0], [0], [1], [0, 0, 1, 1], [], []>} : vector<2x32xbf16>, vector<32x128xbf16>, vector<2x128xf32> -> vector<2x128xf32>
    %145 = arith.addf %142, %144 : vector<2x128xf32>
    %146 = vector.extract_strided_slice %145 {offsets = [0, 0], sizes = [2, 32], strides = [1, 1]} : vector<2x128xf32> to vector<2x32xf32>
    %147 = arith.negf %146 : vector<2x32xf32>
    %148 = math.exp %147 : vector<2x32xf32>
    %cst_52 = arith.constant 1.000000e+00 : f32
    %149 = vector.broadcast %cst_52 : f32 to vector<2x32xf32>
    %150 = arith.addf %149, %148 : vector<2x32xf32>
    %151 = arith.divf %149, %150 : vector<2x32xf32>
    %152 = vector.extract_strided_slice %145 {offsets = [0, 32], sizes = [2, 32], strides = [1, 1]} : vector<2x128xf32> to vector<2x32xf32>
    %153 = arith.negf %152 : vector<2x32xf32>
    %154 = math.exp %153 : vector<2x32xf32>
    %cst_53 = arith.constant 1.000000e+00 : f32
    %155 = vector.broadcast %cst_53 : f32 to vector<2x32xf32>
    %156 = arith.addf %155, %154 : vector<2x32xf32>
    %157 = arith.divf %155, %156 : vector<2x32xf32>
    %158 = vector.extract_strided_slice %145 {offsets = [0, 64], sizes = [2, 32], strides = [1, 1]} : vector<2x128xf32> to vector<2x32xf32>
    %159 = math.tanh %158 : vector<2x32xf32>
    %160 = vector.extract_strided_slice %145 {offsets = [0, 96], sizes = [2, 32], strides = [1, 1]} : vector<2x128xf32> to vector<2x32xf32>
    %161 = arith.negf %160 : vector<2x32xf32>
    %162 = math.exp %161 : vector<2x32xf32>
    %cst_54 = arith.constant 1.000000e+00 : f32
    %163 = vector.broadcast %cst_54 : f32 to vector<2x32xf32>
    %164 = arith.addf %163, %162 : vector<2x32xf32>
    %165 = arith.divf %163, %164 : vector<2x32xf32>
    %166 = arith.mulf %157, %102 : vector<2x32xf32>
    %167 = arith.mulf %151, %159 : vector<2x32xf32>
    %168 = arith.addf %166, %167 : vector<2x32xf32>
    %169 = math.tanh %168 : vector<2x32xf32>
    %170 = arith.mulf %165, %169 : vector<2x32xf32>
    %c2_55 = arith.constant 2 : index
    %c0_56 = arith.constant 0 : index
    %c0_57 = arith.constant 0 : index
    %171 = vector.load %arg5[%c2_55, %c0_56, %c0_57] : memref<4x2x32xf32, #tpu.memory_space<vmem>>, vector<1x2x32xf32>
    %172 = vector.shape_cast %171 : vector<1x2x32xf32> to vector<2x32xf32>
    %173 = vector.shape_cast %170 : vector<2x32xf32> to vector<1x2x32xf32>
    tpu.vector_store %arg5[%c2_55, %c0_56, %c0_57], %173 {strides = array<i32>} : memref<4x2x32xf32, #tpu.memory_space<vmem>>, vector<1x2x32xf32>,
    %c1_58 = arith.constant 1 : index
    %c0_59 = arith.constant 0 : index
    %c0_60 = arith.constant 0 : index
    %174 = vector.load %arg2[%c1_58, %c0_59, %c0_60] : memref<4x2x128xf32, #tpu.memory_space<vmem>>, vector<1x2x128xf32>
    %175 = vector.shape_cast %174 : vector<1x2x128xf32> to vector<2x128xf32>
    %176 = arith.truncf %137 : vector<2x32xf32> to vector<2x32xbf16>
    %cst_61 = arith.constant dense<0.000000e+00> : vector<2x128xf32>
    %177 = tpu.matmul %176, %4, %cst_61 {dimension_numbers = #tpu.dot_dimension_numbers<[1], [0], [0], [1], [0, 0, 1, 1], [], []>} : vector<2x32xbf16>, vector<32x128xbf16>, vector<2x128xf32> -> vector<2x128xf32>
    %178 = arith.addf %175, %177 : vector<2x128xf32>
    %179 = vector.extract_strided_slice %178 {offsets = [0, 0], sizes = [2, 32], strides = [1, 1]} : vector<2x128xf32> to vector<2x32xf32>
    %180 = arith.negf %179 : vector<2x32xf32>
    %181 = math.exp %180 : vector<2x32xf32>
    %cst_62 = arith.constant 1.000000e+00 : f32
    %182 = vector.broadcast %cst_62 : f32 to vector<2x32xf32>
    %183 = arith.addf %182, %181 : vector<2x32xf32>
    %184 = arith.divf %182, %183 : vector<2x32xf32>
    %185 = vector.extract_strided_slice %178 {offsets = [0, 32], sizes = [2, 32], strides = [1, 1]} : vector<2x128xf32> to vector<2x32xf32>
    %186 = arith.negf %185 : vector<2x32xf32>
    %187 = math.exp %186 : vector<2x32xf32>
    %cst_63 = arith.constant 1.000000e+00 : f32
    %188 = vector.broadcast %cst_63 : f32 to vector<2x32xf32>
    %189 = arith.addf %188, %187 : vector<2x32xf32>
    %190 = arith.divf %188, %189 : vector<2x32xf32>
    %191 = vector.extract_strided_slice %178 {offsets = [0, 64], sizes = [2, 32], strides = [1, 1]} : vector<2x128xf32> to vector<2x32xf32>
    %192 = math.tanh %191 : vector<2x32xf32>
    %193 = vector.extract_strided_slice %178 {offsets = [0, 96], sizes = [2, 32], strides = [1, 1]} : vector<2x128xf32> to vector<2x32xf32>
    %194 = arith.negf %193 : vector<2x32xf32>
    %195 = math.exp %194 : vector<2x32xf32>
    %cst_64 = arith.constant 1.000000e+00 : f32
    %196 = vector.broadcast %cst_64 : f32 to vector<2x32xf32>
    %197 = arith.addf %196, %195 : vector<2x32xf32>
    %198 = arith.divf %196, %197 : vector<2x32xf32>
    %199 = arith.mulf %190, %135 : vector<2x32xf32>
    %200 = arith.mulf %184, %192 : vector<2x32xf32>
    %201 = arith.addf %199, %200 : vector<2x32xf32>
    %202 = math.tanh %201 : vector<2x32xf32>
    %203 = arith.mulf %198, %202 : vector<2x32xf32>
    %c1_65 = arith.constant 1 : index
    %c0_66 = arith.constant 0 : index
    %c0_67 = arith.constant 0 : index
    %204 = vector.load %arg6[%c1_65, %c0_66, %c0_67] : memref<4x2x32xf32, #tpu.memory_space<vmem>>, vector<1x2x32xf32>
    %205 = vector.shape_cast %204 : vector<1x2x32xf32> to vector<2x32xf32>
    %206 = vector.shape_cast %203 : vector<2x32xf32> to vector<1x2x32xf32>
    tpu.vector_store %arg6[%c1_65, %c0_66, %c0_67], %206 {strides = array<i32>} : memref<4x2x32xf32, #tpu.memory_space<vmem>>, vector<1x2x32xf32>,
    %c3_68 = arith.constant 3 : index
    %c0_69 = arith.constant 0 : index
    %c0_70 = arith.constant 0 : index
    %207 = vector.load %arg1[%c3_68, %c0_69, %c0_70] : memref<4x2x128xf32, #tpu.memory_space<vmem>>, vector<1x2x128xf32>
    %208 = vector.shape_cast %207 : vector<1x2x128xf32> to vector<2x128xf32>
    %209 = arith.truncf %170 : vector<2x32xf32> to vector<2x32xbf16>
    %cst_71 = arith.constant dense<0.000000e+00> : vector<2x128xf32>
    %210 = tpu.matmul %209, %3, %cst_71 {dimension_numbers = #tpu.dot_dimension_numbers<[1], [0], [0], [1], [0, 0, 1, 1], [], []>} : vector<2x32xbf16>, vector<32x128xbf16>, vector<2x128xf32> -> vector<2x128xf32>
    %211 = arith.addf %208, %210 : vector<2x128xf32>
    %212 = vector.extract_strided_slice %211 {offsets = [0, 0], sizes = [2, 32], strides = [1, 1]} : vector<2x128xf32> to vector<2x32xf32>
    %213 = arith.negf %212 : vector<2x32xf32>
    %214 = math.exp %213 : vector<2x32xf32>
    %cst_72 = arith.constant 1.000000e+00 : f32
    %215 = vector.broadcast %cst_72 : f32 to vector<2x32xf32>
    %216 = arith.addf %215, %214 : vector<2x32xf32>
    %217 = arith.divf %215, %216 : vector<2x32xf32>
    %218 = vector.extract_strided_slice %211 {offsets = [0, 32], sizes = [2, 32], strides = [1, 1]} : vector<2x128xf32> to vector<2x32xf32>
    %219 = arith.negf %218 : vector<2x32xf32>
    %220 = math.exp %219 : vector<2x32xf32>
    %cst_73 = arith.constant 1.000000e+00 : f32
    %221 = vector.broadcast %cst_73 : f32 to vector<2x32xf32>
    %222 = arith.addf %221, %220 : vector<2x32xf32>
    %223 = arith.divf %221, %222 : vector<2x32xf32>
    %224 = vector.extract_strided_slice %211 {offsets = [0, 64], sizes = [2, 32], strides = [1, 1]} : vector<2x128xf32> to vector<2x32xf32>
    %225 = math.tanh %224 : vector<2x32xf32>
    %226 = vector.extract_strided_slice %211 {offsets = [0, 96], sizes = [2, 32], strides = [1, 1]} : vector<2x128xf32> to vector<2x32xf32>
    %227 = arith.negf %226 : vector<2x32xf32>
    %228 = math.exp %227 : vector<2x32xf32>
    %cst_74 = arith.constant 1.000000e+00 : f32
    %229 = vector.broadcast %cst_74 : f32 to vector<2x32xf32>
    %230 = arith.addf %229, %228 : vector<2x32xf32>
    %231 = arith.divf %229, %230 : vector<2x32xf32>
    %232 = arith.mulf %223, %168 : vector<2x32xf32>
    %233 = arith.mulf %217, %225 : vector<2x32xf32>
    %234 = arith.addf %232, %233 : vector<2x32xf32>
    %235 = math.tanh %234 : vector<2x32xf32>
    %236 = arith.mulf %231, %235 : vector<2x32xf32>
    %c3_75 = arith.constant 3 : index
    %c0_76 = arith.constant 0 : index
    %c0_77 = arith.constant 0 : index
    %237 = vector.load %arg5[%c3_75, %c0_76, %c0_77] : memref<4x2x32xf32, #tpu.memory_space<vmem>>, vector<1x2x32xf32>
    %238 = vector.shape_cast %237 : vector<1x2x32xf32> to vector<2x32xf32>
    %239 = vector.shape_cast %236 : vector<2x32xf32> to vector<1x2x32xf32>
    tpu.vector_store %arg5[%c3_75, %c0_76, %c0_77], %239 {strides = array<i32>} : memref<4x2x32xf32, #tpu.memory_space<vmem>>, vector<1x2x32xf32>,
    %c0_78 = arith.constant 0 : index
    %c0_79 = arith.constant 0 : index
    %c0_80 = arith.constant 0 : index
    %240 = vector.load %arg2[%c0_78, %c0_79, %c0_80] : memref<4x2x128xf32, #tpu.memory_space<vmem>>, vector<1x2x128xf32>
    %241 = vector.shape_cast %240 : vector<1x2x128xf32> to vector<2x128xf32>
    %242 = arith.truncf %203 : vector<2x32xf32> to vector<2x32xbf16>
    %cst_81 = arith.constant dense<0.000000e+00> : vector<2x128xf32>
    %243 = tpu.matmul %242, %4, %cst_81 {dimension_numbers = #tpu.dot_dimension_numbers<[1], [0], [0], [1], [0, 0, 1, 1], [], []>} : vector<2x32xbf16>, vector<32x128xbf16>, vector<2x128xf32> -> vector<2x128xf32>
    %244 = arith.addf %241, %243 : vector<2x128xf32>
    %245 = vector.extract_strided_slice %244 {offsets = [0, 0], sizes = [2, 32], strides = [1, 1]} : vector<2x128xf32> to vector<2x32xf32>
    %246 = arith.negf %245 : vector<2x32xf32>
    %247 = math.exp %246 : vector<2x32xf32>
    %cst_82 = arith.constant 1.000000e+00 : f32
    %248 = vector.broadcast %cst_82 : f32 to vector<2x32xf32>
    %249 = arith.addf %248, %247 : vector<2x32xf32>
    %250 = arith.divf %248, %249 : vector<2x32xf32>
    %251 = vector.extract_strided_slice %244 {offsets = [0, 32], sizes = [2, 32], strides = [1, 1]} : vector<2x128xf32> to vector<2x32xf32>
    %252 = arith.negf %251 : vector<2x32xf32>
    %253 = math.exp %252 : vector<2x32xf32>
    %cst_83 = arith.constant 1.000000e+00 : f32
    %254 = vector.broadcast %cst_83 : f32 to vector<2x32xf32>
    %255 = arith.addf %254, %253 : vector<2x32xf32>
    %256 = arith.divf %254, %255 : vector<2x32xf32>
    %257 = vector.extract_strided_slice %244 {offsets = [0, 64], sizes = [2, 32], strides = [1, 1]} : vector<2x128xf32> to vector<2x32xf32>
    %258 = math.tanh %257 : vector<2x32xf32>
    %259 = vector.extract_strided_slice %244 {offsets = [0, 96], sizes = [2, 32], strides = [1, 1]} : vector<2x128xf32> to vector<2x32xf32>
    %260 = arith.negf %259 : vector<2x32xf32>
    %261 = math.exp %260 : vector<2x32xf32>
    %cst_84 = arith.constant 1.000000e+00 : f32
    %262 = vector.broadcast %cst_84 : f32 to vector<2x32xf32>
    %263 = arith.addf %262, %261 : vector<2x32xf32>
    %264 = arith.divf %262, %263 : vector<2x32xf32>
    %265 = arith.mulf %256, %201 : vector<2x32xf32>
    %266 = arith.mulf %250, %258 : vector<2x32xf32>
    %267 = arith.addf %265, %266 : vector<2x32xf32>
    %268 = math.tanh %267 : vector<2x32xf32>
    %269 = arith.mulf %264, %268 : vector<2x32xf32>
    %c0_85 = arith.constant 0 : index
    %c0_86 = arith.constant 0 : index
    %c0_87 = arith.constant 0 : index
    %270 = vector.load %arg6[%c0_85, %c0_86, %c0_87] : memref<4x2x32xf32, #tpu.memory_space<vmem>>, vector<1x2x32xf32>
    %271 = vector.shape_cast %270 : vector<1x2x32xf32> to vector<2x32xf32>
    %272 = vector.shape_cast %269 : vector<2x32xf32> to vector<1x2x32xf32>
    tpu.vector_store %arg6[%c0_85, %c0_86, %c0_87], %272 {strides = array<i32>} : memref<4x2x32xf32, #tpu.memory_space<vmem>>, vector<1x2x32xf32>,
    %c0_88 = arith.constant 0 : index
    %c0_89 = arith.constant 0 : index
    %273 = vector.load %arg7[%c0_88, %c0_89] : memref<2x32xf32, #tpu.memory_space<vmem>>, vector<2x32xf32>
    tpu.vector_store %arg7[%c0_88, %c0_89], %236 {strides = array<i32>} : memref<2x32xf32, #tpu.memory_space<vmem>>, vector<2x32xf32>,
    %c0_90 = arith.constant 0 : index
    %c0_91 = arith.constant 0 : index
    %274 = vector.load %arg8[%c0_90, %c0_91] : memref<2x32xf32, #tpu.memory_space<vmem>>, vector<2x32xf32>
    tpu.vector_store %arg8[%c0_90, %c0_91], %234 {strides = array<i32>} : memref<2x32xf32, #tpu.memory_space<vmem>>, vector<2x32xf32>,
    %c0_92 = arith.constant 0 : index
    %c0_93 = arith.constant 0 : index
    %275 = vector.load %arg9[%c0_92, %c0_93] : memref<2x32xf32, #tpu.memory_space<vmem>>, vector<2x32xf32>
    tpu.vector_store %arg9[%c0_92, %c0_93], %269 {strides = array<i32>} : memref<2x32xf32, #tpu.memory_space<vmem>>, vector<2x32xf32>,
    %c0_94 = arith.constant 0 : index
    %c0_95 = arith.constant 0 : index
    %276 = vector.load %arg10[%c0_94, %c0_95] : memref<2x32xf32, #tpu.memory_space<vmem>>, vector<2x32xf32>
    tpu.vector_store %arg10[%c0_94, %c0_95], %267 {strides = array<i32>} : memref<2x32xf32, #tpu.memory_space<vmem>>, vector<2x32xf32>,
    return
  }
  func.func @transform_0(%arg0: i32) -> (i32, i32, i32) {
    %c0_i32 = arith.constant 0 : i32
    %c0_i32_0 = arith.constant 0 : i32
    %c0_i32_1 = arith.constant 0 : i32
    return %arg0, %c0_i32, %c0_i32_0 : i32, i32, i32
  }
  func.func @transform_1(%arg0: i32) -> (i32, i32, i32) {
    %c0_i32 = arith.constant 0 : i32
    %0 = arith.subi %c0_i32, %arg0 : i32
    %c0_i32_0 = arith.constant 0 : i32
    %c1_i32 = arith.constant 1 : i32
    %c0_i32_1 = arith.constant 0 : i32
    return %0, %c0_i32_0, %c1_i32 : i32, i32, i32
  }
  func.func @transform_2(%arg0: i32) -> (i32, i32) {
    %c0_i32 = arith.constant 0 : i32
    %c0_i32_0 = arith.constant 0 : i32
    %c0_i32_1 = arith.constant 0 : i32
    return %c0_i32, %c0_i32_0 : i32, i32
  }
  func.func @transform_3(%arg0: i32) -> (i32, i32) {
    %c0_i32 = arith.constant 0 : i32
    %c0_i32_0 = arith.constant 0 : i32
    %c0_i32_1 = arith.constant 0 : i32
    return %c0_i32, %c0_i32_0 : i32, i32
  }
  func.func @transform_4(%arg0: i32) -> (i32, i32, i32) {
    %c0_i32 = arith.constant 0 : i32
    %c0_i32_0 = arith.constant 0 : i32
    %c0_i32_1 = arith.constant 0 : i32
    return %arg0, %c0_i32, %c0_i32_0 : i32, i32, i32
  }
  func.func @transform_5(%arg0: i32) -> (i32, i32, i32) {
    %c0_i32 = arith.constant 0 : i32
    %0 = arith.subi %c0_i32, %arg0 : i32
    %c0_i32_0 = arith.constant 0 : i32
    %c0_i32_1 = arith.constant 0 : i32
    %c0_i32_2 = arith.constant 0 : i32
    return %0, %c0_i32_0, %c0_i32_1 : i32, i32, i32
  }
}

module attributes {stable_mosaic.version = 11 : i64} {
  func.func @_bn_stats_kernel(%arg0: i32, %arg1: memref<8x64xf32, #tpu.memory_space<vmem>>, %arg2: memref<1x64xf32, #tpu.memory_space<vmem>>, %arg3: memref<1x64xf32, #tpu.memory_space<vmem>>) attributes {dimension_semantics = [#tpu.dimension_semantics<arbitrary>], iteration_bounds = array<i64: 1>, scalar_prefetch = 0 : i64, scratch_operands = 0 : i64, tpu.core_type = #tpu.core_type<tc>, window_params = [{transform_indices = @transform_0, window_bounds = array<i64: 8, 64>}, {pipeline_mode = #tpu.pipeline_mode<synchronous>, transform_indices = @transform_1, window_bounds = array<i64: 1, 64>}, {pipeline_mode = #tpu.pipeline_mode<synchronous>, transform_indices = @transform_2, window_bounds = array<i64: 1, 64>}]} {
    %c0_i32 = arith.constant 0 : i32
    %0 = arith.cmpi eq, %arg0, %c0_i32 : i32
    %1 = arith.extui %0 : i1 to i32
    %c0_i32_0 = arith.constant 0 : i32
    %2 = arith.cmpi ne, %1, %c0_i32_0 : i32
    scf.if %2 {
      %cst_11 = arith.constant 0.000000e+00 : f32
      %15 = vector.broadcast %cst_11 : f32 to vector<1x64xf32>
      %c0_12 = arith.constant 0 : index
      %c0_13 = arith.constant 0 : index
      %16 = vector.load %arg2[%c0_12, %c0_13] : memref<1x64xf32, #tpu.memory_space<vmem>>, vector<1x64xf32>
      tpu.vector_store %arg2[%c0_12, %c0_13], %15 {strides = array<i32>} : memref<1x64xf32, #tpu.memory_space<vmem>>, vector<1x64xf32>,
      %cst_14 = arith.constant 0.000000e+00 : f32
      %17 = vector.broadcast %cst_14 : f32 to vector<1x64xf32>
      %c0_15 = arith.constant 0 : index
      %c0_16 = arith.constant 0 : index
      %18 = vector.load %arg3[%c0_15, %c0_16] : memref<1x64xf32, #tpu.memory_space<vmem>>, vector<1x64xf32>
      tpu.vector_store %arg3[%c0_15, %c0_16], %17 {strides = array<i32>} : memref<1x64xf32, #tpu.memory_space<vmem>>, vector<1x64xf32>,
    } else {
    }
    %c0 = arith.constant 0 : index
    %c0_1 = arith.constant 0 : index
    %3 = vector.load %arg1[%c0, %c0_1] : memref<8x64xf32, #tpu.memory_space<vmem>>, vector<8x64xf32>
    %c0_2 = arith.constant 0 : index
    %c0_3 = arith.constant 0 : index
    %4 = vector.load %arg2[%c0_2, %c0_3] : memref<1x64xf32, #tpu.memory_space<vmem>>, vector<1x64xf32>
    %cst = arith.constant dense<0.000000e+00> : vector<64xf32>
    %5 = vector.multi_reduction <add>, %3, %cst [0] : vector<8x64xf32> to vector<64xf32>
    %6 = vector.shape_cast %5 : vector<64xf32> to vector<1x64xf32>
    %7 = arith.addf %4, %6 : vector<1x64xf32>
    %c0_4 = arith.constant 0 : index
    %c0_5 = arith.constant 0 : index
    %8 = vector.load %arg2[%c0_4, %c0_5] : memref<1x64xf32, #tpu.memory_space<vmem>>, vector<1x64xf32>
    tpu.vector_store %arg2[%c0_4, %c0_5], %7 {strides = array<i32>} : memref<1x64xf32, #tpu.memory_space<vmem>>, vector<1x64xf32>,
    %c0_6 = arith.constant 0 : index
    %c0_7 = arith.constant 0 : index
    %9 = vector.load %arg3[%c0_6, %c0_7] : memref<1x64xf32, #tpu.memory_space<vmem>>, vector<1x64xf32>
    %10 = arith.mulf %3, %3 : vector<8x64xf32>
    %cst_8 = arith.constant dense<0.000000e+00> : vector<64xf32>
    %11 = vector.multi_reduction <add>, %10, %cst_8 [0] : vector<8x64xf32> to vector<64xf32>
    %12 = vector.shape_cast %11 : vector<64xf32> to vector<1x64xf32>
    %13 = arith.addf %9, %12 : vector<1x64xf32>
    %c0_9 = arith.constant 0 : index
    %c0_10 = arith.constant 0 : index
    %14 = vector.load %arg3[%c0_9, %c0_10] : memref<1x64xf32, #tpu.memory_space<vmem>>, vector<1x64xf32>
    tpu.vector_store %arg3[%c0_9, %c0_10], %13 {strides = array<i32>} : memref<1x64xf32, #tpu.memory_space<vmem>>, vector<1x64xf32>,
    return
  }
  func.func @transform_0(%arg0: i32) -> (i32, i32) {
    %c0_i32 = arith.constant 0 : i32
    %c0_i32_0 = arith.constant 0 : i32
    return %arg0, %c0_i32 : i32, i32
  }
  func.func @transform_1(%arg0: i32) -> (i32, i32) {
    %c0_i32 = arith.constant 0 : i32
    %c0_i32_0 = arith.constant 0 : i32
    %c0_i32_1 = arith.constant 0 : i32
    return %c0_i32, %c0_i32_0 : i32, i32
  }
  func.func @transform_2(%arg0: i32) -> (i32, i32) {
    %c0_i32 = arith.constant 0 : i32
    %c0_i32_0 = arith.constant 0 : i32
    %c0_i32_1 = arith.constant 0 : i32
    return %c0_i32, %c0_i32_0 : i32, i32
  }
}

module attributes {stable_mosaic.version = 11 : i64} {
  func.func @_bn_norm_kernel(%arg0: i32, %arg1: memref<8x64xf32, #tpu.memory_space<vmem>>, %arg2: memref<1x64xf32, #tpu.memory_space<vmem>>, %arg3: memref<1x64xf32, #tpu.memory_space<vmem>>, %arg4: memref<8x64xf32, #tpu.memory_space<vmem>>) attributes {dimension_semantics = [#tpu.dimension_semantics<parallel>], iteration_bounds = array<i64: 1>, scalar_prefetch = 0 : i64, scratch_operands = 0 : i64, tpu.core_type = #tpu.core_type<tc>, window_params = [{transform_indices = @transform_0, window_bounds = array<i64: 8, 64>}, {pipeline_mode = #tpu.pipeline_mode<synchronous>, transform_indices = @transform_1, window_bounds = array<i64: 1, 64>}, {pipeline_mode = #tpu.pipeline_mode<synchronous>, transform_indices = @transform_2, window_bounds = array<i64: 1, 64>}, {transform_indices = @transform_3, window_bounds = array<i64: 8, 64>}]} {
    %c0 = arith.constant 0 : index
    %c0_0 = arith.constant 0 : index
    %0 = vector.load %arg1[%c0, %c0_0] : memref<8x64xf32, #tpu.memory_space<vmem>>, vector<8x64xf32>
    %c0_1 = arith.constant 0 : index
    %c0_2 = arith.constant 0 : index
    %1 = vector.load %arg2[%c0_1, %c0_2] : memref<1x64xf32, #tpu.memory_space<vmem>>, vector<1x64xf32>
    %2 = vector.broadcast %1 : vector<1x64xf32> to vector<8x64xf32>
    %3 = arith.mulf %0, %2 : vector<8x64xf32>
    %c0_3 = arith.constant 0 : index
    %c0_4 = arith.constant 0 : index
    %4 = vector.load %arg3[%c0_3, %c0_4] : memref<1x64xf32, #tpu.memory_space<vmem>>, vector<1x64xf32>
    %5 = vector.broadcast %4 : vector<1x64xf32> to vector<8x64xf32>
    %6 = arith.addf %3, %5 : vector<8x64xf32>
    %c0_5 = arith.constant 0 : index
    %c0_6 = arith.constant 0 : index
    %7 = vector.load %arg4[%c0_5, %c0_6] : memref<8x64xf32, #tpu.memory_space<vmem>>, vector<8x64xf32>
    tpu.vector_store %arg4[%c0_5, %c0_6], %6 {strides = array<i32>} : memref<8x64xf32, #tpu.memory_space<vmem>>, vector<8x64xf32>,
    return
  }
  func.func @transform_0(%arg0: i32) -> (i32, i32) {
    %c0_i32 = arith.constant 0 : i32
    %c0_i32_0 = arith.constant 0 : i32
    return %arg0, %c0_i32 : i32, i32
  }
  func.func @transform_1(%arg0: i32) -> (i32, i32) {
    %c0_i32 = arith.constant 0 : i32
    %c0_i32_0 = arith.constant 0 : i32
    %c0_i32_1 = arith.constant 0 : i32
    return %c0_i32, %c0_i32_0 : i32, i32
  }
  func.func @transform_2(%arg0: i32) -> (i32, i32) {
    %c0_i32 = arith.constant 0 : i32
    %c0_i32_0 = arith.constant 0 : i32
    %c0_i32_1 = arith.constant 0 : i32
    return %c0_i32, %c0_i32_0 : i32, i32
  }
  func.func @transform_3(%arg0: i32) -> (i32, i32) {
    %c0_i32 = arith.constant 0 : i32
    %c0_i32_0 = arith.constant 0 : i32
    return %arg0, %c0_i32 : i32, i32
  }
}

module attributes {stable_mosaic.version = 11 : i64} {
  func.func @_decoder_step_kernel(%arg0: i32, %arg1: memref<2x128x64xbf16, #tpu.memory_space<vmem>>, %arg2: memref<2x80xf32, #tpu.memory_space<vmem>>, %arg3: memref<12x16xbf16, #tpu.memory_space<vmem>>, %arg4: memref<80x256xbf16, #tpu.memory_space<vmem>>, %arg5: memref<64x256xbf16, #tpu.memory_space<vmem>>, %arg6: memref<1x256xf32, #tpu.memory_space<vmem>>, %arg7: memref<128x512xbf16, #tpu.memory_space<vmem>>, %arg8: memref<1x512xf32, #tpu.memory_space<vmem>>, %arg9: memref<512x128xbf16, #tpu.memory_space<vmem>>, %arg10: memref<1x128xf32, #tpu.memory_space<vmem>>, %arg11: memref<1x2x128xf32, #tpu.memory_space<vmem>>, %arg12: memref<1x2x128xf32, #tpu.memory_space<vmem>>, %arg13: memref<1x64xf32, #tpu.memory_space<vmem>>, %arg14: memref<1x64xf32, #tpu.memory_space<vmem>>, %arg15: memref<2x80xf32, #tpu.memory_space<vmem>>, %arg16: memref<2x64xf32, #tpu.memory_space<vmem>>) attributes {dimension_semantics = [#tpu.dimension_semantics<arbitrary>], iteration_bounds = array<i64: 4>, scalar_prefetch = 0 : i64, scratch_operands = 4 : i64, tpu.core_type = #tpu.core_type<tc>, window_params = [{pipeline_mode = #tpu.pipeline_mode<synchronous>, transform_indices = @transform_0, window_bounds = array<i64: 2, 128, 64>}, {pipeline_mode = #tpu.pipeline_mode<synchronous>, transform_indices = @transform_1, window_bounds = array<i64: 2, 80>}, {pipeline_mode = #tpu.pipeline_mode<synchronous>, transform_indices = @transform_2, window_bounds = array<i64: 12, 16>}, {pipeline_mode = #tpu.pipeline_mode<synchronous>, transform_indices = @transform_3, window_bounds = array<i64: 80, 256>}, {pipeline_mode = #tpu.pipeline_mode<synchronous>, transform_indices = @transform_4, window_bounds = array<i64: 64, 256>}, {pipeline_mode = #tpu.pipeline_mode<synchronous>, transform_indices = @transform_5, window_bounds = array<i64: 1, 256>}, {pipeline_mode = #tpu.pipeline_mode<synchronous>, transform_indices = @transform_6, window_bounds = array<i64: 128, 512>}, {pipeline_mode = #tpu.pipeline_mode<synchronous>, transform_indices = @transform_7, window_bounds = array<i64: 1, 512>}, {pipeline_mode = #tpu.pipeline_mode<synchronous>, transform_indices = @transform_8, window_bounds = array<i64: 512, 128>}, {pipeline_mode = #tpu.pipeline_mode<synchronous>, transform_indices = @transform_9, window_bounds = array<i64: 1, 128>}, {transform_indices = @transform_10, window_bounds = array<i64: 1, 2, 128>}, {transform_indices = @transform_11, window_bounds = array<i64: 1, 2, 128>}]} {
    %c0_i32 = arith.constant 0 : i32
    %0 = arith.cmpi eq, %arg0, %c0_i32 : i32
    %1 = arith.extui %0 : i1 to i32
    %c0_i32_0 = arith.constant 0 : i32
    %2 = arith.cmpi ne, %1, %c0_i32_0 : i32
    scf.if %2 {
      %cst_62 = arith.constant 0.000000e+00 : f32
      %145 = vector.broadcast %cst_62 : f32 to vector<1x64xf32>
      %c0_63 = arith.constant 0 : index
      %c0_64 = arith.constant 0 : index
      %146 = vector.load %arg13[%c0_63, %c0_64] : memref<1x64xf32, #tpu.memory_space<vmem>>, vector<1x64xf32>
      tpu.vector_store %arg13[%c0_63, %c0_64], %145 {strides = array<i32>} : memref<1x64xf32, #tpu.memory_space<vmem>>, vector<1x64xf32>,
      %cst_65 = arith.constant 0.000000e+00 : f32
      %147 = vector.broadcast %cst_65 : f32 to vector<1x64xf32>
      %c0_66 = arith.constant 0 : index
      %c0_67 = arith.constant 0 : index
      %148 = vector.load %arg14[%c0_66, %c0_67] : memref<1x64xf32, #tpu.memory_space<vmem>>, vector<1x64xf32>
      tpu.vector_store %arg14[%c0_66, %c0_67], %147 {strides = array<i32>} : memref<1x64xf32, #tpu.memory_space<vmem>>, vector<1x64xf32>,
      %c0_68 = arith.constant 0 : index
      %c0_69 = arith.constant 0 : index
      %149 = vector.load %arg2[%c0_68, %c0_69] : memref<2x80xf32, #tpu.memory_space<vmem>>, vector<2x80xf32>
      %c0_70 = arith.constant 0 : index
      %c0_71 = arith.constant 0 : index
      %150 = vector.load %arg15[%c0_70, %c0_71] : memref<2x80xf32, #tpu.memory_space<vmem>>, vector<2x80xf32>
      tpu.vector_store %arg15[%c0_70, %c0_71], %149 {strides = array<i32>} : memref<2x80xf32, #tpu.memory_space<vmem>>, vector<2x80xf32>,
    } else {
    }
    %c0 = arith.constant 0 : index
    %c0_1 = arith.constant 0 : index
    %3 = vector.load %arg15[%c0, %c0_1] : memref<2x80xf32, #tpu.memory_space<vmem>>, vector<2x80xf32>
    %4 = arith.truncf %3 : vector<2x80xf32> to vector<2x80xbf16>
    %c0_2 = arith.constant 0 : index
    %c0_3 = arith.constant 0 : index
    %5 = vector.load %arg4[%c0_2, %c0_3] : memref<80x256xbf16, #tpu.memory_space<vmem>>, vector<80x256xbf16>
    %cst = arith.constant dense<0.000000e+00> : vector<2x256xf32>
    %6 = tpu.matmul %4, %5, %cst {dimension_numbers = #tpu.dot_dimension_numbers<[1], [0], [0], [1], [0, 0, 1, 1], [], []>} : vector<2x80xbf16>, vector<80x256xbf16>, vector<2x256xf32> -> vector<2x256xf32>
    %c0_4 = arith.constant 0 : index
    %c0_5 = arith.constant 0 : index
    %7 = vector.load %arg6[%c0_4, %c0_5] : memref<1x256xf32, #tpu.memory_space<vmem>>, vector<1x256xf32>
    %8 = vector.broadcast %7 : vector<1x256xf32> to vector<2x256xf32>
    %9 = arith.addf %6, %8 : vector<2x256xf32>
    %c0_6 = arith.constant 0 : index
    %c0_7 = arith.constant 0 : index
    %10 = vector.load %arg5[%c0_6, %c0_7] : memref<64x256xbf16, #tpu.memory_space<vmem>>, vector<64x256xbf16>
    %c0_8 = arith.constant 0 : index
    %c0_9 = arith.constant 0 : index
    %11 = vector.load %arg13[%c0_8, %c0_9] : memref<1x64xf32, #tpu.memory_space<vmem>>, vector<1x64xf32>
    %c0_10 = arith.constant 0 : index
    %c0_11 = arith.constant 0 : index
    %12 = vector.load %arg14[%c0_10, %c0_11] : memref<1x64xf32, #tpu.memory_space<vmem>>, vector<1x64xf32>
    %13 = vector.extract_strided_slice %9 {offsets = [0, 0], sizes = [1, 256], strides = [1, 1]} : vector<2x256xf32> to vector<1x256xf32>
    %14 = arith.truncf %11 : vector<1x64xf32> to vector<1x64xbf16>
    %cst_12 = arith.constant dense<0.000000e+00> : vector<1x256xf32>
    %15 = tpu.matmul %14, %10, %cst_12 {dimension_numbers = #tpu.dot_dimension_numbers<[1], [0], [0], [1], [0, 0, 1, 1], [], []>} : vector<1x64xbf16>, vector<64x256xbf16>, vector<1x256xf32> -> vector<1x256xf32>
    %16 = arith.addf %13, %15 : vector<1x256xf32>
    %17 = vector.extract_strided_slice %16 {offsets = [0, 0], sizes = [1, 64], strides = [1, 1]} : vector<1x256xf32> to vector<1x64xf32>
    %18 = arith.negf %17 : vector<1x64xf32>
    %19 = math.exp %18 : vector<1x64xf32>
    %cst_13 = arith.constant 1.000000e+00 : f32
    %20 = vector.broadcast %cst_13 : f32 to vector<1x64xf32>
    %21 = arith.addf %20, %19 : vector<1x64xf32>
    %22 = arith.divf %20, %21 : vector<1x64xf32>
    %23 = vector.extract_strided_slice %16 {offsets = [0, 64], sizes = [1, 64], strides = [1, 1]} : vector<1x256xf32> to vector<1x64xf32>
    %24 = arith.negf %23 : vector<1x64xf32>
    %25 = math.exp %24 : vector<1x64xf32>
    %cst_14 = arith.constant 1.000000e+00 : f32
    %26 = vector.broadcast %cst_14 : f32 to vector<1x64xf32>
    %27 = arith.addf %26, %25 : vector<1x64xf32>
    %28 = arith.divf %26, %27 : vector<1x64xf32>
    %29 = vector.extract_strided_slice %16 {offsets = [0, 128], sizes = [1, 64], strides = [1, 1]} : vector<1x256xf32> to vector<1x64xf32>
    %30 = math.tanh %29 : vector<1x64xf32>
    %31 = vector.extract_strided_slice %16 {offsets = [0, 192], sizes = [1, 64], strides = [1, 1]} : vector<1x256xf32> to vector<1x64xf32>
    %32 = arith.negf %31 : vector<1x64xf32>
    %33 = math.exp %32 : vector<1x64xf32>
    %cst_15 = arith.constant 1.000000e+00 : f32
    %34 = vector.broadcast %cst_15 : f32 to vector<1x64xf32>
    %35 = arith.addf %34, %33 : vector<1x64xf32>
    %36 = arith.divf %34, %35 : vector<1x64xf32>
    %37 = arith.mulf %28, %12 : vector<1x64xf32>
    %38 = arith.mulf %22, %30 : vector<1x64xf32>
    %39 = arith.addf %37, %38 : vector<1x64xf32>
    %40 = math.tanh %39 : vector<1x64xf32>
    %41 = arith.mulf %36, %40 : vector<1x64xf32>
    %c0_16 = arith.constant 0 : index
    %c0_17 = arith.constant 0 : index
    %42 = vector.load %arg16[%c0_16, %c0_17] : memref<2x64xf32, #tpu.memory_space<vmem>>, vector<1x64xf32>
    tpu.vector_store %arg16[%c0_16, %c0_17], %41 {strides = array<i32>} : memref<2x64xf32, #tpu.memory_space<vmem>>, vector<1x64xf32>,
    %43 = vector.extract_strided_slice %9 {offsets = [1, 0], sizes = [1, 256], strides = [1, 1]} : vector<2x256xf32> to vector<1x256xf32>
    %44 = arith.truncf %41 : vector<1x64xf32> to vector<1x64xbf16>
    %cst_18 = arith.constant dense<0.000000e+00> : vector<1x256xf32>
    %45 = tpu.matmul %44, %10, %cst_18 {dimension_numbers = #tpu.dot_dimension_numbers<[1], [0], [0], [1], [0, 0, 1, 1], [], []>} : vector<1x64xbf16>, vector<64x256xbf16>, vector<1x256xf32> -> vector<1x256xf32>
    %46 = arith.addf %43, %45 : vector<1x256xf32>
    %47 = vector.extract_strided_slice %46 {offsets = [0, 0], sizes = [1, 64], strides = [1, 1]} : vector<1x256xf32> to vector<1x64xf32>
    %48 = arith.negf %47 : vector<1x64xf32>
    %49 = math.exp %48 : vector<1x64xf32>
    %cst_19 = arith.constant 1.000000e+00 : f32
    %50 = vector.broadcast %cst_19 : f32 to vector<1x64xf32>
    %51 = arith.addf %50, %49 : vector<1x64xf32>
    %52 = arith.divf %50, %51 : vector<1x64xf32>
    %53 = vector.extract_strided_slice %46 {offsets = [0, 64], sizes = [1, 64], strides = [1, 1]} : vector<1x256xf32> to vector<1x64xf32>
    %54 = arith.negf %53 : vector<1x64xf32>
    %55 = math.exp %54 : vector<1x64xf32>
    %cst_20 = arith.constant 1.000000e+00 : f32
    %56 = vector.broadcast %cst_20 : f32 to vector<1x64xf32>
    %57 = arith.addf %56, %55 : vector<1x64xf32>
    %58 = arith.divf %56, %57 : vector<1x64xf32>
    %59 = vector.extract_strided_slice %46 {offsets = [0, 128], sizes = [1, 64], strides = [1, 1]} : vector<1x256xf32> to vector<1x64xf32>
    %60 = math.tanh %59 : vector<1x64xf32>
    %61 = vector.extract_strided_slice %46 {offsets = [0, 192], sizes = [1, 64], strides = [1, 1]} : vector<1x256xf32> to vector<1x64xf32>
    %62 = arith.negf %61 : vector<1x64xf32>
    %63 = math.exp %62 : vector<1x64xf32>
    %cst_21 = arith.constant 1.000000e+00 : f32
    %64 = vector.broadcast %cst_21 : f32 to vector<1x64xf32>
    %65 = arith.addf %64, %63 : vector<1x64xf32>
    %66 = arith.divf %64, %65 : vector<1x64xf32>
    %67 = arith.mulf %58, %39 : vector<1x64xf32>
    %68 = arith.mulf %52, %60 : vector<1x64xf32>
    %69 = arith.addf %67, %68 : vector<1x64xf32>
    %70 = math.tanh %69 : vector<1x64xf32>
    %71 = arith.mulf %66, %70 : vector<1x64xf32>
    %c1 = arith.constant 1 : index
    %c0_22 = arith.constant 0 : index
    %72 = vector.load %arg16[%c1, %c0_22] : memref<2x64xf32, #tpu.memory_space<vmem>>, vector<1x64xf32>
    tpu.vector_store %arg16[%c1, %c0_22], %71 {strides = array<i32>} : memref<2x64xf32, #tpu.memory_space<vmem>>, vector<1x64xf32>,
    %c0_23 = arith.constant 0 : index
    %c0_24 = arith.constant 0 : index
    %73 = vector.load %arg13[%c0_23, %c0_24] : memref<1x64xf32, #tpu.memory_space<vmem>>, vector<1x64xf32>
    tpu.vector_store %arg13[%c0_23, %c0_24], %71 {strides = array<i32>} : memref<1x64xf32, #tpu.memory_space<vmem>>, vector<1x64xf32>,
    %c0_25 = arith.constant 0 : index
    %c0_26 = arith.constant 0 : index
    %74 = vector.load %arg14[%c0_25, %c0_26] : memref<1x64xf32, #tpu.memory_space<vmem>>, vector<1x64xf32>
    tpu.vector_store %arg14[%c0_25, %c0_26], %69 {strides = array<i32>} : memref<1x64xf32, #tpu.memory_space<vmem>>, vector<1x64xf32>,
    %c0_27 = arith.constant 0 : index
    %c0_28 = arith.constant 0 : index
    %75 = vector.load %arg16[%c0_27, %c0_28] : memref<2x64xf32, #tpu.memory_space<vmem>>, vector<2x64xf32>
    %c0_29 = arith.constant 0 : index
    %c0_30 = arith.constant 0 : index
    %c0_31 = arith.constant 0 : index
    %76 = vector.load %arg1[%c0_29, %c0_30, %c0_31] : memref<2x128x64xbf16, #tpu.memory_space<vmem>>, vector<2x128x64xbf16>
    %77 = arith.extf %76 : vector<2x128x64xbf16> to vector<2x128x64xf32>
    %78 = vector.shape_cast %75 : vector<2x64xf32> to vector<2x1x64xf32>
    %79 = vector.broadcast %78 : vector<2x1x64xf32> to vector<2x128x64xf32>
    %80 = arith.mulf %79, %77 : vector<2x128x64xf32>
    %cst_32 = arith.constant dense<0.000000e+00> : vector<2x128xf32>
    %81 = vector.multi_reduction <add>, %80, %cst_32 [2] : vector<2x128x64xf32> to vector<2x128xf32>
    %82 = tpu.iota {dimensions = array<i32: 1>} : vector<2x128xi32>
    %c4_i32 = arith.constant 4 : i32
    %83 = vector.broadcast %c4_i32 : i32 to vector<2x128xi32>
    %84 = arith.cmpi slt, %82, %83 : vector<2x128xi32>
    %cst_33 = arith.constant 0xFF800000 : f32
    %85 = vector.broadcast %cst_33 : f32 to vector<2x128xf32>
    %86 = arith.select %84, %81, %85 : vector<2x128xi1>, vector<2x128xf32>
    %cst_34 = arith.constant dense<0xFF800000> : vector<2xf32>
    %87 = vector.multi_reduction <maximumf>, %86, %cst_34 [1] : vector<2x128xf32> to vector<2xf32>
    %88 = vector.shape_cast %87 : vector<2xf32> to vector<2x1xf32>
    %89 = vector.broadcast %88 : vector<2x1xf32> to vector<2x128xf32>
    %90 = arith.subf %86, %89 : vector<2x128xf32>
    %91 = math.exp %90 : vector<2x128xf32>
    %cst_35 = arith.constant dense<0.000000e+00> : vector<2xf32>
    %92 = vector.multi_reduction <add>, %91, %cst_35 [1] : vector<2x128xf32> to vector<2xf32>
    %93 = vector.shape_cast %92 : vector<2xf32> to vector<2x1xf32>
    %94 = tpu.reciprocal %93 {approx = true} : vector<2x1xf32> -> vector<2x1xf32>
    %95 = vector.broadcast %94 : vector<2x1xf32> to vector<2x128xf32>
    %96 = arith.mulf %91, %95 : vector<2x128xf32>
    %97 = vector.shape_cast %96 : vector<2x128xf32> to vector<2x128x1xf32>
    %98 = vector.broadcast %97 : vector<2x128x1xf32> to vector<2x128x64xf32>
    %99 = arith.mulf %98, %77 : vector<2x128x64xf32>
    %cst_36 = arith.constant dense<0.000000e+00> : vector<2x64xf32>
    %100 = vector.multi_reduction <add>, %99, %cst_36 [1] : vector<2x128x64xf32> to vector<2x64xf32>
    %101 = tpu.concatenate %75, %100 in 1 : vector<2x64xf32>, vector<2x64xf32> -> vector<2x128xf32>
    %102 = arith.truncf %101 : vector<2x128xf32> to vector<2x128xbf16>
    %c0_37 = arith.constant 0 : index
    %c0_38 = arith.constant 0 : index
    %103 = vector.load %arg7[%c0_37, %c0_38] : memref<128x512xbf16, #tpu.memory_space<vmem>>, vector<128x512xbf16>
    %cst_39 = arith.constant dense<0.000000e+00> : vector<2x512xf32>
    %104 = tpu.matmul %102, %103, %cst_39 {dimension_numbers = #tpu.dot_dimension_numbers<[1], [0], [0], [1], [0, 0, 1, 1], [], []>} : vector<2x128xbf16>, vector<128x512xbf16>, vector<2x512xf32> -> vector<2x512xf32>
    %c0_40 = arith.constant 0 : index
    %c0_41 = arith.constant 0 : index
    %105 = vector.load %arg8[%c0_40, %c0_41] : memref<1x512xf32, #tpu.memory_space<vmem>>, vector<1x512xf32>
    %106 = vector.broadcast %105 : vector<1x512xf32> to vector<2x512xf32>
    %107 = arith.addf %104, %106 : vector<2x512xf32>
    %cst_42 = arith.constant 0.000000e+00 : f32
    %108 = vector.broadcast %cst_42 : f32 to vector<2x512xf32>
    %109 = arith.maximumf %107, %108 : vector<2x512xf32>
    %110 = arith.truncf %109 : vector<2x512xf32> to vector<2x512xbf16>
    %c0_43 = arith.constant 0 : index
    %c0_44 = arith.constant 0 : index
    %111 = vector.load %arg9[%c0_43, %c0_44] : memref<512x128xbf16, #tpu.memory_space<vmem>>, vector<512x128xbf16>
    %cst_45 = arith.constant dense<0.000000e+00> : vector<2x128xf32>
    %112 = tpu.matmul %110, %111, %cst_45 {dimension_numbers = #tpu.dot_dimension_numbers<[1], [0], [0], [1], [0, 0, 1, 1], [], []>} : vector<2x512xbf16>, vector<512x128xbf16>, vector<2x128xf32> -> vector<2x128xf32>
    %c0_46 = arith.constant 0 : index
    %c0_47 = arith.constant 0 : index
    %113 = vector.load %arg10[%c0_46, %c0_47] : memref<1x128xf32, #tpu.memory_space<vmem>>, vector<1x128xf32>
    %114 = vector.broadcast %113 : vector<1x128xf32> to vector<2x128xf32>
    %115 = arith.addf %112, %114 : vector<2x128xf32>
    %c0_48 = arith.constant 0 : index
    %c0_49 = arith.constant 0 : index
    %c0_50 = arith.constant 0 : index
    %116 = vector.load %arg11[%c0_48, %c0_49, %c0_50] : memref<1x2x128xf32, #tpu.memory_space<vmem>>, vector<1x2x128xf32>
    %117 = vector.shape_cast %116 : vector<1x2x128xf32> to vector<2x128xf32>
    %118 = vector.shape_cast %115 : vector<2x128xf32> to vector<1x2x128xf32>
    tpu.vector_store %arg11[%c0_48, %c0_49, %c0_50], %118 {strides = array<i32>} : memref<1x2x128xf32, #tpu.memory_space<vmem>>, vector<1x2x128xf32>,
    %c0_51 = arith.constant 0 : index
    %c0_52 = arith.constant 0 : index
    %c0_53 = arith.constant 0 : index
    %119 = vector.load %arg12[%c0_51, %c0_52, %c0_53] : memref<1x2x128xf32, #tpu.memory_space<vmem>>, vector<1x2x128xf32>
    %120 = vector.shape_cast %119 : vector<1x2x128xf32> to vector<2x128xf32>
    %121 = vector.shape_cast %96 : vector<2x128xf32> to vector<1x2x128xf32>
    tpu.vector_store %arg12[%c0_51, %c0_52, %c0_53], %121 {strides = array<i32>} : memref<1x2x128xf32, #tpu.memory_space<vmem>>, vector<1x2x128xf32>,
    %122 = tpu.iota {dimensions = array<i32: 1>} : vector<2x128xi32>
    %c12_i32 = arith.constant 12 : i32
    %123 = vector.broadcast %c12_i32 : i32 to vector<2x128xi32>
    %124 = arith.cmpi slt, %122, %123 : vector<2x128xi32>
    %cst_54 = arith.constant 0xFF800000 : f32
    %125 = vector.broadcast %cst_54 : f32 to vector<2x128xf32>
    %126 = arith.select %124, %115, %125 : vector<2x128xi1>, vector<2x128xf32>
    %cst_55 = arith.constant dense<0xFF800000> : vector<2xf32>
    %127 = vector.multi_reduction <maximumf>, %126, %cst_55 [1] : vector<2x128xf32> to vector<2xf32>
    %128 = vector.shape_cast %127 : vector<2xf32> to vector<2x1xf32>
    %129 = vector.broadcast %128 : vector<2x1xf32> to vector<2x128xf32>
    %130 = arith.cmpf oeq, %126, %129 : vector<2x128xf32>
    %c128_i32 = arith.constant 128 : i32
    %131 = vector.broadcast %c128_i32 : i32 to vector<2x128xi32>
    %132 = arith.select %130, %122, %131 : vector<2x128xi1>, vector<2x128xi32>
    %cst_56 = arith.constant dense<2147483647> : vector<2xi32>
    %133 = vector.multi_reduction <minsi>, %132, %cst_56 [1] : vector<2x128xi32> to vector<2xi32>
    %134 = vector.shape_cast %133 : vector<2xi32> to vector<2x1xi32>
    %135 = tpu.iota {dimensions = array<i32: 1>} : vector<2x12xi32>
    %136 = vector.broadcast %134 : vector<2x1xi32> to vector<2x12xi32>
    %137 = arith.cmpi eq, %135, %136 : vector<2x12xi32>
    %138 = arith.extui %137 : vector<2x12xi1> to vector<2x12xi32>
    %139 = arith.sitofp %138 : vector<2x12xi32> to vector<2x12xf32>
    %140 = arith.truncf %139 : vector<2x12xf32> to vector<2x12xbf16>
    %c0_57 = arith.constant 0 : index
    %c0_58 = arith.constant 0 : index
    %141 = vector.load %arg3[%c0_57, %c0_58] : memref<12x16xbf16, #tpu.memory_space<vmem>>, vector<12x16xbf16>
    %cst_59 = arith.constant dense<0.000000e+00> : vector<2x16xf32>
    %142 = tpu.matmul %140, %141, %cst_59 {dimension_numbers = #tpu.dot_dimension_numbers<[1], [0], [0], [1], [0, 0, 1, 1], [], []>} : vector<2x12xbf16>, vector<12x16xbf16>, vector<2x16xf32> -> vector<2x16xf32>
    %143 = tpu.concatenate %142, %100 in 1 : vector<2x16xf32>, vector<2x64xf32> -> vector<2x80xf32>
    %c0_60 = arith.constant 0 : index
    %c0_61 = arith.constant 0 : index
    %144 = vector.load %arg15[%c0_60, %c0_61] : memref<2x80xf32, #tpu.memory_space<vmem>>, vector<2x80xf32>
    tpu.vector_store %arg15[%c0_60, %c0_61], %143 {strides = array<i32>} : memref<2x80xf32, #tpu.memory_space<vmem>>, vector<2x80xf32>,
    return
  }
  func.func @transform_0(%arg0: i32) -> (i32, i32, i32) {
    %c0_i32 = arith.constant 0 : i32
    %c0_i32_0 = arith.constant 0 : i32
    %c0_i32_1 = arith.constant 0 : i32
    %c0_i32_2 = arith.constant 0 : i32
    return %c0_i32, %c0_i32_0, %c0_i32_1 : i32, i32, i32
  }
  func.func @transform_1(%arg0: i32) -> (i32, i32) {
    %c0_i32 = arith.constant 0 : i32
    %c0_i32_0 = arith.constant 0 : i32
    %c0_i32_1 = arith.constant 0 : i32
    return %c0_i32, %c0_i32_0 : i32, i32
  }
  func.func @transform_2(%arg0: i32) -> (i32, i32) {
    %c0_i32 = arith.constant 0 : i32
    %c0_i32_0 = arith.constant 0 : i32
    %c0_i32_1 = arith.constant 0 : i32
    return %c0_i32, %c0_i32_0 : i32, i32
  }
  func.func @transform_3(%arg0: i32) -> (i32, i32) {
    %c0_i32 = arith.constant 0 : i32
    %c0_i32_0 = arith.constant 0 : i32
    %c0_i32_1 = arith.constant 0 : i32
    return %c0_i32, %c0_i32_0 : i32, i32
  }
  func.func @transform_4(%arg0: i32) -> (i32, i32) {
    %c0_i32 = arith.constant 0 : i32
    %c0_i32_0 = arith.constant 0 : i32
    %c0_i32_1 = arith.constant 0 : i32
    return %c0_i32, %c0_i32_0 : i32, i32
  }
  func.func @transform_5(%arg0: i32) -> (i32, i32) {
    %c0_i32 = arith.constant 0 : i32
    %c0_i32_0 = arith.constant 0 : i32
    %c0_i32_1 = arith.constant 0 : i32
    return %c0_i32, %c0_i32_0 : i32, i32
  }
  func.func @transform_6(%arg0: i32) -> (i32, i32) {
    %c0_i32 = arith.constant 0 : i32
    %c0_i32_0 = arith.constant 0 : i32
    %c0_i32_1 = arith.constant 0 : i32
    return %c0_i32, %c0_i32_0 : i32, i32
  }
  func.func @transform_7(%arg0: i32) -> (i32, i32) {
    %c0_i32 = arith.constant 0 : i32
    %c0_i32_0 = arith.constant 0 : i32
    %c0_i32_1 = arith.constant 0 : i32
    return %c0_i32, %c0_i32_0 : i32, i32
  }
  func.func @transform_8(%arg0: i32) -> (i32, i32) {
    %c0_i32 = arith.constant 0 : i32
    %c0_i32_0 = arith.constant 0 : i32
    %c0_i32_1 = arith.constant 0 : i32
    return %c0_i32, %c0_i32_0 : i32, i32
  }
  func.func @transform_9(%arg0: i32) -> (i32, i32) {
    %c0_i32 = arith.constant 0 : i32
    %c0_i32_0 = arith.constant 0 : i32
    %c0_i32_1 = arith.constant 0 : i32
    return %c0_i32, %c0_i32_0 : i32, i32
  }
  func.func @transform_10(%arg0: i32) -> (i32, i32, i32) {
    %c0_i32 = arith.constant 0 : i32
    %c0_i32_0 = arith.constant 0 : i32
    %c0_i32_1 = arith.constant 0 : i32
    return %arg0, %c0_i32, %c0_i32_0 : i32, i32, i32
  }
  func.func @transform_11(%arg0: i32) -> (i32, i32, i32) {
    %c0_i32 = arith.constant 0 : i32
    %c0_i32_0 = arith.constant 0 : i32
    %c0_i32_1 = arith.constant 0 : i32
    return %arg0, %c0_i32, %c0_i32_0 : i32, i32, i32
  }
}

</mosaic_0001>

<bundles_post_ra>
// kernel: las_forward.7
= control target key start
LH: loop header
LB: loop body
LE: loop exit
PB: predicated region body
PF: predicated region fallthrough
CT: control target
= control target key end

     0   :  { %vm70_vm0 = vcmask 523264   ;;  %s228_s1 = inlined_call_operand.vmem [shape: bf16[64,256], index: 1, kind: input, shape index: {}]   ;;  %s229_s0 = inlined_call_operand.vmem [shape: bf16[8,64], index: 0, kind: input, shape index: {}]   ;;  %s230_s2 = inlined_call_operand.vmem [shape: f32[1,256], index: 2, kind: input, shape index: {}]   ;;  %s231_s3 = inlined_call_operand.vmem [shape: f32[8,256], index: 3, kind: output, shape index: {}]  }
   0x1   :  { %v132_v0 = vld [vmem:[%s228_s1 + $0x30] sm:$0xf]  ;;  %v147_v1 = vld [vmem:[%s228_s1 + $0x34] sm:$0xf0]  ;;  %v146_v2 = vld [vmem:[%s228_s1 + $0x34] sm:$0xf] }
   0x2   :  { %v133_v3 = vor.u32 %v147_v1, %v132_v0  ;;  %v134_v4 = vld [vmem:[%s228_s1 + $0x38] sm:$0xf0]  ;;  %v124_v5 = vld [vmem:[%s228_s1 + $0x20] sm:$0xf]  ;;  %v145_v6 = vld [vmem:[%s228_s1 + $0x24] sm:$0xf0] }
   0x3   :  { %v137_v7 = vor.u32 %v146_v2, %v134_v4  ;;  %v144_v8 = vld [vmem:[%s228_s1 + $0x24] sm:$0xf]  ;;  %v126_v9 = vld [vmem:[%s228_s1 + $0x28] sm:$0xf0]  ;;  %v125_v10 = vor.u32 %v145_v6, %v124_v5  ;;  %v116_v12 = vld [vmem:[%s228_s1 + $0x10] sm:$0xf] }
   0x4   :  { %78 = vmatpush.bf16.msra.mxu0 %v133_v3  ;;  %v129_v11 = vor.u32 %v144_v8, %v126_v9  ;;  %v143_v13 = vld [vmem:[%s228_s1 + $0x14] sm:$0xf0]  ;;  %v142_v14 = vld [vmem:[%s228_s1 + $0x14] sm:$0xf]  ;;  %v118_v15 = vld [vmem:[%s228_s1 + $0x18] sm:$0xf0] }
   0x5   :  { %91 = vmatpush.bf16.msra.mxu1 %v137_v7  ;;  %v117_v16 = vor.u32 %v143_v13, %v116_v12  ;;  %v121_v17 = vor.u32 %v142_v14, %v118_v15  ;;  %v108_v18 = vld [vmem:[%s228_s1] sm:$0xf]  ;;  %v141_v19 = vld [vmem:[%s228_s1 + $0x4] sm:$0xf0]  ;;  %v140_v20 = vld [vmem:[%s228_s1 + $0x4] sm:$0xf] }
   0x6   :  { %v110_v21 = vld [vmem:[%s228_s1 + $0x8] sm:$0xf0]  ;;  %v109_v22 = vor.u32 %v141_v19, %v108_v18  ;;  %v15_v24 = vld [vmem:[%s229_s0] sm:$0xf] }
   0x7   :  { %v113_v23 = vor.u32 %v140_v20, %v110_v21  ;;  %v24_v25 = vld [vmem:[%s230_s2] sm:$0x3] }
   0x8   :  { %79 = vmatpush.bf16.msra.mxu0 %v125_v10  ;;  %v26_v26 = vperm.slane %v24_v25, 0  ;;  %v27_v27 = vperm.slane %v24_v25, 1 }
   0x9   :  { %92 = vmatpush.bf16.msra.mxu1 %v129_v11 }
   0xc   :  { %80 = vmatpush.bf16.msra.mxu0 %v117_v16 }
   0xd   :  { %93 = vmatpush.bf16.msra.mxu1 %v121_v17 }
  0x10   :  { %81 = vmatpush.bf16.msra.mxu0 %v109_v22 }
  0x11   :  { %94 = vmatpush.bf16.msra.mxu1 %v113_v23 }
  0x13   :  { %138 = vmatmul.msk.bf16.vlgmr.msra.gmra.mxu0 %vm70_vm0, %v15_v24 }
  0x14   :  { %139 = vmatmul.msk.bf16.vlgmr.msra.gmra.mxu1 %vm70_vm0, %v15_v24 }
  0x90   :  { %v83_v28 = vpop.f32.mrf.mxu0 }
  0x91   :  { %v84_v29 = vadd.f32 %v83_v28, %v26_v26  ;;  %v96_v30 = vpop.f32.mrf.mxu1 }
  0x92   :  { %v97_v31 = vadd.f32 %v96_v30, %v27_v27 }
  0x93   :  { %100 = vst [vmem:[%s231_s3] sm:$0xff] %v84_v29 }
  0x94   :  { %101 = vst [vmem:[%s231_s3 + $0x8] sm:$0xff] %v97_v31 }
  0x98   :  { %v85_v32 = vpop.f32.mrf.mxu0 }
  0x99   :  { %v98_v33 = vpop.f32.mrf.mxu1 }

// kernel: las_forward.9
= control target key start
LH: loop header
LB: loop body
LE: loop exit
PB: predicated region body
PF: predicated region fallthrough
CT: control target
= control target key end

     0   :  { %vm14_vm0 = vcmask 516096   ;;  %vm19_vm1 = vcmask 523264   ;;  %v50_v0 = vmov 0.0   ;;  %s91_s0 = inlined_call_operand.vmem [shape: f32[8,64], index: 0, kind: input, shape index: {}]   ;;  %s92_s1 = inlined_call_operand.vmem [shape: f32[1,64], index: 1, kind: output, shape index: {0}]   ;;  %s93_s2 = inlined_call_operand.vmem [shape: f32[1,64], index: 2, kind: output, shape index: {1}]  }
   0x1   :  { %15 = vst.msk [vmem:[%s92_s1] sm:$0x1] %vm14_vm0, %v50_v0  ;;  %v17_v1 = vld [vmem:[%s91_s0] sm:$0xff] }
   0x2   :  { %v20_v2 = vsel %vm19_vm1, %v17_v1, 0.0  ;;  %16 = vst.msk [vmem:[%s93_s2] sm:$0x1] %vm14_vm0, %v50_v0  ;;  %v31_v3 = vmul.f32 %v17_v1, %v17_v1 }
   0x3   :  { %v21_v4 = vrot.slane %v20_v2, 4 }
   0x4   :  { %v32_v5 = vsel %vm19_vm1, %v31_v3, 0.0 }
   0x5   :  { %v22_v6 = vadd.f32 %v21_v4, %v20_v2  ;;  %v33_v7 = vrot.slane %v32_v5, 4 }
   0x7   :  { %v23_v8 = vrot.slane %v22_v6, 2  ;;  %v34_v9 = vadd.f32 %v33_v7, %v32_v5 }
   0x8   :  { %v18_v14 = vld [vmem:[%s92_s1] sm:$0x1] }
   0x9   :  { %v24_v10 = vadd.f32 %v23_v8, %v22_v6  ;;  %v35_v11 = vrot.slane %v34_v9, 2  ;;  %v30_v17 = vld [vmem:[%s93_s2] sm:$0x1] }
   0xb   :  { %v25_v12 = vrot.slane %v24_v10, 1  ;;  %v36_v13 = vadd.f32 %v35_v11, %v34_v9 }
   0xd   :  { %v26_v15 = vadd.f32 %v25_v12, %v24_v10  ;;  %v37_v16 = vrot.slane %v36_v13, 1 }
   0xf   :  { %v27_v18 = vadd.f32 %v26_v15, %v18_v14  ;;  %v38_v19 = vadd.f32 %v37_v16, %v36_v13 }
  0x11   :  { %29 = vst.msk [vmem:[%s92_s1] sm:$0x1] %vm14_vm0, %v27_v18  ;;  %v39_v20 = vadd.f32 %v38_v19, %v30_v17 }
  0x13   :  { %40 = vst.msk [vmem:[%s93_s2] sm:$0x1] %vm14_vm0, %v39_v20 }

// kernel: las_forward.8
= control target key start
LH: loop header
LB: loop body
LE: loop exit
PB: predicated region body
PF: predicated region fallthrough
CT: control target
= control target key end

     0   :  { %vm156_vm0 = vcmask 254976   ;;  %v893_v2 = vmov 0.0   ;;  %vm187_vm1 = vcmask 261120   ;;  %s895_s29 = smov 64   ;;  %s896_s19 = smov 96   ;;  %s1105_s0 = inlined_call_operand.vmem [shape: f32[4,2,256], index: 0, kind: input, shape index: {}, may-alias: {0,1}]   ;;  %s1106_s1 = inlined_call_operand.vmem [shape: f32[4,2,256], index: 1, kind: input, shape index: {}, may-alias: {0,1}]   ;;  %s1107_s2 = inlined_call_operand.vmem [shape: bf16[32,128], index: 2, kind: input, shape index: {}]   ;;  %s1108_s3 = inlined_call_operand.vmem [shape: bf16[32,128], index: 3, kind: input, shape index: {}]   ;;  %s1109_s4 = inlined_call_operand.vmem [shape: f32[4,2,32], index: 4, kind: output, shape index: {0}]   ;;  %s1110_s5 = inlined_call_operand.vmem [shape: f32[4,2,32], index: 5, kind: output, shape index: {1}]  }
   0x1   :  { %v822_v0 = vld [vmem:[%s1107_s2 + $0x8] sm:$0xff]  ;;  %157 = vst.msk [vmem:[#allocation2] sm:$0x3] %vm156_vm0, %v893_v2  ;;  %v821_v3 = vld [vmem:[%s1107_s2] sm:$0xff]  ;;  %s894_s2 = smov 32  }
   0x2   :  { %v824_v1 = vld [vmem:[%s1108_s3 + $0x8] sm:$0xff]  ;;  %197 = vmatpush.bf16.msra.mxu0 %v822_v0  ;;  %v823_v4 = vld [vmem:[%s1108_s3] sm:$0xff]  ;;  %158 = vst.msk [vmem:[#allocation3] sm:$0x3] %vm156_vm0, %v893_v2  ;;  %346 = vmatpush.bf16.msra.mxu2 %v822_v0 }
   0x3   :  { %276 = vmatpush.bf16.msra.mxu1 %v824_v1  ;;  %v29_v5 = vld [vmem:[%s1105_s0] sm:$0x3]  ;;  %159 = vst.msk [vmem:[#allocation4] sm:$0x3] %vm156_vm0, %v893_v2  ;;  %412 = vmatpush.bf16.msra.mxu3 %v824_v1  ;;  %v782_v12 = vld [vmem:[%s1106_s1 + $0xe] sm:$0x3] }
   0x4   :  { %160 = vst.msk [vmem:[#allocation5] sm:$0x3] %vm156_vm0, %v893_v2 }
   0x5   :  { %30 = vst [vmem:[#allocation6] sm:$0x3] %v29_v5 }
   0x6   :  { %198 = vmatpush.bf16.msra.mxu0 %v821_v3  ;;  %347 = vmatpush.bf16.msra.mxu2 %v821_v3  ;;  %97 = vst [vmem:[#allocation7 + $0x6] sm:$0x3] %v782_v12 }
   0x7   :  { %277 = vmatpush.bf16.msra.mxu1 %v823_v4  ;;  %413 = vmatpush.bf16.msra.mxu3 %v823_v4 }
   0x8   :  { %v169_v6 = vld [vmem:[#allocation2] sm:$0x3] }
   0x9   :  { %v174_v7 = vpack.c.bf16 %v169_v6, %v169_v6  ;;  %v170_v8 = vld [vmem:[#allocation3] sm:$0x3]  ;;  %v31_v6 = vld [vmem:[%s1105_s0 + $0x4] sm:$0x3] }
   0xa   :  { %478 = vmatpush.bf16.msrb.mxu0 %v822_v0  ;;  %610 = vmatpush.bf16.msrb.mxu2 %v822_v0  ;;  %v171_v9 = vld [vmem:[#allocation4] sm:$0x3]  ;;  %32 = vst [vmem:[#allocation6 + $0x2] sm:$0x3] %v31_v6 }
   0xb   :  { %544 = vmatpush.bf16.msrb.mxu1 %v824_v1  ;;  %675 = vmatpush.bf16.msrb.mxu3 %v824_v1  ;;  %v254_v10 = vpack.c.bf16 %v171_v9, %v171_v9  ;;  %v172_v11 = vld [vmem:[#allocation5] sm:$0x3] }
   0xc   :  { %226 = vrot.lane.b32.xlu1 %v170_v8, %s894_s2  ;;  %791 = vmatmul.msk.bf16.vlgmr.msra.gmra.mxu0 %vm187_vm1, %v174_v7  ;;  %v173_v13 = vld [vmem:[#allocation6] sm:$0x3]  ;;  %v781_v8 = vld [vmem:[%s1106_s1 + $0xa] sm:$0x3] }
   0xd   :  { %801 = vmatmul.msk.bf16.vlgmr.msra.gmra.mxu1 %vm187_vm1, %v254_v10  ;;  %v253_v17 = vld [vmem:[#allocation7 + $0x6] sm:$0x3]  ;;  %95 = vst [vmem:[#allocation7 + $0x4] sm:$0x3] %v781_v8 }
   0xe   :  { %479 = vmatpush.bf16.msrb.mxu0 %v821_v3  ;;  %611 = vmatpush.bf16.msrb.mxu2 %v821_v3 }
   0xf   :  { %545 = vmatpush.bf16.msrb.mxu1 %v823_v4  ;;  %676 = vmatpush.bf16.msrb.mxu3 %v823_v4 }
  0x11   :  { %v332_v9 = vld [vmem:[#allocation6 + $0x2] sm:$0x3] }
  0x14   :  { %305 = vrot.lane.b32.xlu1 %v172_v11, %s894_s2 }
  0x7e   :  { %v227_v53 = vpop.permute.xlu1 %226 }
  0x86   :  { %v306_v57 = vpop.permute.xlu1 %305 }
  0x89   :  { %v200_v14 = vpop.f32.mrf.mxu0 }
  0x8a   :  { %v204_v15 = vadd.f32 %v200_v14, %v173_v13  ;;  %v279_v16 = vpop.f32.mrf.mxu1  ;;  %v398_v14 = vld [vmem:[#allocation7 + $0x4] sm:$0x3] }
  0x8b   :  { %v283_v18 = vadd.f32 %v279_v16, %v253_v17 }
  0x8c   :  { %829 = vtanh.f32 %v204_v15  ;;  %v792_v23 = vmul.f32 -1.442695, %v204_v15 }
  0x8d   :  { %831 = vtanh.f32 %v283_v18  ;;  %v802_v24 = vmul.f32 -1.442695, %v283_v18 }
  0x8e   :  { %833 = vpow2.f32 %v792_v23 }
  0x8f   :  { %835 = vpow2.f32 %v802_v24 }
  0x91   :  { %v202_v19 = vpop.f32.mrf.mxu0 }
  0x92   :  { %v830_v20 = vpop.eup %829  ;;  %v281_v21 = vpop.f32.mrf.mxu1 }
  0x93   :  { %231 = vrot.lane.b32.xlu0 %v830_v20, %s895_s29  ;;  %v832_v22 = vpop.eup %831 }
  0x94   :  { %v834_v25 = vpop.eup %833 }
  0x95   :  { %v208_v26 = vadd.f32 1.0, %v834_v25  ;;  %v836_v27 = vpop.eup %835 }
  0x96   :  { %v287_v28 = vadd.f32 1.0, %v836_v27 }
  0x97   :  { %837 = vrcp.f32 %v208_v26  ;;  %v220_v37 = vand.u32 2147483648, %v208_v26  ;;  %vm214_vm3 = vweird.f32 %v208_v26  ;;  %v218_v38 = vand.u32 2147483647, %v208_v26 }
  0x98   :  { %839 = vrcp.f32 %v287_v28  ;;  %vm293_vm6 = vweird.f32 %v287_v28  ;;  %v299_v46 = vand.u32 2147483648, %v287_v28  ;;  %v297_v47 = vand.u32 2147483647, %v287_v28 }
  0x99   :  { %v221_v41 = vor.u32 1.1754944e-38, %v220_v37  ;;  %vm219_vm5 = vcmp.eq.f32.partialorder %v218_v38, 8.507059e+37 }
  0x9a   :  { %v300_v49 = vor.u32 1.1754944e-38, %v299_v46  ;;  %vm298_vm9 = vcmp.eq.f32.partialorder %v297_v47, 8.507059e+37 }
  0x9b   :  { %310 = vrot.lane.b32.xlu0 %v832_v22, %s895_s29 }
  0x9d   :  { %v838_v29 = vpop.eup %837 }
  0x9e   :  { %v210_v30 = vmul.f32 %v838_v29, %v208_v26  ;;  %v840_v32 = vpop.eup %839  ;;  %vm215_vm2 = vweird.f32 %v838_v29 }
  0x9f   :  { %v289_v34 = vmul.f32 %v840_v32, %v287_v28  ;;  %vm216_vm4 = vmor %vm214_vm3, %vm215_vm2  ;;  %vm294_vm7 = vweird.f32 %v840_v32 }
  0xa0   :  { %v211_v31 = vsub.f32 1.0, %v210_v30  ;;  %vm295_vm8 = vmor %vm293_vm6, %vm294_vm7 }
  0xa1   :  { %v290_v36 = vsub.f32 1.0, %v289_v34 }
  0xa2   :  { %v212_v33 = vmul.f32 %v838_v29, %v211_v31 }
  0xa3   :  { %v291_v40 = vmul.f32 %v840_v32, %v290_v36 }
  0xa4   :  { %v213_v35 = vadd.f32 %v838_v29, %v212_v33 }
  0xa5   :  { %v292_v44 = vadd.f32 %v840_v32, %v291_v40 }
  0xa6   :  { %v217_v39 = vsel %vm216_vm4, %v838_v29, %v213_v35 }
  0xa7   :  { %v222_v42 = vsel %vm219_vm5, %v221_v41, %v217_v39  ;;  %v296_v48 = vsel %vm295_vm8, %v840_v32, %v292_v44 }
  0xa8   :  { %v301_v50 = vsel %vm298_vm9, %v300_v49, %v296_v48  ;;  %v229_v54 = vmul.f32 %v227_v53, %v222_v42 }
  0xa9   :  { %v308_v58 = vmul.f32 %v306_v57, %v301_v50 }
 0x105   :  { %v232_v43 = vpop.permute.xlu0 %231 }
 0x106   :  { %v234_v45 = vmul.f32 %v232_v43, %v222_v42 }
 0x108   :  { %236 = vrot.lane.b32.xlu2 %v234_v45, %s894_s2 }
 0x10d   :  { %v311_v51 = vpop.permute.xlu0 %310 }
 0x10e   :  { %v313_v52 = vmul.f32 %v311_v51, %v301_v50 }
 0x110   :  { %315 = vrot.lane.b32.xlu2 %v313_v52, %s894_s2 }
 0x162   :  { %v237_v55 = vpop.permute.xlu2 %236 }
 0x163   :  { %v957_v56 = vadd.f32 %v237_v55, %v229_v54 }
 0x165   :  { %841 = vtanh.f32 %v957_v56 }
 0x16a   :  { %v316_v59 = vpop.permute.xlu2 %315 }
 0x16b   :  { %v842_v60 = vpop.eup %841  ;;  %v960_v61 = vadd.f32 %v316_v59, %v308_v58 }
 0x16c   :  { %242 = vrot.lane.b32.xlu0 %v842_v60, %s895_s29 }
 0x16d   :  { %843 = vtanh.f32 %v960_v61 }
 0x173   :  { %v844_v62 = vpop.eup %843 }
 0x174   :  { %321 = vrot.lane.b32.xlu1 %v844_v62, %s895_s29 }
 0x1de   :  { %v243_v63 = vpop.permute.xlu0 %242 }
 0x1df   :  { %v965_v0 = vmul.f32 %v243_v63, %v222_v42  ;;  %v33_v63 = vld [vmem:[%s1105_s0 + $0x8] sm:$0x3] }
 0x1e0   :  { %34 = vst [vmem:[#allocation6 + $0x4] sm:$0x3] %v33_v63 }
 0x1e1   :  { %v333_v1 = vpack.c.bf16 %v965_v0, %v965_v0 }
 0x1e3   :  { %335 = vrot.lane.b32.xlu2 %v333_v1, %s894_s2 }
 0x1e6   :  { %v322_v2 = vpop.permute.xlu1 %321 }
 0x1e7   :  { %v970_v3 = vmul.f32 %v322_v2, %v301_v50 }
 0x1e9   :  { %v399_v4 = vpack.c.bf16 %v970_v3, %v970_v3 }
 0x1eb   :  { %401 = vrot.lane.b32.xlu0 %v399_v4, %s894_s2  ;;  %v780_v4 = vld [vmem:[%s1106_s1 + $0x6] sm:$0x3] }
 0x1ec   :  { %93 = vst [vmem:[#allocation7 + $0x2] sm:$0x3] %v780_v4 }
 0x1f3   :  { %v530_v8 = vld [vmem:[#allocation7 + $0x2] sm:$0x3] }
 0x23d   :  { %v336_v5 = vpop.permute.xlu2 %335 }
 0x23e   :  { %804 = vmatmul.msk.bf16.vlgmr.msra.gmra.mxu2 %vm187_vm1, %v336_v5  ;;  %v464_v5 = vld [vmem:[#allocation6 + $0x4] sm:$0x3] }
 0x25d   :  { %v402_v7 = vpop.permute.xlu0 %401 }
 0x25e   :  { %807 = vmatmul.msk.bf16.vlgmr.msra.gmra.mxu3 %vm187_vm1, %v402_v7 }
 0x2c1   :  { %v349_v10 = vpop.f32.mrf.mxu2 }
 0x2c2   :  { %v353_v11 = vadd.f32 %v349_v10, %v332_v9 }
 0x2c4   :  { %845 = vtanh.f32 %v353_v11  ;;  %v805_v19 = vmul.f32 -1.442695, %v353_v11 }
 0x2c9   :  { %v351_v12 = vpop.f32.mrf.mxu2 }
 0x2ca   :  { %v846_v13 = vpop.eup %845 }
 0x2cb   :  { %376 = vrot.lane.b32.xlu1 %v846_v13, %s895_s29 }
 0x2e1   :  { %v415_v15 = vpop.f32.mrf.mxu3 }
 0x2e2   :  { %v419_v16 = vadd.f32 %v415_v15, %v398_v14 }
 0x2e4   :  { %847 = vtanh.f32 %v419_v16  ;;  %v808_v20 = vmul.f32 -1.442695, %v419_v16 }
 0x2e5   :  { %849 = vpow2.f32 %v805_v19 }
 0x2e6   :  { %851 = vpow2.f32 %v808_v20 }
 0x2e9   :  { %v417_v17 = vpop.f32.mrf.mxu3 }
 0x2ea   :  { %v848_v18 = vpop.eup %847 }
 0x2eb   :  { %442 = vrot.lane.b32.xlu2 %v848_v18, %s895_s29  ;;  %v850_v21 = vpop.eup %849 }
 0x2ec   :  { %v357_v22 = vadd.f32 1.0, %v850_v21  ;;  %v852_v23 = vpop.eup %851 }
 0x2ed   :  { %v423_v24 = vadd.f32 1.0, %v852_v23 }
 0x2ee   :  { %853 = vrcp.f32 %v357_v22  ;;  %v369_v33 = vand.u32 2147483648, %v357_v22  ;;  %vm363_vm11 = vweird.f32 %v357_v22  ;;  %v367_v34 = vand.u32 2147483647, %v357_v22 }
 0x2ef   :  { %855 = vrcp.f32 %v423_v24  ;;  %v435_v42 = vand.u32 2147483648, %v423_v24  ;;  %vm429_vm15 = vweird.f32 %v423_v24  ;;  %v433_v43 = vand.u32 2147483647, %v423_v24 }
 0x2f0   :  { %v370_v37 = vor.u32 1.1754944e-38, %v369_v33  ;;  %vm368_vm13 = vcmp.eq.f32.partialorder %v367_v34, 8.507059e+37 }
 0x2f1   :  { %v436_v45 = vor.u32 1.1754944e-38, %v435_v42  ;;  %vm434_vm3 = vcmp.eq.f32.partialorder %v433_v43, 8.507059e+37 }
 0x2f4   :  { %v854_v25 = vpop.eup %853 }
 0x2f5   :  { %v359_v26 = vmul.f32 %v854_v25, %v357_v22  ;;  %v856_v28 = vpop.eup %855  ;;  %vm364_vm10 = vweird.f32 %v854_v25 }
 0x2f6   :  { %v425_v30 = vmul.f32 %v856_v28, %v423_v24  ;;  %vm365_vm12 = vmor %vm363_vm11, %vm364_vm10  ;;  %vm430_vm14 = vweird.f32 %v856_v28 }
 0x2f7   :  { %v360_v27 = vsub.f32 1.0, %v359_v26  ;;  %vm431_vm2 = vmor %vm429_vm15, %vm430_vm14 }
 0x2f8   :  { %v426_v32 = vsub.f32 1.0, %v425_v30 }
 0x2f9   :  { %v361_v29 = vmul.f32 %v854_v25, %v360_v27 }
 0x2fa   :  { %v427_v36 = vmul.f32 %v856_v28, %v426_v32 }
 0x2fb   :  { %v362_v31 = vadd.f32 %v854_v25, %v361_v29 }
 0x2fc   :  { %v428_v41 = vadd.f32 %v856_v28, %v427_v36 }
 0x2fd   :  { %v366_v35 = vsel %vm365_vm12, %v854_v25, %v362_v31 }
 0x2fe   :  { %v371_v39 = vsel %vm368_vm13, %v370_v37, %v366_v35  ;;  %v432_v44 = vsel %vm431_vm2, %v856_v28, %v428_v41 }
 0x2ff   :  { %v437_v47 = vsel %vm434_vm3, %v436_v45, %v432_v44  ;;  %v374_v49 = vmul.f32 %v371_v39, %v957_v56 }
 0x300   :  { %v440_v52 = vmul.f32 %v437_v47, %v960_v61 }
 0x33d   :  { %v377_v38 = vpop.permute.xlu1 %376 }
 0x33e   :  { %v379_v40 = vmul.f32 %v377_v38, %v371_v39 }
 0x340   :  { %381 = vrot.lane.b32.xlu0 %v379_v40, %s894_s2 }
 0x345   :  { %v443_v46 = vpop.permute.xlu2 %442 }
 0x346   :  { %v445_v48 = vmul.f32 %v443_v46, %v437_v47 }
 0x348   :  { %447 = vrot.lane.b32.xlu1 %v445_v48, %s894_s2 }
 0x3b2   :  { %v382_v50 = vpop.permute.xlu0 %381 }
 0x3b3   :  { %v988_v51 = vadd.f32 %v382_v50, %v374_v49 }
 0x3b5   :  { %857 = vtanh.f32 %v988_v51 }
 0x3ba   :  { %v448_v53 = vpop.permute.xlu1 %447 }
 0x3bb   :  { %v858_v54 = vpop.eup %857  ;;  %v992_v55 = vadd.f32 %v448_v53, %v440_v52 }
 0x3bc   :  { %387 = vrot.lane.b32.xlu2 %v858_v54, %s895_s29 }
 0x3bd   :  { %859 = vtanh.f32 %v992_v55 }
 0x3c3   :  { %v860_v57 = vpop.eup %859 }
 0x3c4   :  { %453 = vrot.lane.b32.xlu0 %v860_v57, %s895_s29 }
 0x416   :  { %v388_v58 = vpop.permute.xlu2 %387 }
 0x417   :  { %v997_v56 = vmul.f32 %v388_v58, %v371_v39 }
 0x419   :  { %v465_v59 = vpack.c.bf16 %v997_v56, %v997_v56 }
 0x41b   :  { %467 = vrot.lane.b32.xlu1 %v465_v59, %s894_s2 }
 0x436   :  { %v454_v60 = vpop.permute.xlu0 %453 }
 0x437   :  { %v1002_v61 = vmul.f32 %v454_v60, %v437_v47  ;;  %v35_v60 = vld [vmem:[%s1105_s0 + $0xc] sm:$0x3] }
 0x438   :  { %36 = vst [vmem:[#allocation6 + $0x6] sm:$0x3] %v35_v60 }
 0x439   :  { %v531_v62 = vpack.c.bf16 %v1002_v61, %v1002_v61 }
 0x43b   :  { %533 = vrot.lane.b32.xlu2 %v531_v62, %s894_s2 }
 0x48d   :  { %v468_v1 = vpop.permute.xlu1 %467 }
 0x48e   :  { %810 = vmatmul.msk.bf16.vlgmr.msrb.gmra.mxu0 %vm187_vm1, %v468_v1  ;;  %v779_v1 = vld [vmem:[%s1106_s1 + $0x2] sm:$0x3] }
 0x48f   :  { %91 = vst [vmem:[#allocation7] sm:$0x3] %v779_v1 }
 0x495   :  { %v534_v2 = vpop.permute.xlu2 %533 }
 0x496   :  { %813 = vmatmul.msk.bf16.vlgmr.msrb.gmra.mxu1 %vm187_vm1, %v534_v2  ;;  %v596_v2 = vld [vmem:[#allocation6 + $0x6] sm:$0x3] }
 0x50b   :  { %v481_v6 = vpop.f32.mrf.mxu0 }
 0x50c   :  { %v485_v7 = vadd.f32 %v481_v6, %v464_v5  ;;  %v661_v6 = vld [vmem:[#allocation7] sm:$0x3] }
 0x50e   :  { %861 = vtanh.f32 %v485_v7  ;;  %v811_v15 = vmul.f32 -1.442695, %v485_v7 }
 0x513   :  { %v483_v9 = vpop.f32.mrf.mxu0  ;;  %v547_v10 = vpop.f32.mrf.mxu1 }
 0x514   :  { %v862_v11 = vpop.eup %861  ;;  %v551_v12 = vadd.f32 %v547_v10, %v530_v8 }
 0x515   :  { %508 = vrot.lane.b32.xlu0 %v862_v11, %s895_s29 }
 0x516   :  { %863 = vtanh.f32 %v551_v12  ;;  %v814_v16 = vmul.f32 -1.442695, %v551_v12 }
 0x517   :  { %865 = vpow2.f32 %v811_v15 }
 0x518   :  { %867 = vpow2.f32 %v814_v16 }
 0x51b   :  { %v549_v13 = vpop.f32.mrf.mxu1 }
 0x51c   :  { %v864_v14 = vpop.eup %863 }
 0x51d   :  { %574 = vrot.lane.b32.xlu1 %v864_v14, %s895_s29  ;;  %v866_v17 = vpop.eup %865 }
 0x51e   :  { %v489_v18 = vadd.f32 1.0, %v866_v17  ;;  %v868_v19 = vpop.eup %867 }
 0x51f   :  { %v555_v20 = vadd.f32 1.0, %v868_v19 }
 0x520   :  { %869 = vrcp.f32 %v489_v18  ;;  %v501_v29 = vand.u32 2147483648, %v489_v18  ;;  %vm495_vm5 = vweird.f32 %v489_v18  ;;  %v499_v30 = vand.u32 2147483647, %v489_v18 }
 0x521   :  { %871 = vrcp.f32 %v555_v20  ;;  %v567_v38 = vand.u32 2147483648, %v555_v20  ;;  %vm561_vm9 = vweird.f32 %v555_v20  ;;  %v565_v39 = vand.u32 2147483647, %v555_v20 }
 0x522   :  { %v502_v33 = vor.u32 1.1754944e-38, %v501_v29  ;;  %vm500_vm7 = vcmp.eq.f32.partialorder %v499_v30, 8.507059e+37 }
 0x523   :  { %v568_v41 = vor.u32 1.1754944e-38, %v567_v38  ;;  %vm566_vm11 = vcmp.eq.f32.partialorder %v565_v39, 8.507059e+37 }
 0x526   :  { %v870_v21 = vpop.eup %869 }
 0x527   :  { %v491_v22 = vmul.f32 %v870_v21, %v489_v18  ;;  %v872_v24 = vpop.eup %871  ;;  %vm496_vm4 = vweird.f32 %v870_v21 }
 0x528   :  { %v557_v26 = vmul.f32 %v872_v24, %v555_v20  ;;  %vm497_vm6 = vmor %vm495_vm5, %vm496_vm4  ;;  %vm562_vm8 = vweird.f32 %v872_v24 }
 0x529   :  { %v492_v23 = vsub.f32 1.0, %v491_v22  ;;  %vm563_vm10 = vmor %vm561_vm9, %vm562_vm8 }
 0x52a   :  { %v558_v28 = vsub.f32 1.0, %v557_v26 }
 0x52b   :  { %v493_v25 = vmul.f32 %v870_v21, %v492_v23 }
 0x52c   :  { %v559_v32 = vmul.f32 %v872_v24, %v558_v28 }
 0x52d   :  { %v494_v27 = vadd.f32 %v870_v21, %v493_v25 }
 0x52e   :  { %v560_v37 = vadd.f32 %v872_v24, %v559_v32 }
 0x52f   :  { %v498_v31 = vsel %vm497_vm6, %v870_v21, %v494_v27 }
 0x530   :  { %v503_v34 = vsel %vm500_vm7, %v502_v33, %v498_v31  ;;  %v564_v40 = vsel %vm563_vm10, %v872_v24, %v560_v37 }
 0x531   :  { %v569_v43 = vsel %vm566_vm11, %v568_v41, %v564_v40  ;;  %v506_v45 = vmul.f32 %v503_v34, %v988_v51 }
 0x532   :  { %v572_v49 = vmul.f32 %v569_v43, %v992_v55 }
 0x587   :  { %v509_v35 = vpop.permute.xlu0 %508 }
 0x588   :  { %v511_v36 = vmul.f32 %v509_v35, %v503_v34 }
 0x58a   :  { %513 = vrot.lane.b32.xlu2 %v511_v36, %s894_s2 }
 0x58f   :  { %v575_v42 = vpop.permute.xlu1 %574 }
 0x590   :  { %v577_v44 = vmul.f32 %v575_v42, %v569_v43 }
 0x592   :  { %579 = vrot.lane.b32.xlu0 %v577_v44, %s894_s2 }
 0x5e4   :  { %v514_v46 = vpop.permute.xlu2 %513 }
 0x5e5   :  { %v1020_v47 = vadd.f32 %v514_v46, %v506_v45 }
 0x5e7   :  { %873 = vtanh.f32 %v1020_v47 }
 0x5ed   :  { %v874_v48 = vpop.eup %873 }
 0x5ee   :  { %519 = vrot.lane.b32.xlu1 %v874_v48, %s895_s29 }
 0x604   :  { %v580_v50 = vpop.permute.xlu0 %579 }
 0x605   :  { %v1025_v52 = vadd.f32 %v580_v50, %v572_v49 }
 0x607   :  { %875 = vtanh.f32 %v1025_v52 }
 0x60d   :  { %v876_v53 = vpop.eup %875 }
 0x60e   :  { %585 = vrot.lane.b32.xlu2 %v876_v53, %s895_s29 }
 0x660   :  { %v520_v54 = vpop.permute.xlu1 %519 }
 0x661   :  { %v1029_v51 = vmul.f32 %v520_v54, %v503_v34 }
 0x663   :  { %v597_v57 = vpack.c.bf16 %v1029_v51, %v1029_v51 }
 0x665   :  { %599 = vrot.lane.b32.xlu0 %v597_v57, %s894_s2 }
 0x668   :  { %v586_v58 = vpop.permute.xlu2 %585 }
 0x669   :  { %v1034_v59 = vmul.f32 %v586_v58, %v569_v43 }
 0x66b   :  { %v662_v55 = vpack.c.bf16 %v1034_v59, %v1034_v59 }
 0x66d   :  { %664 = vrot.lane.b32.xlu1 %v662_v55, %s894_s2 }
 0x6d7   :  { %v600_v62 = vpop.permute.xlu0 %599 }
 0x6d8   :  { %816 = vmatmul.msk.bf16.vlgmr.msrb.gmra.mxu2 %vm187_vm1, %v600_v62 }
 0x6df   :  { %v665_v63 = vpop.permute.xlu1 %664 }
 0x6e0   :  { %819 = vmatmul.msk.bf16.vlgmr.msrb.gmra.mxu3 %vm187_vm1, %v665_v63 }
 0x75b   :  { %v613_v4 = vpop.f32.mrf.mxu2 }
 0x75c   :  { %v617_v5 = vadd.f32 %v613_v4, %v596_v2 }
 0x75e   :  { %877 = vtanh.f32 %v617_v5  ;;  %v817_v13 = vmul.f32 -1.442695, %v617_v5 }
 0x763   :  { %v615_v7 = vpop.f32.mrf.mxu2  ;;  %v678_v8 = vpop.f32.mrf.mxu3 }
 0x764   :  { %v878_v9 = vpop.eup %877  ;;  %v682_v10 = vadd.f32 %v678_v8, %v661_v6 }
 0x765   :  { %640 = vrot.lane.b32.xlu2 %v878_v9, %s895_s29 }
 0x766   :  { %879 = vtanh.f32 %v682_v10  ;;  %v820_v19 = vmul.f32 -1.442695, %v682_v10 }
 0x767   :  { %881 = vpow2.f32 %v817_v13 }
 0x76b   :  { %v680_v11 = vpop.f32.mrf.mxu3 }
 0x76c   :  { %v880_v12 = vpop.eup %879 }
 0x76d   :  { %705 = vrot.lane.b32.xlu0 %v880_v12, %s895_s29  ;;  %v882_v14 = vpop.eup %881 }
 0x76e   :  { %v621_v15 = vadd.f32 1.0, %v882_v14 }
 0x770   :  { %883 = vrcp.f32 %v621_v15  ;;  %v633_v22 = vand.u32 2147483648, %v621_v15  ;;  %vm627_vm12 = vweird.f32 %v621_v15  ;;  %v631_v23 = vand.u32 2147483647, %v621_v15 }
 0x771   :  { %885 = vpow2.f32 %v820_v19 }
 0x772   :  { %v634_v26 = vor.u32 1.1754944e-38, %v633_v22  ;;  %vm632_vm14 = vcmp.eq.f32.partialorder %v631_v23, 8.507059e+37 }
 0x776   :  { %v884_v16 = vpop.eup %883 }
 0x777   :  { %v623_v17 = vmul.f32 %v884_v16, %v621_v15  ;;  %vm628_vm1 = vweird.f32 %v884_v16  ;;  %v886_v24 = vpop.eup %885 }
 0x778   :  { %vm629_vm13 = vmor %vm627_vm12, %vm628_vm1  ;;  %v686_v27 = vadd.f32 1.0, %v886_v24 }
 0x779   :  { %v624_v18 = vsub.f32 1.0, %v623_v17 }
 0x77a   :  { %887 = vrcp.f32 %v686_v27  ;;  %v698_v36 = vand.u32 2147483648, %v686_v27  ;;  %vm692_vm2 = vweird.f32 %v686_v27  ;;  %v696_v37 = vand.u32 2147483647, %v686_v27 }
 0x77b   :  { %v625_v20 = vmul.f32 %v884_v16, %v624_v18 }
 0x77c   :  { %v699_v39 = vor.u32 1.1754944e-38, %v698_v36  ;;  %vm697_vm4 = vcmp.eq.f32.partialorder %v696_v37, 8.507059e+37 }
 0x77d   :  { %v626_v21 = vadd.f32 %v884_v16, %v625_v20 }
 0x77f   :  { %v630_v25 = vsel %vm629_vm13, %v884_v16, %v626_v21 }
 0x780   :  { %v635_v29 = vsel %vm632_vm14, %v634_v26, %v630_v25  ;;  %v888_v31 = vpop.eup %887 }
 0x781   :  { %v688_v32 = vmul.f32 %v888_v31, %v686_v27  ;;  %vm693_vm15 = vweird.f32 %v888_v31  ;;  %v638_v43 = vmul.f32 %v635_v29, %v1020_v47 }
 0x782   :  { %vm694_vm3 = vmor %vm692_vm2, %vm693_vm15 }
 0x783   :  { %v689_v33 = vsub.f32 1.0, %v688_v32 }
 0x785   :  { %v690_v34 = vmul.f32 %v888_v31, %v689_v33 }
 0x787   :  { %v691_v35 = vadd.f32 %v888_v31, %v690_v34 }
 0x789   :  { %v695_v38 = vsel %vm694_vm3, %v888_v31, %v691_v35 }
 0x78a   :  { %v700_v40 = vsel %vm697_vm4, %v699_v39, %v695_v38 }
 0x78b   :  { %v703_v46 = vmul.f32 %v700_v40, %v1025_v52 }
 0x7bf   :  { %v641_v28 = vpop.permute.xlu2 %640 }
 0x7c0   :  { %v643_v30 = vmul.f32 %v641_v28, %v635_v29 }
 0x7c2   :  { %645 = vrot.lane.b32.xlu1 %v643_v30, %s894_s2 }
 0x7df   :  { %v706_v41 = vpop.permute.xlu0 %705 }
 0x7e0   :  { %v708_v42 = vmul.f32 %v706_v41, %v700_v40 }
 0x7e2   :  { %710 = vrot.lane.b32.xlu2 %v708_v42, %s894_s2 }
 0x7ea   :  { %247 = vrot.lane.b32.xlu2 %v965_v0, %s894_s2 }
 0x7f2   :  { %458 = vrot.lane.b32.xlu2 %v1002_v61, %s894_s2 }
 0x834   :  { %v646_v44 = vpop.permute.xlu1 %645 }
 0x835   :  { %v648_v45 = vadd.f32 %v646_v44, %v638_v43 }
 0x837   :  { %889 = vtanh.f32 %v648_v45 }
 0x83c   :  { %v711_v48 = vpop.permute.xlu2 %710 }
 0x83d   :  { %v890_v49 = vpop.eup %889  ;;  %v713_v50 = vadd.f32 %v711_v48, %v703_v46 }
 0x83e   :  { %651 = vrot.lane.b32.xlu0 %v890_v49, %s895_s29 }
 0x83f   :  { %891 = vtanh.f32 %v713_v50 }
 0x844   :  { %v248_v53 = vpop.permute.xlu2 %247 }
 0x845   :  { %v892_v54 = vpop.eup %891  ;;  %251 = vst.msk [vmem:[%s1109_s4] sm:$0x3] %vm156_vm0, %v248_v53 }
 0x846   :  { %326 = vrot.lane.b32.xlu0 %v970_v3, %s894_s2  ;;  %716 = vrot.lane.b32.xlu1 %v892_v54, %s895_s29 }
 0x84c   :  { %v459_v0 = vpop.permute.xlu2 %458 }
 0x84d   :  { %809 = vst.msk [vmem:[%s1110_s5 + $0x4] sm:$0x3] %vm156_vm0, %v459_v0 }
 0x84e   :  { %524 = vrot.lane.b32.xlu0 %v1029_v51, %s894_s2  ;;  %392 = vrot.lane.b32.xlu1 %v997_v56, %s894_s2 }
 0x856   :  { %590 = vrot.lane.b32.xlu1 %v1034_v59, %s894_s2 }
 0x85e   :  { %727 = vrot.lane.b32.xlu1 %v648_v45, %s896_s19 }
 0x8b0   :  { %v652_v3 = vpop.permute.xlu0 %651 }
 0x8b1   :  { %v654_v61 = vmul.f32 %v652_v3, %v635_v29 }
 0x8b3   :  { %656 = vrot.lane.b32.xlu2 %v654_v61, %s894_s2 }
 0x8b8   :  { %v717_v47 = vpop.permute.xlu1 %716  ;;  %v327_v52 = vpop.permute.xlu0 %326 }
 0x8b9   :  { %v719_v57 = vmul.f32 %v717_v47, %v700_v40  ;;  %803 = vst.msk [vmem:[%s1110_s5 + $0x6] sm:$0x3] %vm156_vm0, %v327_v52 }
 0x8bb   :  { %721 = vrot.lane.b32.xlu0 %v719_v57, %s894_s2  ;;  %733 = vrot.lane.b32.xlu2 %v713_v50, %s896_s19 }
 0x8c0   :  { %v393_v56 = vpop.permute.xlu1 %392  ;;  %v525_v51 = vpop.permute.xlu0 %524 }
 0x8c1   :  { %806 = vst.msk [vmem:[%s1109_s4 + $0x2] sm:$0x3] %vm156_vm0, %v393_v56 }
 0x8c2   :  { %812 = vst.msk [vmem:[%s1109_s4 + $0x4] sm:$0x3] %vm156_vm0, %v525_v51 }
 0x8c8   :  { %v591_v58 = vpop.permute.xlu1 %590 }
 0x8c9   :  { %815 = vst.msk [vmem:[%s1110_s5 + $0x2] sm:$0x3] %vm156_vm0, %v591_v58 }
 0x8d0   :  { %v728_v59 = vpop.permute.xlu1 %727 }
 0x8d1   :  { %730 = vst.msk [vmem:[#allocation3] sm:$0x3] %vm156_vm0, %v728_v59 }
 0x90d   :  { %v657_v55 = vpop.permute.xlu2 %656 }
 0x90e   :  { %818 = vst.msk [vmem:[%s1109_s4 + $0x6] sm:$0x3] %vm156_vm0, %v657_v55 }
 0x90f   :  { %725 = vst.msk [vmem:[#allocation2] sm:$0x3] %vm156_vm0, %v657_v55 }
 0x915   :  { %v734_v60 = vpop.permute.xlu2 %733 }
 0x916   :  { %736 = vst.msk [vmem:[#allocation5] sm:$0x3] %vm156_vm0, %v734_v60 }
 0x92d   :  { %v722_v62 = vpop.permute.xlu0 %721 }
 0x92e   :  { %724 = vst.msk [vmem:[%s1110_s5] sm:$0x3] %vm156_vm0, %v722_v62 }
 0x92f   :  { %731 = vst.msk [vmem:[#allocation4] sm:$0x3] %vm156_vm0, %v722_v62 }

// kernel: las_forward.10
= control target key start
LH: loop header
LB: loop body
LE: loop exit
PB: predicated region body
PF: predicated region fallthrough
CT: control target
= control target key end

     0   :  { %vm25_vm0 = vcmask 523264   ;;  %s65_s0 = inlined_call_operand.vmem [shape: f32[8,64], index: 0, kind: input, shape index: {}]   ;;  %s66_s1 = inlined_call_operand.vmem [shape: f32[1,64], index: 1, kind: input, shape index: {}]   ;;  %s67_s2 = inlined_call_operand.vmem [shape: f32[1,64], index: 2, kind: input, shape index: {}]   ;;  %s68_s3 = inlined_call_operand.vmem [shape: f32[8,64], index: 3, kind: output, shape index: {}]  }
   0x1   :  { %v14_v0 = vld [vmem:[%s65_s0] sm:$0xff] }
   0x2   :  { %v31_v1 = vld [vmem:[%s66_s1] ss:$0 sm:$0xff] }
   0x3   :  { %v32_v2 = vld [vmem:[%s67_s2] ss:$0 sm:$0xff]  ;;  %v19_v3 = vmul.f32 %v31_v1, %v14_v0 }
   0x5   :  { %v24_v4 = vadd.f32 %v32_v2, %v19_v3 }
   0x7   :  { %26 = vst.msk [vmem:[%s68_s3] sm:$0xff] %vm25_vm0, %v24_v4 }

// kernel: las_forward.13
= control target key start
LH: loop header
LB: loop body
LE: loop exit
PB: predicated region body
PF: predicated region fallthrough
CT: control target
= control target key end

     0   :  { %s2752_s17 = smov 0   ;;  %s3694_s0 = inlined_call_operand.vmem [shape: bf16[2,128,64], index: 0, kind: input, shape index: {}]   ;;  %s3695_s1 = inlined_call_operand.vmem [shape: f32[2,80], index: 1, kind: input, shape index: {}]   ;;  %s3696_s2 = inlined_call_operand.vmem [shape: bf16[12,16], index: 2, kind: input, shape index: {}]   ;;  %s3697_s3 = inlined_call_operand.vmem [shape: bf16[80,256], index: 3, kind: input, shape index: {}]   ;;  %s3698_s4 = inlined_call_operand.vmem [shape: bf16[64,256], index: 4, kind: input, shape index: {}]   ;;  %s3699_s5 = inlined_call_operand.vmem [shape: f32[1,256], index: 5, kind: input, shape index: {}]   ;;  %s3700_s6 = inlined_call_operand.vmem [shape: bf16[128,512], index: 6, kind: input, shape index: {}]   ;;  %s3701_s7 = inlined_call_operand.vmem [shape: f32[1,512], index: 7, kind: input, shape index: {}]   ;;  %s3702_s8 = inlined_call_operand.vmem [shape: bf16[512,128], index: 8, kind: input, shape index: {}]   ;;  %s3703_s9 = inlined_call_operand.vmem [shape: f32[1,128], index: 9, kind: input, shape index: {}]   ;;  %s3704_s10 = inlined_call_operand.vmem [shape: f32[4,2,128], index: 10, kind: output, shape index: {0}]   ;;  %s3705_s11 = inlined_call_operand.vmem [shape: f32[4,2,128], index: 11, kind: output, shape index: {1}]  }
   0x1 LB: > { %s2090_s18 = sadd.s32 4294967295, %s2686_s17   ;;  %p2093_p0 = scmp.ge.s32.totalorder %s2686_s17, 1  ;;  %s2686_s17 = sphi %s2752_s17, %s22_s17  }
   0x2   : > { %p330_p1 = scmp.lt.s32.totalorder %s2686_s17, 5 }
   0x4   : > { %p331_p2 = pnand %p2093_p0, %p330_p1 }
   0x5   : > { %p368_p3 = scmp.lt.s32.totalorder (!%p331_p2), %s2090_s18, 3  ;;  %p2096_p4 = scmp.ne.s32.totalorder (!%p331_p2), %s2090_s18, 0 }
   0x6   : > { %334 = sbr.rel (%p331_p2) target bundleno = 2512 (0x9d0), region = 60 }
   0xb   : > { %s369_s19 = scalar_select %p368_p3, %s2090_s18, 3 }
   0xc   : > { %380 = sbr.rel (%p2096_p4) target bundleno = 21 (0x15), region = 64 }
   0xd   : > { %s2094_s20 = sshll.u32 %s369_s19, 1 }
   0xe   : > { %s2763_s23 = scalar_lea.vmem %s3704_s10, %s2094_s20  ;;  %s2768_s26 = scalar_lea.vmem %s3705_s11, %s2094_s20 }
  0x11   : > { %vm381_vm0 = vcmask 516096   ;;  %v384_v0 = vld [vmem:[%s3695_s1] sm:$0x3]  ;;  %vm385_vm1 = vcmask 648192   ;;  %v2688_v1 = vmov 0.0  }
  0x12   : > { %382 = vst.msk [vmem:[#allocation2] sm:$0x1] %vm381_vm0, %v2688_v1 }
  0x13   : > { %383 = vst.msk [vmem:[#allocation3] sm:$0x1] %vm381_vm0, %v2688_v1 }
  0x14   : > { %386 = vst.msk [vmem:[#allocation4] sm:$0x3] %vm385_vm1, %v384_v0 }
  0x15 PF: > { %v2131_v2 = vld [vmem:[%s3697_s3 + $0x40] sm:$0xf]  ;;  %v2452_v3 = vld [vmem:[%s3697_s3 + $0x44] sm:$0xf0]  ;;  %v2165_v4 = vld [vmem:[%s3698_s4 + $0x30] sm:$0xf] }
  0x16   : > { %v2132_v5 = vor.u32 %v2452_v3, %v2131_v2  ;;  %v2460_v6 = vld [vmem:[%s3698_s4 + $0x34] sm:$0xf0]  ;;  %v2123_v7 = vld [vmem:[%s3697_s3 + $0x30] sm:$0xf]  ;;  %v2157_v10 = vld [vmem:[%s3698_s4 + $0x20] sm:$0xf] }
  0x17   : > { %v2450_v8 = vld [vmem:[%s3697_s3 + $0x34] sm:$0xf0]  ;;  %v2791_v9 = vor.u32 %v2460_v6, %v2165_v4  ;;  %v2458_v11 = vld [vmem:[%s3698_s4 + $0x24] sm:$0xf0]  ;;  %v2451_v13 = vld [vmem:[%s3697_s3 + $0x44] sm:$0xf] }
  0x18   : > { %462 = vmatpush.bf16.msra.mxu0 %v2132_v5  ;;  %v2124_v12 = vor.u32 %v2450_v8, %v2123_v7  ;;  %v2133_v14 = vld [vmem:[%s3697_s3 + $0x48] sm:$0xf0]  ;;  %v2806_v15 = vor.u32 %v2458_v11, %v2157_v10  ;;  %v2115_v16 = vld [vmem:[%s3697_s3 + $0x20] sm:$0xf]  ;;  %v2448_v17 = vld [vmem:[%s3697_s3 + $0x24] sm:$0xf0] }
  0x19   : > { %544 = vmatpush.bf16.msra.mxu2 %v2791_v9  ;;  %v2136_v18 = vor.u32 %v2451_v13, %v2133_v14  ;;  %v2459_v19 = vld [vmem:[%s3698_s4 + $0x34] sm:$0xf]  ;;  %v2149_v20 = vld [vmem:[%s3698_s4 + $0x10] sm:$0xf]  ;;  %v2456_v21 = vld [vmem:[%s3698_s4 + $0x14] sm:$0xf0]  ;;  %v2116_v26 = vor.u32 %v2448_v17, %v2115_v16 }
  0x1a   : > { %v2167_v22 = vld [vmem:[%s3698_s4 + $0x38] sm:$0xf0]  ;;  %v2449_v24 = vld [vmem:[%s3697_s3 + $0x34] sm:$0xf]  ;;  %v2457_v28 = vld [vmem:[%s3698_s4 + $0x24] sm:$0xf]  ;;  %v2150_v30 = vor.u32 %v2456_v21, %v2149_v20 }
  0x1b   : > { %475 = vmatpush.bf16.msra.mxu1 %v2136_v18  ;;  %v2170_v23 = vor.u32 %v2459_v19, %v2167_v22  ;;  %v2125_v25 = vld [vmem:[%s3697_s3 + $0x38] sm:$0xf0]  ;;  %v2159_v29 = vld [vmem:[%s3698_s4 + $0x28] sm:$0xf0]  ;;  %v2107_v31 = vld [vmem:[%s3697_s3 + $0x10] sm:$0xf] }
  0x1c   : > { %463 = vmatpush.bf16.msra.mxu0 %v2124_v12  ;;  %v2128_v27 = vor.u32 %v2449_v24, %v2125_v25  ;;  %v2446_v32 = vld [vmem:[%s3697_s3 + $0x14] sm:$0xf0]  ;;  %v2141_v33 = vld [vmem:[%s3698_s4] sm:$0xf]  ;;  %v2162_v34 = vor.u32 %v2457_v28, %v2159_v29  ;;  %v2454_v35 = vld [vmem:[%s3698_s4 + $0x4] sm:$0xf0] }
  0x1d   : > { %545 = vmatpush.bf16.msra.mxu2 %v2806_v15  ;;  %557 = vmatpush.bf16.msra.mxu3 %v2170_v23  ;;  %v2447_v36 = vld [vmem:[%s3697_s3 + $0x24] sm:$0xf]  ;;  %v2117_v37 = vld [vmem:[%s3697_s3 + $0x28] sm:$0xf0]  ;;  %v493_v38 = vld [vmem:[#allocation2] sm:$0x1]  ;;  %v2108_v42 = vor.u32 %v2446_v32, %v2107_v31  ;;  %v2142_v46 = vor.u32 %v2454_v35, %v2141_v33 }
  0x1e   : > { %v2120_v39 = vor.u32 %v2447_v36, %v2117_v37  ;;  %v2455_v40 = vld [vmem:[%s3698_s4 + $0x14] sm:$0xf]  ;;  %v2151_v41 = vld [vmem:[%s3698_s4 + $0x18] sm:$0xf0]  ;;  %v2099_v43 = vld [vmem:[%s3697_s3] sm:$0xf]  ;;  %v495_v53 = vpack.c.bf16 %v493_v38, %v493_v38 }
  0x1f   : > { %476 = vmatpush.bf16.msra.mxu1 %v2128_v27  ;;  %v2445_v44 = vld [vmem:[%s3697_s3 + $0x14] sm:$0xf]  ;;  %v2109_v45 = vld [vmem:[%s3697_s3 + $0x18] sm:$0xf0]  ;;  %v2444_v47 = vld [vmem:[%s3697_s3 + $0x4] sm:$0xf0]  ;;  %v2154_v48 = vor.u32 %v2455_v40, %v2151_v41 }
  0x20   : > { %464 = vmatpush.bf16.msra.mxu0 %v2116_v26  ;;  %v2453_v49 = vld [vmem:[%s3698_s4 + $0x4] sm:$0xf]  ;;  %v2143_v50 = vld [vmem:[%s3698_s4 + $0x8] sm:$0xf0]  ;;  %v2649_v51 = vld [vmem:[#allocation3] ss:$0 sm:$0xff]  ;;  %v2112_v52 = vor.u32 %v2445_v44, %v2109_v45  ;;  %v2100_v54 = vor.u32 %v2444_v47, %v2099_v43 }
  0x21   : > { %546 = vmatpush.bf16.msra.mxu2 %v2150_v30  ;;  %558 = vmatpush.bf16.msra.mxu3 %v2162_v34  ;;  %v387_v55 = vld [vmem:[#allocation4] sm:$0x3]  ;;  %v2443_v56 = vld [vmem:[%s3697_s3 + $0x4] sm:$0xf]  ;;  %v2101_v57 = vld [vmem:[%s3697_s3 + $0x8] sm:$0xf0]  ;;  %v2146_v58 = vor.u32 %v2453_v49, %v2143_v50 }
  0x22   : > { %s2689_s19 = smov 64   ;;  %vm536_vm2 = vcmask 523264   ;;  %v388_v59 = vpack.c.bf16 %v387_v55, %v387_v55  ;;  %v2104_v60 = vor.u32 %v2443_v56, %v2101_v57  ;;  %vm455_vm3 = vcmask 654336   ;;  %v399_v61 = vld [vmem:[%s3699_s5] sm:$0x3]  ;;  %s2690_s29 = smov 16  }
  0x23   : > { %477 = vmatpush.bf16.msra.mxu1 %v2120_v39  ;;  %609 = vrot.lane.b32.xlu0 %v2649_v51, %s2689_s19  ;;  %v401_v62 = vperm.slane %v399_v61, 0  ;;  %v402_v11 = vperm.slane %v399_v61, 1  ;;  %vm625_vm12 = vcmask 516096  }
  0x24   : > { %465 = vmatpush.bf16.msra.mxu0 %v2108_v42 }
  0x25   : > { %547 = vmatpush.bf16.msra.mxu2 %v2142_v46  ;;  %559 = vmatpush.bf16.msra.mxu3 %v2154_v48 }
  0x27   : > { %478 = vmatpush.bf16.msra.mxu1 %v2112_v52 }
  0x28   : > { %2171 = vmatmul.msk.bf16.vlgmr.msra.gmra.mxu2 %vm536_vm2, %v495_v53  ;;  %466 = vmatpush.bf16.msra.mxu0 %v2100_v54 }
  0x29   : > { %638 = vmatpush.bf16.msrb.mxu2 %v2791_v9  ;;  %560 = vmatpush.bf16.msra.mxu3 %v2146_v58 }
  0x2b   : > { %2137 = vmatmul.msk.bf16.vlgmr.msra.gmra.mxu0 %vm455_vm3, %v388_v59  ;;  %479 = vmatpush.bf16.msra.mxu1 %v2104_v60 }
  0x2c   : > { %2172 = vmatmul.msk.bf16.vlgmr.msra.gmra.mxu3 %vm536_vm2, %v495_v53 }
  0x2d   : > { %651 = vmatpush.bf16.msrb.mxu3 %v2170_v23  ;;  %639 = vmatpush.bf16.msrb.mxu2 %v2806_v15 }
  0x2e   : > { %2138 = vmatmul.msk.bf16.vlgmr.msra.gmra.mxu1 %vm455_vm3, %v388_v59 }
  0x31   : > { %652 = vmatpush.bf16.msrb.mxu3 %v2162_v34  ;;  %640 = vmatpush.bf16.msrb.mxu2 %v2150_v30 }
  0x35   : > { %653 = vmatpush.bf16.msrb.mxu3 %v2154_v48  ;;  %641 = vmatpush.bf16.msrb.mxu2 %v2142_v46 }
  0x39   : > { %654 = vmatpush.bf16.msrb.mxu3 %v2146_v58 }
  0x95   : > { %v610_v32 = vpop.permute.xlu0 %609 }
  0xa8   : > { %v468_v63 = vpop.f32.mrf.mxu0 }
  0xa9   : > { %v2895_v0 = vadd.f32 %v468_v63, %v401_v62 }
  0xab   : > { %v549_v1 = vpop.f32.mrf.mxu2  ;;  %v481_v2 = vpop.f32.mrf.mxu1 }
  0xac   : > { %v566_v3 = vadd.f32 %v549_v1, %v2895_v0  ;;  %v2898_v13 = vadd.f32 %v481_v2, %v402_v11 }
  0xae   : > { %v2173_v4 = vmul.f32 -1.442695, %v566_v3 }
  0xaf   : > { %v562_v5 = vpop.f32.mrf.mxu3 }
  0xb0   : > { %2651 = vpow2.f32 %v2173_v4  ;;  %v470_v6 = vpop.f32.mrf.mxu0  ;;  %v567_v15 = vadd.f32 %v562_v5, %v2898_v13 }
  0xb2   : > { %v2174_v27 = vmul.f32 -1.442695, %v567_v15 }
  0xb3   : > { %v551_v7 = vpop.f32.mrf.mxu2  ;;  %v483_v8 = vpop.f32.mrf.mxu1 }
  0xb6   : > { %v2652_v9 = vpop.eup %2651 }
  0xb7   : > { %v571_v10 = vadd.f32 1.0, %v2652_v9  ;;  %v564_v12 = vpop.f32.mrf.mxu3 }
  0xb9   : > { %2653 = vrcp.f32 %v571_v10  ;;  %v583_v18 = vand.u32 2147483648, %v571_v10  ;;  %v581_v20 = vand.u32 2147483647, %v571_v10  ;;  %vm577_vm5 = vweird.f32 %v571_v10 }
  0xba   : > { %2655 = vtanh.f32 %v567_v15 }
  0xbb   : > { %v584_v23 = vor.u32 1.1754944e-38, %v583_v18  ;;  %vm582_vm7 = vcmp.eq.f32.partialorder %v581_v20, 8.507059e+37  ;;  %2657 = vpow2.f32 %v2174_v27 }
  0xbf   : > { %v2654_v14 = vpop.eup %2653 }
  0xc0   : > { %v573_v16 = vmul.f32 %v2654_v14, %v571_v10  ;;  %vm578_vm4 = vweird.f32 %v2654_v14  ;;  %v2656_v22 = vpop.eup %2655 }
  0xc1   : > { %vm579_vm6 = vmor %vm577_vm5, %vm578_vm4  ;;  %v2658_v28 = vpop.eup %2657 }
  0xc2   : > { %v574_v17 = vsub.f32 1.0, %v573_v16  ;;  %v591_v29 = vadd.f32 1.0, %v2658_v28  ;;  %v2918_v28 = vld [vmem:[%s3694_s0 + $0x8] sm:$0xff]  }
  0xc4   : > { %v575_v19 = vmul.f32 %v2654_v14, %v574_v17  ;;  %2659 = vrcp.f32 %v591_v29  ;;  %vm597_vm8 = vweird.f32 %v591_v29  ;;  %v603_v38 = vand.u32 2147483648, %v591_v29 }
  0xc5   : > { %v601_v40 = vand.u32 2147483647, %v591_v29 }
  0xc6   : > { %v576_v21 = vadd.f32 %v2654_v14, %v575_v19  ;;  %v604_v41 = vor.u32 1.1754944e-38, %v603_v38 }
  0xc7   : > { %vm602_vm11 = vcmp.eq.f32.partialorder %v601_v40, 8.507059e+37 }
  0xc8   : > { %v580_v24 = vsel %vm579_vm6, %v2654_v14, %v576_v21  ;;  %vm723_vm6 = vcmask 517121  }
  0xc9   : > { %v585_v25 = vsel %vm582_vm7, %v584_v23, %v580_v24  ;;  %vm968_vm7 = vcmask 130112  }
  0xca   : > { %v613_v26 = vmul.f32 %v2656_v22, %v585_v25  ;;  %v2660_v30 = vpop.eup %2659  ;;  %v612_v35 = vmul.f32 %v610_v32, %v585_v25 }
  0xcb   : > { %v593_v31 = vmul.f32 %v2660_v30, %v591_v29  ;;  %vm598_vm9 = vweird.f32 %v2660_v30  ;;  %v2923_v29 = vld [vmem:[%s3694_s0] sm:$0xff]  }
  0xcc   : > { %615 = vrot.lane.b32.xlu0 %v613_v26, %s2689_s19  ;;  %vm599_vm10 = vmor %vm597_vm8, %vm598_vm9  ;;  %v2528_v32 = vunpack.c.l.bf16 %v2923_v29  ;;  %vm972_vm8 = vcmask 195712   ;;  %vm976_vm9 = vcmask 261312  }
  0xcd   : > { %v594_v33 = vsub.f32 1.0, %v593_v31  ;;  %v2529_v31 = vunpack.c.h.bf16 %v2923_v29 }
  0xcf   : > { %v595_v34 = vmul.f32 %v2660_v30, %v594_v33 }
  0xd1   : > { %v596_v39 = vadd.f32 %v2660_v30, %v595_v34 }
  0xd3   : > { %v600_v42 = vsel %vm599_vm10, %v2660_v30, %v596_v39  ;;  %v3726_v30 = vunpack.c.h.bf16 %v2918_v28  ;;  %vm980_vm10 = vcmask 326912  }
  0xd4   : > { %v605_v44 = vsel %vm602_vm11, %v604_v41, %v600_v42  ;;  %vm984_vm11 = vcmask 392512  }
 0x13e   : > { %v616_v36 = vpop.permute.xlu0 %615 }
 0x13f   : > { %v618_v37 = vadd.f32 %v616_v36, %v612_v35  ;;  %v2933_v35 = vld [vmem:[%s3694_s0 + $0x18] sm:$0xff]   ;;  %v2938_v36 = vld [vmem:[%s3694_s0 + $0x10] sm:$0xff]  }
 0x140   : > { %v3718_v40 = vunpack.c.l.bf16 %v2933_v35 }
 0x141   : > { %2661 = vtanh.f32 %v618_v37  ;;  %v708_v4 = vrot.slane %v618_v37, 7 }
 0x147   : > { %v2662_v43 = vpop.eup %2661 }
 0x148   : > { %v620_v45 = vmul.f32 %v2662_v43, %v605_v44  ;;  %v3724_v44 = vunpack.c.l.bf16 %v2938_v36 }
 0x14a   : > { %622 = vrot.lane.b32.xlu2 %v620_v45, %s2689_s19  ;;  %v627_v46 = vpack.c.bf16 %v620_v45, %v620_v45  ;;  %v3727_v45 = vunpack.c.l.bf16 %v2918_v28 }
 0x14c   : > { %629 = vrot.lane.b32.xlu1 %v627_v46, %s2689_s19 }
 0x1a4   : > { %v623_v47 = vpop.permute.xlu2 %622 }
 0x1a5   : > { %626 = vst.msk [vmem:[#allocation5] sm:$0x1] %vm625_vm12, %v623_v47  ;;  %vm988_vm12 = vcmask 458112  }
 0x1be   : > { %v630_v48 = vpop.permute.xlu1 %629 }
 0x1bf   : > { %2175 = vmatmul.msk.bf16.vlgmr.msrb.gmra.mxu2 %vm536_vm2, %v630_v48  ;;  %2176 = vmatmul.msk.bf16.vlgmr.msrb.gmra.mxu3 %vm536_vm2, %v630_v48 }
 0x242   : > { %v643_v49 = vpop.f32.mrf.mxu2  ;;  %v656_v50 = vpop.f32.mrf.mxu3 }
 0x243   : > { %v662_v51 = vrot.slane %v643_v49, 7  ;;  %v663_v58 = vrot.slane %v656_v50, 7  ;;  %v2967_v49 = vld [vmem:[%s3694_s0 + $0x20] sm:$0xff]  }
 0x245   : > { %v666_v52 = vadd.f32 %v662_v51, %v2895_v0  ;;  %v667_v60 = vadd.f32 %v663_v58, %v2898_v13 }
 0x247   : > { %v2177_v53 = vmul.f32 -1.442695, %v666_v52  ;;  %v2178_v10 = vmul.f32 -1.442695, %v667_v60  ;;  %v3714_v52 = vunpack.c.h.bf16 %v2967_v49 }
 0x249   : > { %2663 = vpow2.f32 %v2177_v53  ;;  %v3717_v53 = vunpack.c.h.bf16 %v2933_v35 }
 0x24a   : > { %v645_v54 = vpop.f32.mrf.mxu2  ;;  %v658_v55 = vpop.f32.mrf.mxu3 }
 0x24b   : > { %v3723_v55 = vunpack.c.h.bf16 %v2938_v36 }
 0x24f   : > { %v2664_v56 = vpop.eup %2663 }
 0x250   : > { %v671_v57 = vadd.f32 1.0, %v2664_v56 }
 0x252   : > { %2665 = vrcp.f32 %v671_v57  ;;  %v683_v63 = vand.u32 2147483648, %v671_v57  ;;  %v681_v2 = vand.u32 2147483647, %v671_v57  ;;  %vm677_vm14 = vweird.f32 %v671_v57 }
 0x253   : > { %2667 = vtanh.f32 %v667_v60  ;;  %v2992_v60 = vld [vmem:[%s3694_s0 + $0x28] sm:$0xff]  }
 0x254   : > { %v684_v0 = vor.u32 1.1754944e-38, %v683_v63  ;;  %vm682_vm0 = vcmp.eq.f32.partialorder %v681_v2, 8.507059e+37  ;;  %2669 = vpow2.f32 %v2178_v10 }
 0x258   : > { %v2666_v59 = vpop.eup %2665 }
 0x259   : > { %v673_v61 = vmul.f32 %v2666_v59, %v671_v57  ;;  %vm678_vm13 = vweird.f32 %v2666_v59  ;;  %v2668_v6 = vpop.eup %2667 }
 0x25a   : > { %vm679_vm15 = vmor %vm677_vm14, %vm678_vm13  ;;  %v2670_v11 = vpop.eup %2669  ;;  %vm992_vm13 = vcmask 523712   ;;  %vm996_vm14 = vcmask 589312  }
 0x25b   : > { %v674_v62 = vsub.f32 1.0, %v673_v61  ;;  %v691_v12 = vadd.f32 1.0, %v2670_v11 }
 0x25d   : > { %v675_v1 = vmul.f32 %v2666_v59, %v674_v62  ;;  %2671 = vrcp.f32 %v691_v12  ;;  %v703_v20 = vand.u32 2147483648, %v691_v12  ;;  %vm697_vm3 = vweird.f32 %v691_v12 }
 0x25e   : > { %v701_v21 = vand.u32 2147483647, %v691_v12 }
 0x25f   : > { %v676_v3 = vadd.f32 %v2666_v59, %v675_v1  ;;  %v704_v23 = vor.u32 1.1754944e-38, %v703_v20  ;;  %v3711_v1 = vunpack.c.l.bf16 %v2992_v60  ;;  %v3039_v20 = vld [vmem:[%s3694_s0 + $0x38] sm:$0xff]  }
 0x260   : > { %vm702_vm5 = vcmp.eq.f32.partialorder %v701_v21, 8.507059e+37 }
 0x261   : > { %v680_v5 = vsel %vm679_vm15, %v2666_v59, %v676_v3  ;;  %v2987_v59 = vld [vmem:[%s3694_s0 + $0x30] sm:$0xff]   ;;  %v3716_v3 = vunpack.c.l.bf16 %v2967_v49  ;;  %vm1000_vm15 = vcmask 654912  }
 0x262   : > { %v685_v7 = vsel %vm682_vm0, %v684_v0, %v680_v5  ;;  %v3712_v63 = vunpack.c.l.bf16 %v2987_v59  ;;  %vm1004_vm0 = vcmask 720512  }
 0x263   : > { %v711_v8 = vmul.f32 %v2668_v6, %v685_v7  ;;  %v710_v9 = vmul.f32 %v708_v4, %v685_v7  ;;  %v2672_v13 = vpop.eup %2671  ;;  %v3012_v7 = vld [vmem:[%s3694_s0 + $0x40] sm:$0xff]  }
 0x264   : > { %v693_v14 = vmul.f32 %v2672_v13, %v691_v12  ;;  %vm698_vm1 = vweird.f32 %v2672_v13  ;;  %v2560_v12 = vunpack.c.l.bf16 %v3012_v7 }
 0x265   : > { %713 = vrot.lane.b32.xlu1 %v711_v8, %s2689_s19  ;;  %vm699_vm4 = vmor %vm697_vm3, %vm698_vm1  ;;  %v3708_v8 = vunpack.c.h.bf16 %v2987_v59  ;;  %vm1008_vm1 = vcmask 786112   ;;  %vm1012_vm3 = vcmask 851712  }
 0x266   : > { %v694_v15 = vsub.f32 1.0, %v693_v14  ;;  %v3713_v14 = vunpack.c.h.bf16 %v2992_v60 }
 0x268   : > { %v695_v16 = vmul.f32 %v2672_v13, %v694_v15 }
 0x26a   : > { %v696_v19 = vadd.f32 %v2672_v13, %v695_v16 }
 0x26c   : > { %v700_v22 = vsel %vm699_vm4, %v2672_v13, %v696_v19  ;;  %v3034_v19 = vld [vmem:[%s3694_s0 + $0x48] sm:$0xff]   ;;  %vm1016_vm4 = vcmask 917312  }
 0x26d   : > { %v705_v25 = vsel %vm702_vm5, %v704_v23, %v700_v22  ;;  %v2564_v23 = vunpack.c.l.bf16 %v3034_v19  ;;  %vm1020_vm5 = vcmask 982912  }
 0x2d7   : > { %v714_v17 = vpop.permute.xlu1 %713 }
 0x2d8   : > { %v2909_v18 = vadd.f32 %v714_v17, %v710_v9 }
 0x2da   : > { %2673 = vtanh.f32 %v2909_v18 }
 0x2e0   : > { %v2674_v24 = vpop.eup %2673 }
 0x2e1   : > { %v718_v26 = vmul.f32 %v2674_v24, %v705_v25  ;;  %v2561_v24 = vunpack.c.h.bf16 %v3012_v7 }
 0x2e3   : > { %720 = vrot.lane.b32.xlu2 %v718_v26, %s2689_s19  ;;  %v3707_v26 = vunpack.c.l.bf16 %v3039_v20 }
 0x33d   : > { %v721_v27 = vpop.permute.xlu2 %720 }
 0x33e   : > { %724 = vst.msk [vmem:[#allocation5] sm:$0x2] %vm723_vm6, %v721_v27 }
 0x33f   : > { %725 = vst.msk [vmem:[#allocation2 - $0x1] sm:$0x2] %vm723_vm6, %v721_v27 }
 0x345   : > { %v731_v33 = vld [vmem:[#allocation5] sm:$0x3] }
 0x346   : > { %v2928_v34 = vperm.slane %v731_v33, 0  ;;  %v797_v0 = vrot.slane %v731_v33, 1 }
 0x348   : > { %v805_v37 = vmul.f32 %v3726_v30, %v2928_v34  ;;  %v803_v38 = vmul.f32 %v2529_v31, %v2928_v34  ;;  %v802_v39 = vmul.f32 %v2528_v32, %v2928_v34  ;;  %v808_v46 = vmul.f32 %v3718_v40, %v2928_v34 }
 0x349   : > { %v806_v47 = vmul.f32 %v3724_v44, %v2928_v34  ;;  %v804_v48 = vmul.f32 %v3727_v45, %v2928_v34  ;;  %v811_v56 = vmul.f32 %v3714_v52, %v2928_v34  ;;  %v809_v57 = vmul.f32 %v3717_v53, %v2928_v34 }
 0x34a   : > { %v843_v41 = vsel %vm536_vm2, %v805_v37, 0.0  ;;  %v837_v42 = vsel %vm536_vm2, %v803_v38, 0.0  ;;  %v834_v43 = vsel %vm536_vm2, %v802_v39, 0.0  ;;  %v852_v50 = vsel %vm536_vm2, %v808_v46, 0.0  ;;  %v3059_v38 = vld [vmem:[%s3694_s0 + $0x50] sm:$0xff]  }
 0x34b   : > { %844 = vadd.xlane.f32.xlu2 %v843_v41  ;;  %838 = vadd.xlane.f32.xlu1 %v837_v42  ;;  %v846_v51 = vsel %vm536_vm2, %v806_v47, 0.0  ;;  %v840_v54 = vsel %vm536_vm2, %v804_v48, 0.0  ;;  %v807_v58 = vmul.f32 %v3723_v55, %v2928_v34  ;;  %v861_v61 = vsel %vm536_vm2, %v811_v56, 0.0  ;;  %v3084_v56 = vld [vmem:[%s3694_s0 + $0x60] sm:$0xff]  }
 0x34c   : > { %835 = vadd.xlane.f32.xlu0 %v834_v43  ;;  %v855_v62 = vsel %vm536_vm2, %v809_v57, 0.0  ;;  %v814_v4 = vmul.f32 %v3712_v63, %v2928_v34  ;;  %v812_v5 = vmul.f32 %v3711_v1, %v2928_v34  ;;  %v810_v6 = vmul.f32 %v3716_v3, %v2928_v34 }
 0x34d   : > { %v849_v2 = vsel %vm536_vm2, %v807_v58, 0.0  ;;  %v3015_v9 = vperm.slane %v797_v0, 0  ;;  %v815_v15 = vmul.f32 %v3708_v8, %v2928_v34  ;;  %v813_v17 = vmul.f32 %v3713_v14, %v2928_v34 }
 0x34e   : > { %v870_v10 = vsel %vm536_vm2, %v814_v4, 0.0  ;;  %v864_v11 = vsel %vm536_vm2, %v812_v5, 0.0  ;;  %v858_v13 = vsel %vm536_vm2, %v810_v6, 0.0  ;;  %v816_v37 = vmul.f32 %v3707_v26, %v2928_v34 }
 0x34f   : > { %v818_v16 = vmul.f32 %v2560_v12, %v3015_v9  ;;  %v873_v21 = vsel %vm536_vm2, %v815_v15, 0.0  ;;  %v867_v25 = vsel %vm536_vm2, %v813_v17, 0.0  ;;  %v820_v27 = vmul.f32 %v2564_v23, %v3015_v9 }
 0x350   : > { %v819_v33 = vmul.f32 %v2561_v24, %v3015_v9  ;;  %v2569_v42 = vunpack.c.h.bf16 %v3059_v38  ;;  %v2568_v43 = vunpack.c.l.bf16 %v3059_v38  ;;  %v876_v46 = vsel %vm536_vm2, %v816_v37, 0.0  ;;  %v3129_v37 = vld [vmem:[%s3694_s0 + $0x78] sm:$0xff]  }
 0x351   : > { %v882_v22 = vsel %vm536_vm2, %v818_v16, 0.0  ;;  %v888_v39 = vsel %vm536_vm2, %v820_v27, 0.0  ;;  %v2565_v47 = vunpack.c.h.bf16 %v3034_v19 }
 0x352   : > { %v885_v41 = vsel %vm536_vm2, %v819_v33, 0.0  ;;  %v823_v48 = vmul.f32 %v2569_v42, %v3015_v9  ;;  %v3124_v33 = vld [vmem:[%s3694_s0 + $0x70] sm:$0xff]  }
 0x353   : > { %853 = vadd.xlane.f32.xlu2 %v852_v50  ;;  %847 = vadd.xlane.f32.xlu1 %v846_v51  ;;  %v822_v50 = vmul.f32 %v2568_v43, %v3015_v9  ;;  %v821_v51 = vmul.f32 %v2565_v47, %v3015_v9 }
 0x354   : > { %841 = vadd.xlane.f32.xlu0 %v840_v54  ;;  %v3079_v54 = vld [vmem:[%s3694_s0 + $0x58] sm:$0xff]   ;;  %v897_v57 = vsel %vm536_vm2, %v823_v48, 0.0  ;;  %v3715_v48 = vunpack.c.h.bf16 %v3124_v33 }
 0x355   : > { %v894_v58 = vsel %vm536_vm2, %v822_v50, 0.0  ;;  %v2572_v0 = vunpack.c.l.bf16 %v3079_v54 }
 0x357   : > { %v824_v6 = vmul.f32 %v2572_v0, %v3015_v9 }
 0x359   : > { %v900_v17 = vsel %vm536_vm2, %v824_v6, 0.0  ;;  %v3706_v6 = vunpack.c.h.bf16 %v3039_v20 }
 0x35b   : > { %862 = vadd.xlane.f32.xlu2 %v861_v61  ;;  %856 = vadd.xlane.f32.xlu1 %v855_v62  ;;  %v3725_v61 = vunpack.c.l.bf16 %v3084_v56  ;;  %v2573_v62 = vunpack.c.h.bf16 %v3079_v54 }
 0x35c   : > { %850 = vadd.xlane.f32.xlu0 %v849_v2  ;;  %v891_v2 = vsel %vm536_vm2, %v821_v51, 0.0  ;;  %v3719_v51 = vunpack.c.l.bf16 %v3124_v33 }
 0x35d   : > { %v826_v4 = vmul.f32 %v3725_v61, %v3015_v9  ;;  %v825_v5 = vmul.f32 %v2573_v62, %v3015_v9 }
 0x363   : > { %871 = vadd.xlane.f32.xlu2 %v870_v10  ;;  %865 = vadd.xlane.f32.xlu1 %v864_v11  ;;  %v3104_v10 = vld [vmem:[%s3694_s0 + $0x68] sm:$0xff]   ;;  %v906_v11 = vsel %vm536_vm2, %v826_v4, 0.0 }
 0x364   : > { %859 = vadd.xlane.f32.xlu0 %v858_v13  ;;  %v903_v13 = vsel %vm536_vm2, %v825_v5, 0.0  ;;  %v3720_v15 = vunpack.c.h.bf16 %v3104_v10  ;;  %v3721_v16 = vunpack.c.l.bf16 %v3104_v10 }
 0x36b   : > { %874 = vadd.xlane.f32.xlu1 %v873_v21  ;;  %883 = vadd.xlane.f32.xlu2 %v882_v22  ;;  %v3722_v21 = vunpack.c.h.bf16 %v3084_v56  ;;  %v829_v22 = vmul.f32 %v3720_v15, %v3015_v9 }
 0x36c   : > { %868 = vadd.xlane.f32.xlu0 %v867_v25  ;;  %v828_v25 = vmul.f32 %v3721_v16, %v3015_v9 }
 0x36d   : > { %v827_v27 = vmul.f32 %v3722_v21, %v3015_v9 }
 0x36f   : > { %v909_v50 = vsel %vm536_vm2, %v827_v27, 0.0 }
 0x373   : > { %889 = vadd.xlane.f32.xlu1 %v888_v39  ;;  %886 = vadd.xlane.f32.xlu2 %v885_v41  ;;  %v915_v39 = vsel %vm536_vm2, %v829_v22, 0.0  ;;  %v912_v41 = vsel %vm536_vm2, %v828_v25, 0.0 }
 0x374   : > { %877 = vadd.xlane.f32.xlu0 %v876_v46  ;;  %v3710_v46 = vunpack.c.l.bf16 %v3129_v37 }
 0x37b   : > { %898 = vadd.xlane.f32.xlu1 %v897_v57  ;;  %895 = vadd.xlane.f32.xlu2 %v894_v58  ;;  %v832_v57 = vmul.f32 %v3710_v46, %v3015_v9  ;;  %v831_v58 = vmul.f32 %v3715_v48, %v3015_v9 }
 0x37c   : > { %892 = vadd.xlane.f32.xlu0 %v891_v2  ;;  %v830_v2 = vmul.f32 %v3719_v51, %v3015_v9 }
 0x37d   : > { %v924_v4 = vsel %vm536_vm2, %v832_v57, 0.0  ;;  %v921_v5 = vsel %vm536_vm2, %v831_v58, 0.0 }
 0x383   : > { %907 = vadd.xlane.f32.xlu1 %v906_v11  ;;  %904 = vadd.xlane.f32.xlu2 %v903_v13  ;;  %v918_v11 = vsel %vm536_vm2, %v830_v2, 0.0  ;;  %v3709_v13 = vunpack.c.h.bf16 %v3129_v37 }
 0x384   : > { %901 = vadd.xlane.f32.xlu0 %v900_v17  ;;  %v817_v17 = vmul.f32 %v3706_v6, %v2928_v34 }
 0x385   : > { %v833_v22 = vmul.f32 %v3709_v13, %v3015_v9 }
 0x386   : > { %v879_v25 = vsel %vm536_vm2, %v817_v17, 0.0 }
 0x387   : > { %v927_v27 = vsel %vm536_vm2, %v833_v22, 0.0 }
 0x38b   : > { %916 = vadd.xlane.f32.xlu1 %v915_v39  ;;  %913 = vadd.xlane.f32.xlu2 %v912_v41  ;;  %v930_v39 = vlaneseq }
 0x38c   : > { %910 = vadd.xlane.f32.xlu0 %v909_v50 }
 0x38d   : > { %v3160_v41 = vand.u32 127, %v930_v39 }
 0x38f   : > { %v966_v2 = vadd.s32 4294967288, %v3160_v41  ;;  %v970_v34 = vadd.s32 4294967280, %v3160_v41  ;;  %v978_v51 = vadd.s32 4294967264, %v3160_v41  ;;  %v982_v15 = vadd.s32 4294967256, %v3160_v41 }
 0x393   : > { %925 = vadd.xlane.f32.xlu1 %v924_v4  ;;  %922 = vadd.xlane.f32.xlu2 %v921_v5  ;;  %v974_v4 = vadd.s32 4294967272, %v3160_v41 }
 0x394   : > { %919 = vadd.xlane.f32.xlu0 %v918_v11 }
 0x39b   : > { %880 = vadd.xlane.f32.xlu2 %v879_v25 }
 0x39c   : > { %928 = vadd.xlane.f32.xlu0 %v927_v27 }
 0x3be   : > { %v845_v50 = vpop.xlane.xlu2 %844  ;;  %v839_v57 = vpop.xlane.xlu1 %838 }
 0x3bf   : > { %v836_v58 = vpop.xlane.xlu0 %835  ;;  %v967_v9 = vperm.slane %v839_v57, %v966_v2  ;;  %v975_v27 = vperm.slane %v845_v50, %v974_v4 }
 0x3c0   : > { %v965_v5 = vperm.slane %v836_v58, %v3160_v41 }
 0x3c2   : > { %v969_v6 = vsel %vm968_vm7, %v967_v9, %v965_v5 }
 0x3c6   : > { %v854_v11 = vpop.xlane.xlu2 %853  ;;  %v848_v17 = vpop.xlane.xlu1 %847 }
 0x3c7   : > { %v842_v22 = vpop.xlane.xlu0 %841 }
 0x3c8   : > { %v971_v25 = vperm.slane %v842_v22, %v970_v34 }
 0x3ca   : > { %v973_v26 = vsel %vm972_vm8, %v971_v25, %v969_v6 }
 0x3cb   : > { %v977_v8 = vsel %vm976_vm9, %v975_v27, %v973_v26 }
 0x3ce   : > { %v3169_v13 = vpop.xlane.xlu2 %862  ;;  %v857_v46 = vpop.xlane.xlu1 %856 }
 0x3cf   : > { %v851_v57 = vpop.xlane.xlu0 %850 }
 0x3d6   : > { %v3171_v1 = vpop.xlane.xlu2 %871  ;;  %v3173_v58 = vpop.xlane.xlu1 %865 }
 0x3d7   : > { %v860_v63 = vpop.xlane.xlu0 %859 }
 0x3de   : > { %v3175_v14 = vpop.xlane.xlu1 %874  ;;  %v884_v52 = vpop.xlane.xlu2 %883 }
 0x3df   : > { %v3177_v22 = vpop.xlane.xlu0 %868  ;;  %v1026_v48 = vperm.slane %v884_v52, %v3160_v41  ;;  %v979_v52 = vperm.slane %v848_v17, %v978_v51 }
 0x3e6   : > { %v890_v50 = vpop.xlane.xlu1 %889  ;;  %v887_v9 = vpop.xlane.xlu2 %886 }
 0x3e7   : > { %v3179_v5 = vpop.xlane.xlu0 %877  ;;  %v1027_v6 = vperm.slane %v887_v9, %v966_v2  ;;  %v1029_v3 = vperm.slane %v890_v50, %v970_v34  ;;  %v986_v2 = vadd.s32 4294967248, %v3160_v41  ;;  %v983_v9 = vperm.slane %v851_v57, %v982_v15 }
 0x3e8   : > { %v990_v50 = vadd.s32 4294967240, %v3160_v41  ;;  %v998_v57 = vadd.s32 4294967224, %v3160_v41 }
 0x3e9   : > { %v1028_v53 = vsel %vm968_vm7, %v1027_v6, %v1026_v48  ;;  %v981_v6 = vsel %vm980_vm10, %v979_v52, %v977_v8  ;;  %v1002_v52 = vadd.s32 4294967216, %v3160_v41  ;;  %vm1024_vm7 = vcmask 1048512  }
 0x3ea   : > { %v1030_v16 = vsel %vm972_vm8, %v1029_v3, %v1028_v53  ;;  %v985_v3 = vsel %vm984_vm11, %v983_v9, %v981_v6  ;;  %v999_v9 = vperm.slane %v3169_v13, %v998_v57  ;;  %v1018_v13 = vadd.s32 4294967184, %v3160_v41 }
 0x3eb   : > { %vm1057_vm8 = vcmask 1041409  }
 0x3ee   : > { %v899_v26 = vpop.xlane.xlu1 %898  ;;  %v896_v25 = vpop.xlane.xlu2 %895 }
 0x3ef   : > { %v893_v27 = vpop.xlane.xlu0 %892  ;;  %v1033_v21 = vperm.slane %v896_v25, %v978_v51  ;;  %v1035_v53 = vperm.slane %v899_v26, %v982_v15  ;;  %v1006_v26 = vadd.s32 4294967208, %v3160_v41 }
 0x3f0   : > { %v1031_v40 = vperm.slane %v893_v27, %v974_v4  ;;  %v994_v27 = vadd.s32 4294967232, %v3160_v41 }
 0x3f2   : > { %v1032_v55 = vsel %vm976_vm9, %v1031_v40, %v1030_v16  ;;  %v987_v40 = vperm.slane %v854_v11, %v986_v2  ;;  %v995_v51 = vperm.slane %v860_v63, %v994_v27  ;;  %vm932_vm9 = vcmp.lt.s32.totalorder %v3160_v41, 4 }
 0x3f3   : > { %v1034_v48 = vsel %vm980_vm10, %v1033_v21, %v1032_v55  ;;  %v991_v55 = vperm.slane %v857_v46, %v990_v50  ;;  %v1007_v46 = vperm.slane %v3177_v22, %v1006_v26  ;;  %vm1061_vm10 = vcmask 1041408  }
 0x3f4   : > { %v1036_v16 = vsel %vm984_vm11, %v1035_v53, %v1034_v48  ;;  %v989_v45 = vsel %vm988_vm12, %v987_v40, %v985_v3 }
 0x3f5   : > { %v993_v15 = vsel %vm992_vm13, %v991_v55, %v989_v45 }
 0x3f6   : > { %v905_v44 = vpop.xlane.xlu2 %904  ;;  %v908_v34 = vpop.xlane.xlu1 %907 }
 0x3f7   : > { %v902_v61 = vpop.xlane.xlu0 %901  ;;  %v1039_v25 = vperm.slane %v905_v44, %v990_v50  ;;  %v1041_v11 = vperm.slane %v908_v34, %v994_v27  ;;  %v997_v44 = vsel %vm996_vm14, %v995_v51, %v993_v15  ;;  %v1003_v50 = vperm.slane %v3173_v58, %v1002_v52 }
 0x3f8   : > { %v1037_v4 = vperm.slane %v902_v61, %v986_v2  ;;  %v1001_v6 = vsel %vm1000_vm15, %v999_v9, %v997_v44  ;;  %v1014_v34 = vadd.s32 4294967192, %v3160_v41  ;;  %v1022_v58 = vadd.s32 4294967176, %v3160_v41 }
 0x3f9   : > { %v1005_v3 = vsel %vm1004_vm0, %v1003_v50, %v1001_v6 }
 0x3fa   : > { %v1038_v30 = vsel %vm988_vm12, %v1037_v4, %v1036_v16  ;;  %vm1994_vm12 = vcmask 1045504  }
 0x3fb   : > { %v1040_v21 = vsel %vm992_vm13, %v1039_v25, %v1038_v30  ;;  %v1010_v30 = vadd.s32 4294967200, %v3160_v41  ;;  %v1009_v25 = vsel %vm1008_vm1, %v1007_v46, %v1005_v3 }
 0x3fc   : > { %v1042_v48 = vsel %vm996_vm14, %v1041_v11, %v1040_v21 }
 0x3fe   : > { %v914_v17 = vpop.xlane.xlu2 %913  ;;  %v917_v2 = vpop.xlane.xlu1 %916 }
 0x3ff   : > { %v911_v61 = vpop.xlane.xlu0 %910  ;;  %v1045_v4 = vperm.slane %v914_v17, %v1002_v52  ;;  %v1047_v40 = vperm.slane %v917_v2, %v1006_v26 }
 0x400   : > { %v1043_v8 = vperm.slane %v911_v61, %v998_v57  ;;  %v1011_v57 = vperm.slane %v3171_v1, %v1010_v30  ;;  %v1019_v61 = vperm.slane %v3179_v5, %v1018_v13 }
 0x402   : > { %v1044_v63 = vsel %vm1000_vm15, %v1043_v8, %v1042_v48  ;;  %v1013_v55 = vsel %vm1012_vm3, %v1011_v57, %v1009_v25  ;;  %v1015_v8 = vperm.slane %v3175_v14, %v1014_v34  ;;  %vm1990_vm15 = vcmask 97280  }
 0x403   : > { %v1046_v27 = vsel %vm1004_vm0, %v1045_v4, %v1044_v63  ;;  %vm2014_vm0 = vcmask 130048  }
 0x404   : > { %v1048_v22 = vsel %vm1008_vm1, %v1047_v40, %v1046_v27  ;;  %v1017_v26 = vsel %vm1016_vm4, %v1015_v8, %v1013_v55  ;;  %v3208_v27 = vshrl.u32 %v930_v39, 7  ;;  %vm2016_vm1 = vcmask 648192  }
 0x405   : > { %v1021_v2 = vsel %vm1020_vm5, %v1019_v61, %v1017_v26 }
 0x406   : > { %v923_v45 = vpop.xlane.xlu2 %922  ;;  %v926_v21 = vpop.xlane.xlu1 %925  ;;  %2619 = vset.pattern.permute.xlu2 %v3208_v27  ;;  %2617 = vset.pattern.permute.xlu0 %v3208_v27  ;;  %v1088_v39 = vadd.s32 16, %v3208_v27  ;;  %v1094_v57 = vadd.s32 24, %v3208_v27  ;;  %v1142_v55 = vadd.s32 88, %v3208_v27  ;;  %v1118_v61 = vadd.s32 56, %v3208_v27 }
 0x407   : > { %v920_v53 = vpop.xlane.xlu0 %919  ;;  %v1051_v51 = vperm.slane %v923_v45, %v1014_v34  ;;  %v1053_v11 = vperm.slane %v926_v21, %v1018_v13  ;;  %v1154_v21 = vadd.s32 104, %v3208_v27  ;;  %v1130_v8 = vadd.s32 72, %v3208_v27 }
 0x408   : > { %v1049_v16 = vperm.slane %v920_v53, %v1010_v30  ;;  %v1082_v53 = vadd.s32 8, %v3208_v27  ;;  %v1166_v26 = vadd.s32 120, %v3208_v27 }
 0x40a   : > { %v1050_v17 = vsel %vm1012_vm3, %v1049_v16, %v1048_v22  ;;  %2618 = vset.pattern.permute.xlu1 %v1082_v53  ;;  %v1112_v22 = vadd.s32 48, %v3208_v27 }
 0x40b   : > { %v1052_v52 = vsel %vm1016_vm4, %v1051_v51, %v1050_v17  ;;  %v1100_v51 = vadd.s32 32, %v3208_v27  ;;  %v1124_v17 = vadd.s32 64, %v3208_v27 }
 0x40c   : > { %v1054_v4 = vsel %vm1020_vm5, %v1053_v11, %v1052_v52  ;;  %v1136_v52 = vadd.s32 80, %v3208_v27  ;;  %v1160_v11 = vadd.s32 112, %v3208_v27 }
 0x40e   : > { %v881_v15 = vpop.xlane.xlu2 %880 }
 0x40f   : > { %v929_v44 = vpop.xlane.xlu0 %928  ;;  %v1023_v1 = vperm.slane %v881_v15, %v1022_v58  ;;  %v1148_v15 = vadd.s32 96, %v3208_v27 }
 0x410   : > { %v1055_v9 = vperm.slane %v929_v44, %v1022_v58  ;;  %v1106_v58 = vadd.s32 40, %v3208_v27 }
 0x411   : > { %v1025_v48 = vsel %vm1024_vm7, %v1023_v1, %v1021_v2 }
 0x412   : > { %v1056_v63 = vsel %vm1024_vm7, %v1055_v9, %v1054_v4 }
 0x413   : > { %v1058_v5 = vsel %vm1057_vm8, %v1056_v63, %v1025_v48 }
 0x414   : > { %v1060_v14 = vsel %vm932_vm9, %v1058_v5, -inf }
 0x415   : > { %v1062_v6 = vsel %vm1061_vm10, %v1060_v14, -inf }
 0x416   : > { %1063 = vmax.xlane.f32.xlu1 %v1062_v6 }
 0x489   : > { %v1064_v46 = vpop.xlane.xlu1 %1063 }
 0x48a   : > { %v1065_v30 = vsub.f32 %v1060_v14, %v1064_v46 }
 0x48c   : > { %v1066_v50 = vmul.f32 1.442695, %v1065_v30 }
 0x48e   : > { %2675 = vpow2.f32 %v1066_v50 }
 0x494   : > { %v2676_v45 = vpop.eup %2675 }
 0x495   : > { %v1068_v34 = vsel %vm1061_vm10, %v2676_v45, 0.0 }
 0x496   : > { %1069 = vadd.xlane.f32.xlu2 %v1068_v34 }
 0x509   : > { %v1070_v3 = vpop.xlane.xlu2 %1069 }
 0x50a   : > { %2677 = vrcp.f32 %v1070_v3 }
 0x510   : > { %v2678_v13 = vpop.eup %2677 }
 0x511   : > { %v1072_v40 = vmul.f32 %v2678_v13, %v2676_v45 }
 0x513   : > { %v3213_v16 = vperm.slane %v1072_v40, 0  ;;  %v3215_v25 = vperm.slane %v1072_v40, 1  ;;  %1956 = vst [vmem:[%s2768_s26] sm:$0x3] %v1072_v40 }
 0x515   : > { %1175 = vperm.xlu2 %2619, %v3215_v25   ;;  %1084 = vperm.xlu1 %2618, %v3213_v16  }
 0x516   : > { %1078 = vperm.xlu0 %2617, %v3213_v16  }
 0x51d   : > { %2620 = vset.pattern.permute.xlu2 %v1088_v39  ;;  %1181 = vperm.xlu1 %2618, %v3215_v25  }
 0x51e   : > { %2623 = vset.pattern.permute.xlu0 %v1094_v57 }
 0x525   : > { %1090 = vperm.xlu2 %2620, %v3213_v16   ;;  %2621 = vset.pattern.permute.xlu1 %v1088_v39 }
 0x526   : > { %1193 = vperm.xlu0 %2623, %v3215_v25  }
 0x52d   : > { %2622 = vset.pattern.permute.xlu2 %v1094_v57  ;;  %1187 = vperm.xlu1 %2621, %v3215_v25  }
 0x52e   : > { %2628 = vset.pattern.permute.xlu0 %v1112_v22 }
 0x535   : > { %1096 = vperm.xlu2 %2622, %v3213_v16   ;;  %2624 = vset.pattern.permute.xlu1 %v1100_v51 }
 0x536   : > { %1114 = vperm.xlu0 %2628, %v3213_v16  }
 0x53d   : > { %2625 = vset.pattern.permute.xlu2 %v1100_v51  ;;  %1102 = vperm.xlu1 %2624, %v3213_v16  }
 0x53e   : > { %2633 = vset.pattern.permute.xlu0 %v1124_v17 }
 0x545   : > { %1199 = vperm.xlu2 %2625, %v3215_v25   ;;  %2626 = vset.pattern.permute.xlu1 %v1106_v58 }
 0x546   : > { %1223 = vperm.xlu0 %2633, %v3215_v25  }
 0x54d   : > { %2627 = vset.pattern.permute.xlu2 %v1106_v58  ;;  %1108 = vperm.xlu1 %2626, %v3213_v16  }
 0x54e   : > { %2638 = vset.pattern.permute.xlu0 %v1142_v55 }
 0x555   : > { %1205 = vperm.xlu2 %2627, %v3215_v25   ;;  %2629 = vset.pattern.permute.xlu1 %v1112_v22 }
 0x556   : > { %1144 = vperm.xlu0 %2638, %v3213_v16  }
 0x55d   : > { %2630 = vset.pattern.permute.xlu2 %v1118_v61  ;;  %1211 = vperm.xlu1 %2629, %v3215_v25  }
 0x55e   : > { %2643 = vset.pattern.permute.xlu0 %v1154_v21 }
 0x565   : > { %1120 = vperm.xlu2 %2630, %v3213_v16   ;;  %2631 = vset.pattern.permute.xlu1 %v1118_v61 }
 0x566   : > { %1253 = vperm.xlu0 %2643, %v3215_v25  }
 0x56d   : > { %2632 = vset.pattern.permute.xlu2 %v1124_v17  ;;  %1217 = vperm.xlu1 %2631, %v3215_v25  }
 0x56e   : > { %2648 = vset.pattern.permute.xlu0 %v1166_v26 }
 0x56f   : > { %v1176_v44 = vpop.permute.xlu2 %1175 }
 0x570   : > { %v1283_v13 = vmul.f32 %v2560_v12, %v1176_v44 }
 0x572   : > { %v1336_v39 = vsel %vm536_vm2, %v1283_v13, 0.0  ;;  %v3732_v13 = vunpack.c.h.bf16 %v2938_v36 }
 0x575   : > { %1126 = vperm.xlu2 %2632, %v3213_v16   ;;  %2634 = vset.pattern.permute.xlu1 %v1130_v8 }
 0x57d   : > { %2635 = vset.pattern.permute.xlu2 %v1130_v8  ;;  %1132 = vperm.xlu1 %2634, %v3213_v16  }
 0x57f   : > { %v1091_v2 = vpop.permute.xlu2 %1090 }
 0x585   : > { %1229 = vperm.xlu2 %2635, %v3215_v25   ;;  %2636 = vset.pattern.permute.xlu1 %v1136_v52 }
 0x587   : > { %v1085_v1 = vpop.permute.xlu1 %1084 }
 0x588   : > { %v1079_v50 = vpop.permute.xlu0 %1078  ;;  %v1268_v19 = vmul.f32 %v2529_v31, %v1085_v1 }
 0x58d   : > { %2637 = vset.pattern.permute.xlu2 %v1136_v52  ;;  %1138 = vperm.xlu1 %2636, %v3213_v16  }
 0x58f   : > { %v1182_v9 = vpop.permute.xlu1 %1181  ;;  %v1097_v48 = vpop.permute.xlu2 %1096 }
 0x590   : > { %v1284_v27 = vmul.f32 %v2561_v24, %v1182_v9  ;;  %v3729_v9 = vunpack.c.h.bf16 %v2918_v28 }
 0x592   : > { %v1270_v54 = vmul.f32 %v3729_v9, %v1097_v48 }
 0x595   : > { %1235 = vperm.xlu2 %2637, %v3215_v25   ;;  %2639 = vset.pattern.permute.xlu1 %v1142_v55 }
 0x598   : > { %v1194_v53 = vpop.permute.xlu0 %1193 }
 0x599   : > { %v1286_v24 = vmul.f32 %v2565_v47, %v1194_v53  ;;  %v1267_v47 = vmul.f32 %v2528_v32, %v1079_v50  ;;  %v3728_v32 = vunpack.c.l.bf16 %v2918_v28  ;;  %v1304_v53 = vsel %vm536_vm2, %v1270_v54, 0.0 }
 0x59a   : > { %v3741_v54 = vunpack.c.h.bf16 %v2967_v49 }
 0x59b   : > { %v1341_v12 = vsel %vm536_vm2, %v1286_v24, 0.0  ;;  %v1269_v1 = vmul.f32 %v3728_v32, %v1091_v2 }
 0x59d   : > { %2640 = vset.pattern.permute.xlu2 %v1148_v15  ;;  %1241 = vperm.xlu1 %2639, %v3215_v25  }
 0x59f   : > { %v1188_v4 = vpop.permute.xlu1 %1187  ;;  %v1200_v63 = vpop.permute.xlu2 %1199 }
 0x5a0   : > { %v1285_v40 = vmul.f32 %v2564_v23, %v1188_v4  ;;  %v1287_v23 = vmul.f32 %v2568_v43, %v1200_v63  ;;  %v3730_v63 = vunpack.c.l.bf16 %v3084_v56 }
 0x5a2   : > { %v1339_v57 = vsel %vm536_vm2, %v1285_v40, 0.0  ;;  %v1343_v8 = vsel %vm536_vm2, %v1287_v23, 0.0 }
 0x5a5   : > { %1150 = vperm.xlu2 %2640, %v3213_v16   ;;  %2641 = vset.pattern.permute.xlu1 %v1148_v15 }
 0x5a8   : > { %v1115_v17 = vpop.permute.xlu0 %1114 }
 0x5ad   : > { %2642 = vset.pattern.permute.xlu2 %v1154_v21  ;;  %1247 = vperm.xlu1 %2641, %v3215_v25  }
 0x5af   : > { %v1103_v5 = vpop.permute.xlu1 %1102  ;;  %v1206_v14 = vpop.permute.xlu2 %1205 }
 0x5b0   : > { %v1288_v55 = vmul.f32 %v2569_v42, %v1206_v14 }
 0x5b2   : > { %v1345_v52 = vsel %vm536_vm2, %v1288_v55, 0.0  ;;  %v3735_v55 = vunpack.c.h.bf16 %v3104_v10 }
 0x5b5   : > { %1156 = vperm.xlu2 %2642, %v3213_v16   ;;  %2644 = vset.pattern.permute.xlu1 %v1160_v11 }
 0x5b8   : > { %v1224_v38 = vpop.permute.xlu0 %1223 }
 0x5b9   : > { %v1291_v14 = vmul.f32 %v3730_v63, %v1224_v38 }
 0x5bb   : > { %v1351_v48 = vsel %vm536_vm2, %v1291_v14, 0.0 }
 0x5bd   : > { %2645 = vset.pattern.permute.xlu2 %v1160_v11  ;;  %1162 = vperm.xlu1 %2644, %v3213_v16   ;;  %v1299_v11 = vsel %vm536_vm2, %v1267_v47, 0.0 }
 0x5bf   : > { %v1109_v6 = vpop.permute.xlu1 %1108  ;;  %v3264_v46 = vpop.permute.xlu2 %1120 }
 0x5c0   : > { %v1272_v40 = vmul.f32 %v3732_v13, %v1109_v6 }
 0x5c2   : > { %v1308_v6 = vsel %vm536_vm2, %v1272_v40, 0.0 }
 0x5c5   : > { %1259 = vperm.xlu2 %2645, %v3215_v25   ;;  %2646 = vset.pattern.permute.xlu1 %v1166_v26 }
 0x5c8   : > { %v1145_v2 = vpop.permute.xlu0 %1144 }
 0x5cd   : > { %2647 = vset.pattern.permute.xlu2 %v1166_v26  ;;  %1168 = vperm.xlu1 %2646, %v3213_v16  }
 0x5cf   : > { %v1212_v30 = vpop.permute.xlu1 %1211  ;;  %v3266_v45 = vpop.permute.xlu2 %1126 }
 0x5d0   : > { %v1289_v21 = vmul.f32 %v2572_v0, %v1212_v30  ;;  %v1300_v0 = vsel %vm536_vm2, %v1268_v19, 0.0  ;;  %v3731_v30 = vunpack.c.l.bf16 %v2938_v36 }
 0x5d1   : > { %v1301_v4 = vadd.f32 %v1300_v0, %v1299_v11 }
 0x5d2   : > { %v1347_v26 = vsel %vm536_vm2, %v1289_v21, 0.0  ;;  %v1271_v50 = vmul.f32 %v3731_v30, %v1103_v5  ;;  %v3743_v30 = vunpack.c.l.bf16 %v2987_v59 }
 0x5d4   : > { %v1306_v5 = vsel %vm536_vm2, %v1271_v50, 0.0  ;;  %v3744_v50 = vunpack.c.l.bf16 %v2992_v60 }
 0x5d5   : > { %1265 = vperm.xlu2 %2647, %v3215_v25   ;;  %v1337_v25 = vsel %vm536_vm2, %v1284_v27, 0.0  ;;  %v1302_v27 = vsel %vm536_vm2, %v1269_v1, 0.0  ;;  %v3740_v1 = vunpack.c.h.bf16 %v3124_v33 }
 0x5d6   : > { %v1338_v22 = vadd.f32 %v1337_v25, %v1336_v39  ;;  %v1303_v28 = vadd.f32 %v1302_v27, %v1301_v4  ;;  %v3733_v39 = vunpack.c.h.bf16 %v3084_v56  ;;  %v3736_v56 = vunpack.c.l.bf16 %v3124_v33 }
 0x5d8   : > { %v1340_v51 = vadd.f32 %v1339_v57, %v1338_v22  ;;  %v3734_v22 = vunpack.c.l.bf16 %v3104_v10  ;;  %v1305_v23 = vadd.f32 %v1304_v53, %v1303_v28  ;;  %v3746_v28 = vunpack.c.h.bf16 %v3129_v37 }
 0x5da   : > { %v1342_v61 = vadd.f32 %v1341_v12, %v1340_v51 }
 0x5dc   : > { %v1344_v15 = vadd.f32 %v1343_v8, %v1342_v61  ;;  %v1307_v61 = vadd.f32 %v1306_v5, %v1305_v23  ;;  %v2295_v23 = vld [vmem:[%s3700_s6 + $0xf0] sm:$0xf0] }
 0x5de   : > { %v1346_v31 = vadd.f32 %v1345_v52, %v1344_v15  ;;  %v1309_v52 = vadd.f32 %v1308_v6, %v1307_v61  ;;  %v1254_v15 = vpop.permute.xlu0 %1253  ;;  %v2492_v61 = vld [vmem:[%s3700_s6 + $0xf4] sm:$0xf0] }
 0x5df   : > { %v1218_v34 = vpop.permute.xlu1 %1217  ;;  %v1230_v3 = vpop.permute.xlu2 %1229  ;;  %v1296_v9 = vmul.f32 %v3740_v1, %v1254_v15  ;;  %v2481_v1 = vld [vmem:[%s3700_s6 + $0xa4] sm:$0xf] }
 0x5e0   : > { %v1290_v43 = vmul.f32 %v2573_v62, %v1218_v34  ;;  %v1348_v62 = vadd.f32 %v1347_v26, %v1346_v31  ;;  %v1292_v57 = vmul.f32 %v3733_v39, %v1230_v3  ;;  %v3738_v26 = vunpack.c.h.bf16 %v2933_v35 }
 0x5e1   : > { %v1361_v27 = vsel %vm536_vm2, %v1296_v9, 0.0 }
 0x5e2   : > { %v1349_v29 = vsel %vm536_vm2, %v1290_v43, 0.0  ;;  %v1353_v21 = vsel %vm536_vm2, %v1292_v57, 0.0  ;;  %v1274_v0 = vmul.f32 %v3738_v26, %v3264_v46  ;;  %v3742_v46 = vunpack.c.h.bf16 %v2992_v60 }
 0x5e3   : > { %v1350_v34 = vadd.f32 %v1349_v29, %v1348_v62 }
 0x5e4   : > { %v1278_v63 = vmul.f32 %v3742_v46, %v1145_v2  ;;  %v2269_v46 = vld [vmem:[%s3700_s6 + $0xa8] sm:$0xf] }
 0x5e5   : > { %v1352_v51 = vadd.f32 %v1351_v48, %v1350_v34 }
 0x5e7   : > { %v1354_v8 = vadd.f32 %v1353_v21, %v1352_v51  ;;  %v2490_v21 = vld [vmem:[%s3700_s6 + $0xec] sm:$0xf] }
 0x5ef   : > { %v3274_v16 = vpop.permute.xlu1 %1132  ;;  %v1236_v58 = vpop.permute.xlu2 %1235 }
 0x5f0   : > { %v1293_v24 = vmul.f32 %v3734_v22, %v1236_v58  ;;  %v3737_v58 = vunpack.c.l.bf16 %v2933_v35  ;;  %v1276_v62 = vmul.f32 %v3741_v54, %v3274_v16  ;;  %v1312_v35 = vsel %vm536_vm2, %v1274_v0, 0.0  ;;  %v2488_v0 = vld [vmem:[%s3700_s6 + $0xd4] sm:$0xf0] }
 0x5f2   : > { %v1355_v19 = vsel %vm536_vm2, %v1293_v24, 0.0  ;;  %v1273_v47 = vmul.f32 %v3737_v58, %v1115_v17  ;;  %v1316_v53 = vsel %vm536_vm2, %v1276_v62, 0.0  ;;  %v2293_v24 = vld [vmem:[%s3700_s6 + $0xe0] sm:$0xf] }
 0x5f3   : > { %v1356_v10 = vadd.f32 %v1355_v19, %v1354_v8  ;;  %v2303_v19 = vld [vmem:[%s3700_s6 + $0xf8] sm:$0xf0] }
 0x5f4   : > { %v1310_v31 = vsel %vm536_vm2, %v1273_v47, 0.0  ;;  %v2306_v8 = vor.u32 %v2490_v21, %v2303_v19  ;;  %v2476_v21 = vld [vmem:[%s3700_s6 + $0x74] sm:$0xf0]  ;;  %v2474_v19 = vld [vmem:[%s3700_s6 + $0x6c] sm:$0xf] }
 0x5f5   : > { %v1311_v32 = vadd.f32 %v1310_v31, %v1309_v52  ;;  %v2277_v52 = vld [vmem:[%s3700_s6 + $0xc0] sm:$0xf]  ;;  %v2287_v31 = vld [vmem:[%s3700_s6 + $0xd8] sm:$0xf0] }
 0x5f6   : > { %1622 = vmatpush.bf16.msra.mxu3 %v2306_v8 }
 0x5f7   : > { %v1313_v34 = vadd.f32 %v1312_v35, %v1311_v32  ;;  %v2483_v32 = vld [vmem:[%s3700_s6 + $0xac] sm:$0xf0]  ;;  %v2263_v35 = vld [vmem:[%s3700_s6 + $0xb0] sm:$0xf0] }
 0x5ff   : > { %v3281_v7 = vpop.permute.xlu1 %1138  ;;  %v1151_v42 = vpop.permute.xlu2 %1150 }
 0x600   : > { %v1277_v33 = vmul.f32 %v3744_v50, %v3281_v7  ;;  %v2482_v50 = vld [vmem:[%s3700_s6 + $0xac] sm:$0xf] }
 0x602   : > { %v1318_v60 = vsel %vm536_vm2, %v1277_v33, 0.0  ;;  %v2271_v33 = vld [vmem:[%s3700_s6 + $0xb8] sm:$0xf0] }
 0x60f   : > { %v1242_v44 = vpop.permute.xlu1 %1241  ;;  %v1157_v25 = vpop.permute.xlu2 %1156 }
 0x610   : > { %v1294_v36 = vmul.f32 %v3735_v55, %v1242_v44  ;;  %v3739_v44 = vunpack.c.l.bf16 %v2967_v49  ;;  %v3745_v49 = vunpack.c.l.bf16 %v3129_v37  ;;  %v2491_v37 = vld [vmem:[%s3700_s6 + $0xec] sm:$0xf0]  ;;  %v2301_v55 = vld [vmem:[%s3700_s6 + $0xe8] sm:$0xf] }
 0x611   : > { %v2294_v51 = vor.u32 %v2491_v37, %v2293_v24  ;;  %v2302_v47 = vor.u32 %v2492_v61, %v2301_v55  ;;  %v2229_v24 = vld [vmem:[%s3700_s6 + $0x60] sm:$0xf]  ;;  %v2231_v55 = vld [vmem:[%s3700_s6 + $0x70] sm:$0xf0] }
 0x612   : > { %v1357_v43 = vsel %vm536_vm2, %v1294_v36, 0.0  ;;  %v1275_v29 = vmul.f32 %v3739_v44, %v3266_v45  ;;  %v1279_v45 = vmul.f32 %v3743_v30, %v1151_v42  ;;  %v1320_v42 = vsel %vm536_vm2, %v1278_v63, 0.0 }
 0x613   : > { %v1358_v17 = vadd.f32 %v1357_v43, %v1356_v10  ;;  %1583 = vmatpush.bf16.msrb.mxu0 %v2294_v51  ;;  %v2487_v43 = vld [vmem:[%s3700_s6 + $0xcc] sm:$0xf0]  ;;  %v2485_v10 = vld [vmem:[%s3700_s6 + $0xc4] sm:$0xf]  ;;  %1609 = vmatpush.bf16.msra.mxu2 %v2302_v47  ;;  %v3748_v63 = vunpack.c.l.bf16 %v3039_v20  ;;  %v2266_v30 = vor.u32 %v2481_v1, %v2263_v35  ;;  %v2197_v1 = vld [vmem:[%s3700_s6 + $0x20] sm:$0xf] }
 0x614   : > { %v1314_v14 = vsel %vm536_vm2, %v1275_v29, 0.0  ;;  %v3360_v39 = vsel %vm536_vm2, %v1279_v45, 0.0  ;;  %v2278_v15 = vor.u32 %v2487_v43, %v2277_v52  ;;  %v2484_v45 = vld [vmem:[%s3700_s6 + $0xb4] sm:$0xf0]  ;;  %v2213_v52 = vld [vmem:[%s3700_s6 + $0x40] sm:$0xf] }
 0x615   : > { %v1315_v2 = vadd.f32 %v1314_v14, %v1313_v34  ;;  %v2270_v34 = vor.u32 %v2484_v45, %v2269_v46  ;;  %v2471_v43 = vld [vmem:[%s3700_s6 + $0x4c] sm:$0xf0]  ;;  %v2465_v35 = vld [vmem:[%s3700_s6 + $0x24] sm:$0xf]  ;;  %v2199_v46 = vld [vmem:[%s3700_s6 + $0x30] sm:$0xf0] }
 0x616   : > { %v2207_v45 = vld [vmem:[%s3700_s6 + $0x38] sm:$0xf0] }
 0x617   : > { %v1317_v7 = vadd.f32 %v1316_v53, %v1315_v2  ;;  %1584 = vmatpush.bf16.msrb.mxu0 %v2278_v15  ;;  %v2477_v53 = vld [vmem:[%s3700_s6 + $0x84] sm:$0xf]  ;;  %v2480_v2 = vld [vmem:[%s3700_s6 + $0x94] sm:$0xf0] }
 0x619   : > { %v1319_v36 = vadd.f32 %v1318_v60, %v1317_v7  ;;  %v2255_v60 = vld [vmem:[%s3700_s6 + $0x98] sm:$0xf0] }
 0x61b   : > { %v1321_v9 = vadd.f32 %v1320_v42, %v1319_v36  ;;  %v2478_v42 = vld [vmem:[%s3700_s6 + $0x8c] sm:$0xf]  ;;  %v2237_v36 = vld [vmem:[%s3700_s6 + $0x68] sm:$0xf] }
 0x61f   : > { %v1248_v12 = vpop.permute.xlu1 %1247  ;;  %v1260_v38 = vpop.permute.xlu2 %1259 }
 0x620   : > { %v1295_v3 = vmul.f32 %v3736_v56, %v1248_v12  ;;  %v1297_v16 = vmul.f32 %v3745_v49, %v1260_v38  ;;  %v2489_v12 = vld [vmem:[%s3700_s6 + $0xe4] sm:$0xf]  ;;  %v3747_v56 = vunpack.c.h.bf16 %v2987_v59  ;;  %v2279_v59 = vld [vmem:[%s3700_s6 + $0xd0] sm:$0xf0]  ;;  %v2245_v49 = vld [vmem:[%s3700_s6 + $0x80] sm:$0xf] }
 0x621   : > { %v2298_v6 = vor.u32 %v2489_v12, %v2295_v23  ;;  %v2282_v26 = vor.u32 %v2485_v10, %v2279_v59  ;;  %v2258_v12 = vor.u32 %v2478_v42, %v2255_v60  ;;  %v2473_v23 = vld [vmem:[%s3700_s6 + $0x64] sm:$0xf]  ;;  %v2238_v10 = vor.u32 %v2476_v21, %v2237_v36  ;;  %v2463_v42 = vld [vmem:[%s3700_s6 + $0xc] sm:$0xf0]  ;;  %v2516_v36 = vld [vmem:[%s3702_s8 + $0xb8] sm:$0xff] }
 0x622   : > { %v1359_v11 = vsel %vm536_vm2, %v1295_v3, 0.0  ;;  %v1363_v57 = vsel %vm536_vm2, %v1297_v16, 0.0  ;;  %v1280_v3 = vmul.f32 %v3747_v56, %v1157_v25  ;;  %v2285_v25 = vld [vmem:[%s3700_s6 + $0xc8] sm:$0xf]  ;;  %v2479_v16 = vld [vmem:[%s3700_s6 + $0x8c] sm:$0xf0] }
 0x623   : > { %v1360_v4 = vadd.f32 %v1359_v11, %v1358_v17  ;;  %1596 = vmatpush.bf16.msrb.mxu1 %v2298_v6  ;;  %v2486_v11 = vld [vmem:[%s3700_s6 + $0xcc] sm:$0xf]  ;;  %v2286_v44 = vor.u32 %v2488_v0, %v2285_v25  ;;  %v2261_v17 = vld [vmem:[%s3700_s6 + $0xa0] sm:$0xf]  ;;  %v3749_v6 = vunpack.c.h.bf16 %v3039_v20  ;;  %v2239_v56 = vld [vmem:[%s3700_s6 + $0x78] sm:$0xf0]  ;;  %v2234_v20 = vor.u32 %v2473_v23, %v2231_v55 }
 0x624   : > { %v2290_v29 = vor.u32 %v2486_v11, %v2287_v31  ;;  %v1324_v54 = vsel %vm536_vm2, %v1280_v3, 0.0  ;;  %v2242_v59 = vor.u32 %v2474_v19, %v2239_v56  ;;  %v2469_v25 = vld [vmem:[%s3700_s6 + $0x44] sm:$0xf]  ;;  %v2472_v0 = vld [vmem:[%s3700_s6 + $0x54] sm:$0xf0]  ;;  %v2507_v21 = vld [vmem:[%s3702_s8 + $0x70] sm:$0xff] }
 0x625   : > { %v1362_v13 = vadd.f32 %v1361_v27, %v1360_v4  ;;  %v2262_v4 = vor.u32 %v2483_v32, %v2261_v17  ;;  %1610 = vmatpush.bf16.msra.mxu2 %v2286_v44  ;;  %v2274_v27 = vor.u32 %v2482_v50, %v2271_v33  ;;  %v2470_v11 = vld [vmem:[%s3700_s6 + $0x4c] sm:$0xf]  ;;  %v2223_v31 = vld [vmem:[%s3700_s6 + $0x58] sm:$0xf0]  ;;  %v2461_v60 = vld [vmem:[%s3700_s6 + $0x4] sm:$0xf] }
 0x626   : > { %1623 = vmatpush.bf16.msra.mxu3 %v2290_v29  ;;  %v2214_v29 = vor.u32 %v2471_v43, %v2213_v52  ;;  %v2500_v23 = vld [vmem:[%s3702_s8 + $0x38] sm:$0xff]  ;;  %v2515_v19 = vld [vmem:[%s3702_s8 + $0xb0] sm:$0xff]  ;;  %v2505_v52 = vld [vmem:[%s3702_s8 + $0x60] sm:$0xff] }
 0x627   : > { %v1364_v5 = vadd.f32 %v1363_v57, %v1362_v13  ;;  %1597 = vmatpush.bf16.msrb.mxu1 %v2282_v26  ;;  %v2247_v13 = vld [vmem:[%s3700_s6 + $0x90] sm:$0xf0]  ;;  %1585 = vmatpush.bf16.msrb.mxu0 %v2262_v4  ;;  %v2221_v26 = vld [vmem:[%s3700_s6 + $0x48] sm:$0xf]  ;;  %v2226_v4 = vor.u32 %v2470_v11, %v2223_v31  ;;  %v2508_v55 = vld [vmem:[%s3702_s8 + $0x78] sm:$0xff] }
 0x628   : > { %v2523_v56 = vld [vmem:[%s3702_s8 + $0xf0] sm:$0xff]  ;;  %v2513_v43 = vld [vmem:[%s3702_s8 + $0xa0] sm:$0xff] }
 0x629   : > { %1611 = vmatpush.bf16.msra.mxu2 %v2270_v34  ;;  %v2202_v34 = vor.u32 %v2465_v35, %v2199_v46  ;;  %v2679_v31 = vld [vmem:[#allocation5] sm:$0x3]  ;;  %v2518_v35 = vld [vmem:[%s3702_s8 + $0xc8] sm:$0xff] }
 0x62a   : > { %1624 = vmatpush.bf16.msra.mxu3 %v2274_v27  ;;  %v2509_v46 = vld [vmem:[%s3702_s8 + $0x80] sm:$0xff] }
 0x62b   : > { %1598 = vmatpush.bf16.msrb.mxu1 %v2266_v30  ;;  %v2466_v30 = vld [vmem:[%s3700_s6 + $0x2c] sm:$0xf] }
 0x62e   : > { %1625 = vmatpush.bf16.msra.mxu3 %v2258_v12 }
 0x62f   : > { %v1266_v40 = vpop.permute.xlu2 %1265  ;;  %v1163_v38 = vpop.permute.xlu1 %1162 }
 0x630   : > { %v1298_v48 = vmul.f32 %v3746_v28, %v1266_v40  ;;  %v1281_v14 = vmul.f32 %v3748_v63, %v1163_v38  ;;  %v2253_v40 = vld [vmem:[%s3700_s6 + $0x88] sm:$0xf]  ;;  %v1323_v28 = vadd.f32 %v3360_v39, %v1321_v9  ;;  %v2475_v39 = vld [vmem:[%s3700_s6 + $0x6c] sm:$0xf0]  ;;  %v2215_v38 = vld [vmem:[%s3700_s6 + $0x50] sm:$0xf0] }
 0x631   : > { %v2254_v51 = vor.u32 %v2480_v2, %v2253_v40  ;;  %v2218_v32 = vor.u32 %v2469_v25, %v2215_v38  ;;  %v2467_v9 = vld [vmem:[%s3700_s6 + $0x2c] sm:$0xf0]  ;;  %v2205_v63 = vld [vmem:[%s3700_s6 + $0x28] sm:$0xf]  ;;  %v2512_v25 = vld [vmem:[%s3702_s8 + $0x98] sm:$0xff] }
 0x632   : > { %v1365_v22 = vsel %vm536_vm2, %v1298_v48, 0.0  ;;  %v2246_v48 = vor.u32 %v2479_v16, %v2245_v49  ;;  %v1326_v57 = vsel %vm536_vm2, %v1281_v14, 0.0  ;;  %v1325_v37 = vadd.f32 %v1324_v54, %v1323_v28  ;;  %1626 = vmatpush.bf16.msra.mxu3 %v2242_v59  ;;  %v2468_v14 = vld [vmem:[%s3700_s6 + $0x34] sm:$0xf0] }
 0x633   : > { %v1366_v58 = vadd.f32 %v1365_v22, %v1364_v5  ;;  %v2250_v22 = vor.u32 %v2477_v53, %v2247_v13  ;;  %1612 = vmatpush.bf16.msra.mxu2 %v2254_v51  ;;  %v2198_v33 = vor.u32 %v2467_v9, %v2197_v1  ;;  %v2206_v16 = vor.u32 %v2468_v14, %v2205_v63  ;;  %v2191_v51 = vld [vmem:[%s3700_s6 + $0x18] sm:$0xf0]  ;;  %v2511_v1 = vld [vmem:[%s3702_s8 + $0x90] sm:$0xff]  ;;  %v2517_v63 = vld [vmem:[%s3702_s8 + $0xc0] sm:$0xff] }
 0x634   : > { %v1327_v3 = vadd.f32 %v1326_v57, %v1325_v37  ;;  %1586 = vmatpush.bf16.msrb.mxu0 %v2246_v48  ;;  %v2210_v53 = vor.u32 %v2466_v30, %v2207_v45  ;;  %v2181_v48 = vld [vmem:[%s3700_s6] sm:$0xf]  ;;  %v2183_v57 = vld [vmem:[%s3700_s6 + $0x10] sm:$0xf0]  ;;  %v2504_v59 = vld [vmem:[%s3702_s8 + $0x58] sm:$0xff] }
 0x635   : > { %v1367_v62 = vrot.slane %v1366_v58, 4  ;;  %1599 = vmatpush.bf16.msrb.mxu1 %v2250_v22  ;;  %v2189_v22 = vld [vmem:[%s3700_s6 + $0x8] sm:$0xf]  ;;  %v2520_v38 = vld [vmem:[%s3702_s8 + $0xd8] sm:$0xff]  ;;  %v2519_v9 = vld [vmem:[%s3702_s8 + $0xd0] sm:$0xff] }
 0x636   : > { %1627 = vmatpush.bf16.msra.mxu3 %v2226_v4  ;;  %v2510_v4 = vld [vmem:[%s3702_s8 + $0x88] sm:$0xff]  ;;  %v1413_v14 = vld [vmem:[%s3701_s7] sm:$0xf] }
 0x637   : > { %v1368_v7 = vadd.f32 %v1367_v62, %v1366_v58  ;;  %v2230_v58 = vor.u32 %v2475_v39, %v2229_v24  ;;  %1613 = vmatpush.bf16.msra.mxu2 %v2238_v10  ;;  %v2222_v62 = vor.u32 %v2472_v0, %v2221_v26  ;;  %v2464_v24 = vld [vmem:[%s3700_s6 + $0x14] sm:$0xf0]  ;;  %v2186_v39 = vor.u32 %v2461_v60, %v2183_v57  ;;  %v2495_v26 = vld [vmem:[%s3702_s8 + $0x10] sm:$0xff] }
 0x638   : > { %v2190_v37 = vor.u32 %v2464_v24, %v2189_v22  ;;  %v2496_v10 = vld [vmem:[%s3702_s8 + $0x18] sm:$0xff]  ;;  %v2503_v0 = vld [vmem:[%s3702_s8 + $0x50] sm:$0xff]  ;;  %v1415_v30 = vperm.slane %v1413_v14, 0  ;;  %v1416_v45 = vperm.slane %v1413_v14, 1 }
 0x639   : > { %v1369_v47 = vrot.slane %v1368_v7, 2  ;;  %1587 = vmatpush.bf16.msrb.mxu0 %v2230_v58  ;;  %1600 = vmatpush.bf16.msrb.mxu1 %v2234_v20  ;;  %v2506_v58 = vld [vmem:[%s3702_s8 + $0x68] sm:$0xff]  ;;  %v2497_v20 = vld [vmem:[%s3702_s8 + $0x20] sm:$0xff] }
 0x63a   : > { %1628 = vmatpush.bf16.msra.mxu3 %v2210_v53  ;;  %v1417_v53 = vperm.slane %v1413_v14, 2 }
 0x63b   : > { %v1370_v17 = vadd.f32 %v1369_v47, %v1368_v7  ;;  %1614 = vmatpush.bf16.msra.mxu2 %v2222_v62  ;;  %v2182_v7 = vor.u32 %v2463_v42, %v2181_v48  ;;  %v2514_v47 = vld [vmem:[%s3702_s8 + $0xa8] sm:$0xff]  ;;  %v2501_v62 = vld [vmem:[%s3702_s8 + $0x40] sm:$0xff] }
 0x63d   : > { %1588 = vmatpush.bf16.msrb.mxu0 %v2214_v29  ;;  %1601 = vmatpush.bf16.msrb.mxu1 %v2218_v32  ;;  %v1371_v49 = vrot.slane %v1370_v17, 1  ;;  %v2502_v32 = vld [vmem:[%s3702_s8 + $0x48] sm:$0xff] }
 0x63f   : > { %v1169_v5 = vpop.permute.xlu1 %1168  ;;  %v1372_v2 = vadd.f32 %v1371_v49, %v1370_v17  ;;  %1615 = vmatpush.bf16.msra.mxu2 %v2206_v16  ;;  %v2494_v17 = vld [vmem:[%s3702_s8 + $0x8] sm:$0xff] }
 0x640   : > { %v1282_v61 = vmul.f32 %v3749_v6, %v1169_v5  ;;  %v2462_v5 = vld [vmem:[%s3700_s6 + $0xc] sm:$0xf]  ;;  %v2524_v6 = vld [vmem:[%s3702_s8 + $0xf8] sm:$0xff] }
 0x641   : > { %1589 = vmatpush.bf16.msrb.mxu0 %v2198_v33  ;;  %1602 = vmatpush.bf16.msrb.mxu1 %v2202_v34  ;;  %v2194_v12 = vor.u32 %v2462_v5, %v2191_v51 }
 0x642   : > { %v1328_v8 = vsel %vm536_vm2, %v1282_v61, 0.0  ;;  %v2499_v61 = vld [vmem:[%s3702_s8 + $0x30] sm:$0xff] }
 0x643   : > { %v1329_v15 = vadd.f32 %v1328_v8, %v1327_v3  ;;  %1616 = vmatpush.bf16.msra.mxu2 %v2190_v37  ;;  %1629 = vmatpush.bf16.msra.mxu3 %v2194_v12  ;;  %v2498_v3 = vld [vmem:[%s3702_s8 + $0x28] sm:$0xff] }
 0x644   : > { %v2522_v8 = vld [vmem:[%s3702_s8 + $0xe8] sm:$0xff] }
 0x645   : > { %v1330_v44 = vrot.slane %v1329_v15, 4  ;;  %1590 = vmatpush.bf16.msrb.mxu0 %v2182_v7  ;;  %1603 = vmatpush.bf16.msrb.mxu1 %v2186_v39 }
 0x647   : > { %v1331_v54 = vadd.f32 %v1330_v44, %v1329_v15  ;;  %1929 = vmatpush.bf16.msrb.mxu2 %v2516_v36  ;;  %1942 = vmatpush.bf16.msrb.mxu3 %v2524_v6  ;;  %v2521_v15 = vld [vmem:[%s3702_s8 + $0xe0] sm:$0xff] }
 0x648   : > { %v2650_v36 = vld [vmem:[%s3703_s9] ss:$0 sm:$0xff] }
 0x649   : > { %v1332_v50 = vrot.slane %v1331_v54, 2  ;;  %1903 = vmatpush.bf16.msra.mxu0 %v2500_v23  ;;  %1916 = vmatpush.bf16.msra.mxu1 %v2508_v55 }
 0x64b   : > { %v1333_v27 = vadd.f32 %v1332_v50, %v1331_v54  ;;  %1930 = vmatpush.bf16.msrb.mxu2 %v2515_v19  ;;  %1943 = vmatpush.bf16.msrb.mxu3 %v2523_v56  ;;  %v2493_v54 = vld [vmem:[%s3702_s8] sm:$0xff] }
 0x64d   : > { %v1334_v13 = vrot.slane %v1333_v27, 1  ;;  %1904 = vmatpush.bf16.msra.mxu0 %v2499_v61  ;;  %1917 = vmatpush.bf16.msra.mxu1 %v2507_v21 }
 0x64f   : > { %v1335_v40 = vadd.f32 %v1334_v13, %v1333_v27  ;;  %1931 = vmatpush.bf16.msrb.mxu2 %v2514_v47  ;;  %1944 = vmatpush.bf16.msrb.mxu3 %v2522_v8  ;;  %v1418_v13 = vperm.slane %v1413_v14, 3 }
 0x651   : > { %v3544_v28 = vsel %vm1057_vm8, %v1372_v2, %v1335_v40  ;;  %1905 = vmatpush.bf16.msra.mxu0 %v2498_v3  ;;  %1918 = vmatpush.bf16.msra.mxu1 %v2506_v58 }
 0x652   : > { %1376 = vrot.lane.b32.xlu0 %v3544_v28, %s2689_s19 }
 0x653   : > { %1932 = vmatpush.bf16.msrb.mxu2 %v2513_v43  ;;  %1945 = vmatpush.bf16.msrb.mxu3 %v2521_v15 }
 0x655   : > { %1906 = vmatpush.bf16.msra.mxu0 %v2497_v20  ;;  %1919 = vmatpush.bf16.msra.mxu1 %v2505_v52 }
 0x657   : > { %1933 = vmatpush.bf16.msrb.mxu2 %v2512_v25  ;;  %1946 = vmatpush.bf16.msrb.mxu3 %v2520_v38 }
 0x659   : > { %1907 = vmatpush.bf16.msra.mxu0 %v2496_v10  ;;  %1920 = vmatpush.bf16.msra.mxu1 %v2504_v59 }
 0x65b   : > { %1934 = vmatpush.bf16.msrb.mxu2 %v2511_v1  ;;  %1947 = vmatpush.bf16.msrb.mxu3 %v2519_v9 }
 0x65d   : > { %1908 = vmatpush.bf16.msra.mxu0 %v2495_v26  ;;  %1921 = vmatpush.bf16.msra.mxu1 %v2503_v0  ;;  %v2438_v26 = vld [vmem:[%s3696_s2] sm:$0xf] }
 0x65f   : > { %1935 = vmatpush.bf16.msrb.mxu2 %v2510_v4  ;;  %1948 = vmatpush.bf16.msrb.mxu3 %v2518_v35  ;;  %v2691_v4 = vmov 0.0  }
 0x661   : > { %1909 = vmatpush.bf16.msra.mxu0 %v2494_v17  ;;  %1922 = vmatpush.bf16.msra.mxu1 %v2502_v32 }
 0x663   : > { %1936 = vmatpush.bf16.msrb.mxu2 %v2509_v46  ;;  %1949 = vmatpush.bf16.msrb.mxu3 %v2517_v63 }
 0x665   : > { %1910 = vmatpush.bf16.msra.mxu0 %v2493_v54  ;;  %1923 = vmatpush.bf16.msra.mxu1 %v2501_v62 }
 0x6c4   : > { %v1377_v11 = vpop.permute.xlu0 %1376 }
 0x6c5   : > { %v1379_v44 = vsel %vm536_vm2, %v2679_v31, %v1377_v11  ;;  %vm1957_vm2 = vcmp.lt.s32.totalorder %v3160_v41, 12 }
 0x6c6   : > { %v1380_v29 = vpack.c.bf16 %v1379_v44, %v1379_v44 }
 0x6c8   : > { %1591 = vmatmul.bf16.vlgmr.msrb.gmra.mxu0 %v1380_v29  ;;  %1604 = vmatmul.bf16.vlgmr.msrb.gmra.mxu1 %v1380_v29 }
 0x6c9   : > { %1617 = vmatmul.bf16.vlgmr.msra.gmra.mxu2 %v1380_v29  ;;  %1630 = vmatmul.bf16.vlgmr.msra.gmra.mxu3 %v1380_v29 }
 0x745   : > { %v1592_v50 = vpop.f32.mrf.mxu0  ;;  %v1605_v33 = vpop.f32.mrf.mxu1 }
 0x746   : > { %v1593_v34 = vadd.f32 %v1592_v50, %v1415_v30  ;;  %v1606_v27 = vadd.f32 %v1605_v33, %v1416_v45 }
 0x748   : > { %v1635_v49 = vmax.f32 %v1593_v34, 0.0  ;;  %v1636_v16 = vmax.f32 %v1606_v27, 0.0 }
 0x74a   : > { %v1639_v40 = vpack.c.bf16 %v1635_v49, %v1635_v49  ;;  %v1640_v2 = vpack.c.bf16 %v1636_v16, %v1636_v16 }
 0x74c   : > { %v1618_v48 = vpop.f32.mrf.mxu2  ;;  %v1631_v42 = vpop.f32.mrf.mxu3  ;;  %1911 = vmatmul.bf16.vlgmr.msra.gmra.mxu0 %v1639_v40  ;;  %1924 = vmatmul.bf16.vlgmr.msra.gmra.mxu1 %v1640_v2 }
 0x74d   : > { %v1619_v60 = vadd.f32 %v1618_v48, %v1417_v53  ;;  %v1632_v7 = vadd.f32 %v1631_v42, %v1418_v13  ;;  %v1594_v57 = vpop.f32.mrf.mxu0  ;;  %v1607_v22 = vpop.f32.mrf.mxu1 }
 0x74f   : > { %v1637_v24 = vmax.f32 %v1619_v60, 0.0  ;;  %v1638_v39 = vmax.f32 %v1632_v7, 0.0 }
 0x751   : > { %v1641_v37 = vpack.c.bf16 %v1637_v24, %v1637_v24  ;;  %v1642_v5 = vpack.c.bf16 %v1638_v39, %v1638_v39 }
 0x753   : > { %1937 = vmatmul.bf16.vlgmr.msrb.gmra.mxu2 %v1641_v37  ;;  %1950 = vmatmul.bf16.vlgmr.msrb.gmra.mxu3 %v1642_v5 }
 0x754   : > { %v1620_v51 = vpop.f32.mrf.mxu2  ;;  %v1633_v12 = vpop.f32.mrf.mxu3 }
 0x7c9   : > { %v1912_v23 = vpop.f32.mrf.mxu0  ;;  %v1925_v55 = vpop.f32.mrf.mxu1 }
 0x7ca   : > { %v1913_v6 = vadd.f32 %v2650_v36, %v1912_v23 }
 0x7cc   : > { %v1926_v19 = vadd.f32 %v1925_v55, %v1913_v6 }
 0x7d1   : > { %v1914_v61 = vpop.f32.mrf.mxu0  ;;  %v1927_v21 = vpop.f32.mrf.mxu1 }
 0x7d6   : > { %v1938_v56 = vpop.f32.mrf.mxu2  ;;  %v1951_v3 = vpop.f32.mrf.mxu3 }
 0x7d7   : > { %v1939_v58 = vadd.f32 %v1938_v56, %v1926_v19 }
 0x7d9   : > { %v1952_v47 = vadd.f32 %v1951_v3, %v1939_v58 }
 0x7db   : > { %1955 = vst [vmem:[%s2763_s23] sm:$0x3] %v1952_v47  ;;  %v1958_v8 = vsel %vm1957_vm2, %v1952_v47, -inf }
 0x7dc   : > { %v1959_v20 = vsel %vm1061_vm10, %v1958_v8, -inf }
 0x7dd   : > { %1960 = vmax.xlane.f32.xlu1 %v1959_v20 }
 0x7de   : > { %v1940_v52 = vpop.f32.mrf.mxu2  ;;  %v1953_v43 = vpop.f32.mrf.mxu3 }
 0x7f6   : > { %2011 = vrot.lane.b32.xlu1 %v3544_v28, %s2690_s29  ;;  %v2525_v28 = vld [vmem:[%s3696_s2] sm:$0x30] }
 0x7f7   : > { %v2439_v0 = vor.u32 %v2525_v28, %v2438_v26 }
 0x7f9   : > { %v1996_v11 = vsel %vm1994_vm12, %v2439_v0, 0 }
 0x7fa   : > { %2005 = vmatpush.bf16.msrb.mxu0 %v1996_v11 }
 0x850   : > { %v1961_v15 = vpop.xlane.xlu1 %1960 }
 0x851   : > { %vm1962_vm11 = vcmp.eq.f32.partialorder %v1958_v8, %v1961_v15 }
 0x852   : > { %v1963_v10 = vsel %vm1962_vm11, %v3160_v41, 128 }
 0x853   : > { %v1964_v59 = vsel %vm1061_vm10, %v1963_v10, 2147483647 }
 0x854   : > { %v1966_v25 = vshra.s32 %v1964_v59, 16  ;;  %v1965_v31 = vand.u32 65535, %v1964_v59 }
 0x856   : > { %v1968_v38 = vcvt.s32.f32 %v1966_v25  ;;  %v1967_v29 = vcvt.s32.f32 %v1965_v31 }
 0x858   : > { %1969 = vmin.xlane.f32.xlu2 %v1968_v38 }
 0x868   : > { %v2012_v63 = vpop.permute.xlu1 %2011 }
 0x870   : > { %727 = vrot.lane.b32.xlu2 %v2909_v18, %s2689_s19 }
 0x8cb   : > { %v1970_v44 = vpop.xlane.xlu2 %1969 }
 0x8cc   : > { %vm1971_vm13 = vcmp.eq.f32.partialorder %v1968_v38, %v1970_v44  ;;  %v1976_v18 = vcvt.f32.s32 %v1970_v44 }
 0x8cd   : > { %v1972_v17 = vsel %vm1971_vm13, %v1967_v29, inf }
 0x8ce   : > { %1973 = vmin.xlane.f32.xlu0 %v1972_v17  ;;  %v1977_v9 = vshll.u32 %v1976_v18, 16 }
 0x8d3   : > { %v728_v32 = vpop.permute.xlu2 %727 }
 0x8d4   : > { %730 = vst.msk [vmem:[#allocation3 - $0x1] sm:$0x2] %vm723_vm6, %v728_v32 }
 0x941   : > { %v1974_v1 = vpop.xlane.xlu0 %1973 }
 0x942   : > { %v1975_v54 = vcvt.f32.s32 %v1974_v1 }
 0x944   : > { %v1978_v62 = vadd.s32 %v1977_v9, %v1975_v54 }
 0x946   : > { %vm1979_vm14 = vcmp.eq.s32.totalorder %v3160_v41, %v1978_v62 }
 0x947   : > { %v2435_v35 = vsel %vm1979_vm14, 1.0, %v2691_v4 }
 0x948   : > { %v1982_v46 = vpack.c.bf16 %v2435_v35, %v2435_v35 }
 0x94a   : > { %2440 = vmatmul.msk.bf16.vlgmr.msrb.gmra.mxu0 %vm1990_vm15, %v1982_v46 }
 0x9c7   : > { %v2007_v14 = vpop.f32.mrf.mxu0 }
 0x9c8   : > { %v2015_v30 = vsel %vm2014_vm0, %v2007_v14, %v2012_v63 }
 0x9c9   : > { %2017 = vst.msk [vmem:[#allocation4] sm:$0x3] %vm2016_vm1, %v2015_v30 }
 0x9cf   : > { %v2009_v45 = vpop.f32.mrf.mxu0 }
 0x9d0 PF: > { %s22_s17 = sadd.s32 1, %s2686_s17  }
 0x9d1   : > { %p19_p5 = scmp.ge.s32.totalorder %s22_s17, 6  }
 0x9d3   :  { %21 = sbr.rel (!%p19_p5) target bundleno = 1 (0x1), region = 103 }

</bundles_post_ra>
